<compile_context>
chip_gen: v6e
topology: v6e:2x2x1
jax: 0.10.0
libtpu: 0.0.40
codegen_flags: <defaults>
</compile_context>

<pallas_src>
import functools
from typing import NamedTuple

import jax
import jax.numpy as jnp
from jax.experimental import pallas as pl
from jax.experimental.pallas import tpu as pltpu


class ConvMeta(NamedTuple):
    kh: int
    kw: int
    cin: int
    cout: int


def _round_up(x, m):
    return ((x + m - 1) // m) * m


# ----------------------------------------------------------------------------
# Pallas kernel: M/N/K-tiled GEMM, f32 scratch accumulator (init = bias),
# fused optional ReLU and optional residual (skip) add, bf16/f32 output.
# ----------------------------------------------------------------------------
def _gemm_kernel(*refs, relu, has_residual):
    if has_residual:
        a_ref, b_ref, bias_ref, res_ref, o_ref, acc_ref = refs
    else:
        a_ref, b_ref, bias_ref, o_ref, acc_ref = refs
        res_ref = None

    k = pl.program_id(2)

    @pl.when(k == 0)
    def _():
        # Init the accumulator with the broadcast bias: no zero-fill, and the
        # bias add disappears from the epilogue.
        acc_ref[...] = jnp.broadcast_to(bias_ref[...], acc_ref.shape)

    acc_ref[...] += jnp.dot(a_ref[...], b_ref[...],
                            preferred_element_type=jnp.float32)

    @pl.when(k == pl.num_programs(2) - 1)
    def _():
        out = acc_ref[...]
        if relu:
            out = jnp.maximum(out, 0.0)
        if has_residual:
            out = out + res_ref[...].astype(jnp.float32)   # skip-add AFTER ReLU
        o_ref[...] = out.astype(o_ref.dtype)


def _select_tiles(M, Kp, Np):
    # Largest 128-multiple divisor of Kp that is <= 512.
    tk = 128
    for c in (512, 384, 256, 128):
        if Kp % c == 0:
            tk = c
            break
    # tn = 256 keeps at least 2 N blocks for Np=512 layers (v7x megacore).
    tn = 256 if Np % 256 == 0 else 128

    Mp = _round_up(max(M, 16), 16)            # bf16 sublane packing
    if Mp >= 256:
        tm = 256
        Mp = _round_up(M, 256)
    else:
        tm = Mp

    # v7x: make sure the parallel (m, n) grid has >= 2 blocks so both
    # TensorCores get work.
    if (Mp // tm) * (Np // tn) == 1 and tm >= 32 and (tm // 2) % 16 == 0:
        tm //= 2
    return tm, tn, tk, Mp


def matmul_bias(a, w_packed, bias_packed, n_true, *, relu, residual=None,
                out_dtype=jnp.bfloat16):
    """(M, K) @ (Kp, Np) pre-packed bf16 weight + bias [+ ReLU] [+ residual]."""
    M, K = a.shape
    Kp, Np = w_packed.shape
    assert Kp >= K and Np >= n_true

    tm, tn, tk, Mp = _select_tiles(M, Kp, Np)

    a_p = a.astype(jnp.bfloat16)
    if (Mp, Kp) != (M, K):
        a_p = jnp.pad(a_p, ((0, Mp - M), (0, Kp - K)))

    inputs = [a_p, w_packed, bias_packed]
    in_specs = [
        pl.BlockSpec((tm, tk), lambda m, n, k: (m, k)),
        pl.BlockSpec((tk, tn), lambda m, n, k: (k, n)),
        pl.BlockSpec((1, tn), lambda m, n, k: (0, n)),
    ]

    has_residual = residual is not None
    if has_residual:
        r = residual.astype(jnp.bfloat16)
        rM, rN = r.shape
        r = jnp.pad(r, ((0, Mp - rM), (0, Np - rN)))
        inputs.append(r)
        in_specs.append(pl.BlockSpec((tm, tn), lambda m, n, k: (m, n)))

    out_bytes = Mp * Np * jnp.dtype(out_dtype).itemsize
    flops = 2 * M * n_true * K
    bytes_accessed = (Mp * Kp * 2 + Kp * Np * 2 + out_bytes + Np * 4
                      + (Mp * Np * 2 if has_residual else 0))

    out = pl.pallas_call(
        functools.partial(_gemm_kernel, relu=relu, has_residual=has_residual),
        out_shape=jax.ShapeDtypeStruct((Mp, Np), out_dtype),
        grid_spec=pltpu.PrefetchScalarGridSpec(
            num_scalar_prefetch=0,
            grid=(Mp // tm, Np // tn, Kp // tk),
            in_specs=in_specs,
            out_specs=pl.BlockSpec((tm, tn), lambda m, n, k: (m, n)),
            scratch_shapes=[pltpu.VMEM((tm, tn), jnp.float32)],
        ),
        compiler_params=pltpu.CompilerParams(
            dimension_semantics=("parallel", "parallel", "arbitrary"),
            vmem_limit_bytes=32 * 1024 * 1024,
        ),
        cost_estimate=pl.CostEstimate(
            flops=int(flops), transcendentals=0,
            bytes_accessed=int(bytes_accessed)),
    )(*inputs)

    if Mp != M or Np != n_true:
        out = out[:M, :n_true]
    return out


# ----------------------------------------------------------------------------
# Conv2d = im2col (bf16 glue) + Pallas GEMM (hot path)
# ----------------------------------------------------------------------------
def _im2col(x, kh, kw, stride, dilation, padding):
    # x: NHWC (bf16)
    n, h, w, c = x.shape
    ho = (h + 2 * padding - dilation * (kh - 1) - 1) // stride + 1
    wo = (w + 2 * padding - dilation * (kw - 1) - 1) // stride + 1
    if kh == 1 and kw == 1 and stride == 1 and padding == 0:
        return x.reshape(n * h * w, c), (n, h, w)
    xp = jnp.pad(x, ((0, 0), (padding, padding), (padding, padding), (0, 0)))
    cols = []
    for i in range(kh):
        for j in range(kw):
            hi0 = i * dilation
            wj0 = j * dilation
            patch = xp[:,
                       hi0: hi0 + stride * (ho - 1) + 1: stride,
                       wj0: wj0 + stride * (wo - 1) + 1: stride, :]
            cols.append(patch)
    cols = jnp.concatenate(cols, axis=-1)          # (N, Ho, Wo, kh*kw*C) bf16
    return cols.reshape(n * ho * wo, kh * kw * c), (n, ho, wo)


def conv2d(x, w_packed, b_packed, meta, *, stride=1, dilation=1, padding=0,
           relu=False, residual=None, out_dtype=jnp.bfloat16):
    cols, (n, ho, wo) = _im2col(x, meta.kh, meta.kw, stride, dilation, padding)
    res2d = None
    if residual is not None:
        res2d = residual.reshape(n * ho * wo, residual.shape[-1])
    out = matmul_bias(cols, w_packed, b_packed, meta.cout, relu=relu,
                      residual=res2d, out_dtype=out_dtype)
    return out.reshape(n, ho, wo, meta.cout)


def _upsample2x(x):
    # Single broadcast + reshape 2x nearest upsample.
    n, h, w, c = x.shape
    y = jnp.broadcast_to(x[:, :, None, :, None, :], (n, h, 2, w, 2, c))
    return y.reshape(n, 2 * h, 2 * w, c)


# ----------------------------------------------------------------------------
# Parameters (deterministic synthetic init, pre-packed for the GEMM kernel).
# Arrays live in `params` (traced); static shapes live in `meta` (not traced).
# ----------------------------------------------------------------------------
def _pack_conv(key, kh, kw, cin, cout):
    kw_, kb_ = jax.random.split(key)
    fan_in = kh * kw * cin
    w = jax.random.normal(kw_, (kh, kw, cin, cout), jnp.float32) / jnp.sqrt(
        jnp.float32(fan_in))
    b = 0.01 * jax.random.normal(kb_, (cout,), jnp.float32)
    K = kh * kw * cin
    Kp = _round_up(max(K, 128), 128)
    Np = _round_up(max(cout, 128), 128)
    w2 = jnp.pad(w.reshape(K, cout),
                 ((0, Kp - K), (0, Np - cout))).astype(jnp.bfloat16)
    b2 = jnp.pad(b, (0, Np - cout)).reshape(1, Np).astype(jnp.float32)
    return {"w": w2, "b": b2}, ConvMeta(kh, kw, cin, cout)


def init_generator_params(key, in_ch=5, mid_ch=32, emb_ch=512):
    keys = jax.random.split(key, 10)
    br = 128  # ASPP branch channels (4 branches * 128 = 512)
    layout = {
        "enc1": (keys[0], 3, 3, in_ch, mid_ch),
        "enc2": (keys[1], 3, 3, mid_ch, emb_ch),
        "aspp0": (keys[2], 1, 1, emb_ch, br),
        "aspp1": (keys[3], 3, 3, emb_ch, br),
        "aspp2": (keys[4], 3, 3, emb_ch, br),
        "aspp3": (keys[5], 1, 1, emb_ch, br),
        "aspp_proj": (keys[6], 1, 1, 4 * br, emb_ch),
        "dec1": (keys[7], 3, 3, emb_ch, mid_ch),
        "dec2": (keys[8], 3, 3, mid_ch, 1),
    }
    params, meta = {}, {}
    for name, args in layout.items():
        params[name], meta[name] = _pack_conv(*args)
    return params, meta


# ----------------------------------------------------------------------------
# Generator.forward
# ----------------------------------------------------------------------------
def generator_forward(params, image, tg_guidance, re_guidance, *, meta):
    # torch.cat((image, tg_guidance, re_guidance), dim=1)  -- NCHW
    inp = jnp.concatenate([image, tg_guidance, re_guidance], axis=1)
    x = jnp.transpose(inp, (0, 2, 3, 1)).astype(jnp.bfloat16)   # NHWC, bf16 once

    def conv(name, x, **kw):
        return conv2d(x, params[name]["w"], params[name]["b"], meta[name], **kw)

    # encoder -> (embedding, mid_fea)
    mid_fea = conv("enc1", x, stride=2, padding=1, relu=True)
    embedding = conv("enc2", mid_fea, stride=2, padding=1, relu=True)

    # ASPP(512 -> 512)
    b0 = conv("aspp0", embedding, relu=True)
    b1 = conv("aspp1", embedding, dilation=2, padding=2, relu=True)
    b2 = conv("aspp2", embedding, dilation=4, padding=4, relu=True)
    gp = jnp.mean(embedding.astype(jnp.float32), axis=(1, 2),
                  keepdims=True).astype(jnp.bfloat16)           # tiny pooling
    b3 = conv("aspp3", gp, relu=True)
    b3 = jnp.broadcast_to(
        b3, (b3.shape[0], embedding.shape[1], embedding.shape[2], b3.shape[-1]))
    cat = jnp.concatenate([b0, b1, b2, b3], axis=-1)            # bf16 concat
    embedding = conv("aspp_proj", cat, relu=True)

    # decoder (skip-add with mid_fea fused into the dec1 GEMM epilogue)
    y = _upsample2x(embedding)
    y = conv("dec1", y, padding=1, relu=True, residual=mid_fea)
    y = _upsample2x(y)
    pred = conv("dec2", y, padding=1, relu=False, out_dtype=jnp.float32)

    return jnp.transpose(pred, (0, 3, 1, 2))                    # back to NCHW


if __name__ == "__main__":
    key = jax.random.PRNGKey(0)
    k_img, k_tg, k_re, k_par = jax.random.split(key, 4)

    # Small shapes: batch=2, RGB image + 1-channel target / reference guidance.
    image = jax.random.normal(k_img, (2, 3, 16, 16), jnp.float32)
    tg_guidance = jax.random.normal(k_tg, (2, 1, 16, 16), jnp.float32)
    re_guidance = jax.random.normal(k_re, (2, 1, 16, 16), jnp.float32)

    params, meta = init_generator_params(k_par, in_ch=5)

    fwd = jax.jit(functools.partial(generator_forward, meta=meta))
    pred = fwd(params, image, tg_guidance, re_guidance)
    pred = jax.block_until_ready(pred)

    assert pred.shape == (2, 1, 16, 16)
    assert bool(jnp.all(jnp.isfinite(pred)))
    print("KERNEL_OK")
</pallas_src>

<mosaic_0001>
module attributes {stable_mosaic.version = 11 : i64} {
  func.func @_gemm_kernel(%arg0: i32, %arg1: i32, %arg2: i32, %arg3: memref<64x128xbf16, #tpu.memory_space<vmem>>, %arg4: memref<128x128xbf16, #tpu.memory_space<vmem>>, %arg5: memref<1x128xf32, #tpu.memory_space<vmem>>, %arg6: memref<64x128xbf16, #tpu.memory_space<vmem>>, %arg7: memref<64x128xf32, #tpu.memory_space<vmem>>) attributes {dimension_semantics = [#tpu.dimension_semantics<parallel>, #tpu.dimension_semantics<parallel>, #tpu.dimension_semantics<arbitrary>], iteration_bounds = array<i64: 2, 1, 1>, scalar_prefetch = 0 : i64, scratch_operands = 1 : i64, tpu.core_type = #tpu.core_type<tc>, window_params = [{transform_indices = @transform_0, window_bounds = array<i64: 64, 128>}, {transform_indices = @transform_1, window_bounds = array<i64: 128, 128>}, {transform_indices = @transform_2, window_bounds = array<i64: 1, 128>}, {transform_indices = @transform_3, window_bounds = array<i64: 64, 128>}]} {
    %c0_i32 = arith.constant 0 : i32
    %0 = arith.cmpi eq, %arg2, %c0_i32 : i32
    %1 = arith.extui %0 : i1 to i32
    %c0_i32_0 = arith.constant 0 : i32
    %2 = arith.cmpi ne, %1, %c0_i32_0 : i32
    scf.if %2 {
      %c0_10 = arith.constant 0 : index
      %c0_11 = arith.constant 0 : index
      %12 = vector.load %arg5[%c0_10, %c0_11] : memref<1x128xf32, #tpu.memory_space<vmem>>, vector<1x128xf32>
      %13 = vector.shape_cast %12 : vector<1x128xf32> to vector<1x128xf32>
      %14 = vector.broadcast %13 : vector<1x128xf32> to vector<64x128xf32>
      %c0_12 = arith.constant 0 : index
      %c0_13 = arith.constant 0 : index
      %15 = vector.load %arg7[%c0_12, %c0_13] : memref<64x128xf32, #tpu.memory_space<vmem>>, vector<64x128xf32>
      tpu.vector_store %arg7[%c0_12, %c0_13], %14 {strides = array<i32>} : memref<64x128xf32, #tpu.memory_space<vmem>>, vector<64x128xf32>,
    } else {
    }
    %c0 = arith.constant 0 : index
    %c0_1 = arith.constant 0 : index
    %3 = vector.load %arg7[%c0, %c0_1] : memref<64x128xf32, #tpu.memory_space<vmem>>, vector<64x128xf32>
    %c0_2 = arith.constant 0 : index
    %c0_3 = arith.constant 0 : index
    %4 = vector.load %arg3[%c0_2, %c0_3] : memref<64x128xbf16, #tpu.memory_space<vmem>>, vector<64x128xbf16>
    %c0_4 = arith.constant 0 : index
    %c0_5 = arith.constant 0 : index
    %5 = vector.load %arg4[%c0_4, %c0_5] : memref<128x128xbf16, #tpu.memory_space<vmem>>, vector<128x128xbf16>
    %cst = arith.constant dense<0.000000e+00> : vector<64x128xf32>
    %6 = tpu.matmul %4, %5, %cst {dimension_numbers = #tpu.dot_dimension_numbers<[1], [0], [0], [1], [0, 0, 1, 1], [], []>} : vector<64x128xbf16>, vector<128x128xbf16>, vector<64x128xf32> -> vector<64x128xf32>
    %7 = arith.addf %3, %6 : vector<64x128xf32>
    %c0_6 = arith.constant 0 : index
    %c0_7 = arith.constant 0 : index
    %8 = vector.load %arg7[%c0_6, %c0_7] : memref<64x128xf32, #tpu.memory_space<vmem>>, vector<64x128xf32>
    tpu.vector_store %arg7[%c0_6, %c0_7], %7 {strides = array<i32>} : memref<64x128xf32, #tpu.memory_space<vmem>>, vector<64x128xf32>,
    %c0_i32_8 = arith.constant 0 : i32
    %9 = arith.cmpi eq, %arg2, %c0_i32_8 : i32
    %10 = arith.extui %9 : i1 to i32
    %c0_i32_9 = arith.constant 0 : i32
    %11 = arith.cmpi ne, %10, %c0_i32_9 : i32
    scf.if %11 {
      %c0_10 = arith.constant 0 : index
      %c0_11 = arith.constant 0 : index
      %12 = vector.load %arg7[%c0_10, %c0_11] : memref<64x128xf32, #tpu.memory_space<vmem>>, vector<64x128xf32>
      %cst_12 = arith.constant 0.000000e+00 : f32
      %13 = vector.broadcast %cst_12 : f32 to vector<64x128xf32>
      %14 = arith.maximumf %12, %13 : vector<64x128xf32>
      %15 = arith.truncf %14 : vector<64x128xf32> to vector<64x128xbf16>
      %c0_13 = arith.constant 0 : index
      %c0_14 = arith.constant 0 : index
      %16 = vector.load %arg6[%c0_13, %c0_14] : memref<64x128xbf16, #tpu.memory_space<vmem>>, vector<64x128xbf16>
      tpu.vector_store %arg6[%c0_13, %c0_14], %15 {strides = array<i32>} : memref<64x128xbf16, #tpu.memory_space<vmem>>, vector<64x128xbf16>,
    } else {
    }
    return
  }
  func.func @transform_0(%arg0: i32, %arg1: i32, %arg2: i32) -> (i32, i32) {
    %c0_i32 = arith.constant 0 : i32
    return %arg0, %arg2 : i32, i32
  }
  func.func @transform_1(%arg0: i32, %arg1: i32, %arg2: i32) -> (i32, i32) {
    %c0_i32 = arith.constant 0 : i32
    return %arg2, %arg1 : i32, i32
  }
  func.func @transform_2(%arg0: i32, %arg1: i32, %arg2: i32) -> (i32, i32) {
    %c0_i32 = arith.constant 0 : i32
    %c0_i32_0 = arith.constant 0 : i32
    return %c0_i32, %arg1 : i32, i32
  }
  func.func @transform_3(%arg0: i32, %arg1: i32, %arg2: i32) -> (i32, i32) {
    %c0_i32 = arith.constant 0 : i32
    return %arg0, %arg1 : i32, i32
  }
}

module attributes {stable_mosaic.version = 11 : i64} {
  func.func @_gemm_kernel(%arg0: i32, %arg1: i32, %arg2: i32, %arg3: memref<32x384xbf16, #tpu.memory_space<vmem>>, %arg4: memref<384x256xbf16, #tpu.memory_space<vmem>>, %arg5: memref<1x256xf32, #tpu.memory_space<vmem>>, %arg6: memref<32x256xbf16, #tpu.memory_space<vmem>>, %arg7: memref<32x256xf32, #tpu.memory_space<vmem>>) attributes {dimension_semantics = [#tpu.dimension_semantics<parallel>, #tpu.dimension_semantics<parallel>, #tpu.dimension_semantics<arbitrary>], iteration_bounds = array<i64: 1, 2, 1>, scalar_prefetch = 0 : i64, scratch_operands = 1 : i64, tpu.core_type = #tpu.core_type<tc>, window_params = [{transform_indices = @transform_0, window_bounds = array<i64: 32, 384>}, {transform_indices = @transform_1, window_bounds = array<i64: 384, 256>}, {transform_indices = @transform_2, window_bounds = array<i64: 1, 256>}, {transform_indices = @transform_3, window_bounds = array<i64: 32, 256>}]} {
    %c0_i32 = arith.constant 0 : i32
    %0 = arith.cmpi eq, %arg2, %c0_i32 : i32
    %1 = arith.extui %0 : i1 to i32
    %c0_i32_0 = arith.constant 0 : i32
    %2 = arith.cmpi ne, %1, %c0_i32_0 : i32
    scf.if %2 {
      %c0_10 = arith.constant 0 : index
      %c0_11 = arith.constant 0 : index
      %12 = vector.load %arg5[%c0_10, %c0_11] : memref<1x256xf32, #tpu.memory_space<vmem>>, vector<1x256xf32>
      %13 = vector.shape_cast %12 : vector<1x256xf32> to vector<1x256xf32>
      %14 = vector.broadcast %13 : vector<1x256xf32> to vector<32x256xf32>
      %c0_12 = arith.constant 0 : index
      %c0_13 = arith.constant 0 : index
      %15 = vector.load %arg7[%c0_12, %c0_13] : memref<32x256xf32, #tpu.memory_space<vmem>>, vector<32x256xf32>
      tpu.vector_store %arg7[%c0_12, %c0_13], %14 {strides = array<i32>} : memref<32x256xf32, #tpu.memory_space<vmem>>, vector<32x256xf32>,
    } else {
    }
    %c0 = arith.constant 0 : index
    %c0_1 = arith.constant 0 : index
    %3 = vector.load %arg7[%c0, %c0_1] : memref<32x256xf32, #tpu.memory_space<vmem>>, vector<32x256xf32>
    %c0_2 = arith.constant 0 : index
    %c0_3 = arith.constant 0 : index
    %4 = vector.load %arg3[%c0_2, %c0_3] : memref<32x384xbf16, #tpu.memory_space<vmem>>, vector<32x384xbf16>
    %c0_4 = arith.constant 0 : index
    %c0_5 = arith.constant 0 : index
    %5 = vector.load %arg4[%c0_4, %c0_5] : memref<384x256xbf16, #tpu.memory_space<vmem>>, vector<384x256xbf16>
    %cst = arith.constant dense<0.000000e+00> : vector<32x256xf32>
    %6 = tpu.matmul %4, %5, %cst {dimension_numbers = #tpu.dot_dimension_numbers<[1], [0], [0], [1], [0, 0, 1, 1], [], []>} : vector<32x384xbf16>, vector<384x256xbf16>, vector<32x256xf32> -> vector<32x256xf32>
    %7 = arith.addf %3, %6 : vector<32x256xf32>
    %c0_6 = arith.constant 0 : index
    %c0_7 = arith.constant 0 : index
    %8 = vector.load %arg7[%c0_6, %c0_7] : memref<32x256xf32, #tpu.memory_space<vmem>>, vector<32x256xf32>
    tpu.vector_store %arg7[%c0_6, %c0_7], %7 {strides = array<i32>} : memref<32x256xf32, #tpu.memory_space<vmem>>, vector<32x256xf32>,
    %c0_i32_8 = arith.constant 0 : i32
    %9 = arith.cmpi eq, %arg2, %c0_i32_8 : i32
    %10 = arith.extui %9 : i1 to i32
    %c0_i32_9 = arith.constant 0 : i32
    %11 = arith.cmpi ne, %10, %c0_i32_9 : i32
    scf.if %11 {
      %c0_10 = arith.constant 0 : index
      %c0_11 = arith.constant 0 : index
      %12 = vector.load %arg7[%c0_10, %c0_11] : memref<32x256xf32, #tpu.memory_space<vmem>>, vector<32x256xf32>
      %cst_12 = arith.constant 0.000000e+00 : f32
      %13 = vector.broadcast %cst_12 : f32 to vector<32x256xf32>
      %14 = arith.maximumf %12, %13 : vector<32x256xf32>
      %15 = arith.truncf %14 : vector<32x256xf32> to vector<32x256xbf16>
      %c0_13 = arith.constant 0 : index
      %c0_14 = arith.constant 0 : index
      %16 = vector.load %arg6[%c0_13, %c0_14] : memref<32x256xbf16, #tpu.memory_space<vmem>>, vector<32x256xbf16>
      tpu.vector_store %arg6[%c0_13, %c0_14], %15 {strides = array<i32>} : memref<32x256xbf16, #tpu.memory_space<vmem>>, vector<32x256xbf16>,
    } else {
    }
    return
  }
  func.func @transform_0(%arg0: i32, %arg1: i32, %arg2: i32) -> (i32, i32) {
    %c0_i32 = arith.constant 0 : i32
    return %arg0, %arg2 : i32, i32
  }
  func.func @transform_1(%arg0: i32, %arg1: i32, %arg2: i32) -> (i32, i32) {
    %c0_i32 = arith.constant 0 : i32
    return %arg2, %arg1 : i32, i32
  }
  func.func @transform_2(%arg0: i32, %arg1: i32, %arg2: i32) -> (i32, i32) {
    %c0_i32 = arith.constant 0 : i32
    %c0_i32_0 = arith.constant 0 : i32
    return %c0_i32, %arg1 : i32, i32
  }
  func.func @transform_3(%arg0: i32, %arg1: i32, %arg2: i32) -> (i32, i32) {
    %c0_i32 = arith.constant 0 : i32
    return %arg0, %arg1 : i32, i32
  }
}

module attributes {stable_mosaic.version = 11 : i64} {
  func.func @_gemm_kernel(%arg0: i32, %arg1: i32, %arg2: i32, %arg3: memref<16x512xbf16, #tpu.memory_space<vmem>>, %arg4: memref<512x128xbf16, #tpu.memory_space<vmem>>, %arg5: memref<1x128xf32, #tpu.memory_space<vmem>>, %arg6: memref<16x128xbf16, #tpu.memory_space<vmem>>, %arg7: memref<16x128xf32, #tpu.memory_space<vmem>>) attributes {dimension_semantics = [#tpu.dimension_semantics<parallel>, #tpu.dimension_semantics<parallel>, #tpu.dimension_semantics<arbitrary>], iteration_bounds = array<i64: 2, 1, 1>, scalar_prefetch = 0 : i64, scratch_operands = 1 : i64, tpu.core_type = #tpu.core_type<tc>, window_params = [{transform_indices = @transform_0, window_bounds = array<i64: 16, 512>}, {transform_indices = @transform_1, window_bounds = array<i64: 512, 128>}, {transform_indices = @transform_2, window_bounds = array<i64: 1, 128>}, {transform_indices = @transform_3, window_bounds = array<i64: 16, 128>}]} {
    %c0_i32 = arith.constant 0 : i32
    %0 = arith.cmpi eq, %arg2, %c0_i32 : i32
    %1 = arith.extui %0 : i1 to i32
    %c0_i32_0 = arith.constant 0 : i32
    %2 = arith.cmpi ne, %1, %c0_i32_0 : i32
    scf.if %2 {
      %c0_10 = arith.constant 0 : index
      %c0_11 = arith.constant 0 : index
      %12 = vector.load %arg5[%c0_10, %c0_11] : memref<1x128xf32, #tpu.memory_space<vmem>>, vector<1x128xf32>
      %13 = vector.shape_cast %12 : vector<1x128xf32> to vector<1x128xf32>
      %14 = vector.broadcast %13 : vector<1x128xf32> to vector<16x128xf32>
      %c0_12 = arith.constant 0 : index
      %c0_13 = arith.constant 0 : index
      %15 = vector.load %arg7[%c0_12, %c0_13] : memref<16x128xf32, #tpu.memory_space<vmem>>, vector<16x128xf32>
      tpu.vector_store %arg7[%c0_12, %c0_13], %14 {strides = array<i32>} : memref<16x128xf32, #tpu.memory_space<vmem>>, vector<16x128xf32>,
    } else {
    }
    %c0 = arith.constant 0 : index
    %c0_1 = arith.constant 0 : index
    %3 = vector.load %arg7[%c0, %c0_1] : memref<16x128xf32, #tpu.memory_space<vmem>>, vector<16x128xf32>
    %c0_2 = arith.constant 0 : index
    %c0_3 = arith.constant 0 : index
    %4 = vector.load %arg3[%c0_2, %c0_3] : memref<16x512xbf16, #tpu.memory_space<vmem>>, vector<16x512xbf16>
    %c0_4 = arith.constant 0 : index
    %c0_5 = arith.constant 0 : index
    %5 = vector.load %arg4[%c0_4, %c0_5] : memref<512x128xbf16, #tpu.memory_space<vmem>>, vector<512x128xbf16>
    %cst = arith.constant dense<0.000000e+00> : vector<16x128xf32>
    %6 = tpu.matmul %4, %5, %cst {dimension_numbers = #tpu.dot_dimension_numbers<[1], [0], [0], [1], [0, 0, 1, 1], [], []>} : vector<16x512xbf16>, vector<512x128xbf16>, vector<16x128xf32> -> vector<16x128xf32>
    %7 = arith.addf %3, %6 : vector<16x128xf32>
    %c0_6 = arith.constant 0 : index
    %c0_7 = arith.constant 0 : index
    %8 = vector.load %arg7[%c0_6, %c0_7] : memref<16x128xf32, #tpu.memory_space<vmem>>, vector<16x128xf32>
    tpu.vector_store %arg7[%c0_6, %c0_7], %7 {strides = array<i32>} : memref<16x128xf32, #tpu.memory_space<vmem>>, vector<16x128xf32>,
    %c0_i32_8 = arith.constant 0 : i32
    %9 = arith.cmpi eq, %arg2, %c0_i32_8 : i32
    %10 = arith.extui %9 : i1 to i32
    %c0_i32_9 = arith.constant 0 : i32
    %11 = arith.cmpi ne, %10, %c0_i32_9 : i32
    scf.if %11 {
      %c0_10 = arith.constant 0 : index
      %c0_11 = arith.constant 0 : index
      %12 = vector.load %arg7[%c0_10, %c0_11] : memref<16x128xf32, #tpu.memory_space<vmem>>, vector<16x128xf32>
      %cst_12 = arith.constant 0.000000e+00 : f32
      %13 = vector.broadcast %cst_12 : f32 to vector<16x128xf32>
      %14 = arith.maximumf %12, %13 : vector<16x128xf32>
      %15 = arith.truncf %14 : vector<16x128xf32> to vector<16x128xbf16>
      %c0_13 = arith.constant 0 : index
      %c0_14 = arith.constant 0 : index
      %16 = vector.load %arg6[%c0_13, %c0_14] : memref<16x128xbf16, #tpu.memory_space<vmem>>, vector<16x128xbf16>
      tpu.vector_store %arg6[%c0_13, %c0_14], %15 {strides = array<i32>} : memref<16x128xbf16, #tpu.memory_space<vmem>>, vector<16x128xbf16>,
    } else {
    }
    return
  }
  func.func @transform_0(%arg0: i32, %arg1: i32, %arg2: i32) -> (i32, i32) {
    %c0_i32 = arith.constant 0 : i32
    return %arg0, %arg2 : i32, i32
  }
  func.func @transform_1(%arg0: i32, %arg1: i32, %arg2: i32) -> (i32, i32) {
    %c0_i32 = arith.constant 0 : i32
    return %arg2, %arg1 : i32, i32
  }
  func.func @transform_2(%arg0: i32, %arg1: i32, %arg2: i32) -> (i32, i32) {
    %c0_i32 = arith.constant 0 : i32
    %c0_i32_0 = arith.constant 0 : i32
    return %c0_i32, %arg1 : i32, i32
  }
  func.func @transform_3(%arg0: i32, %arg1: i32, %arg2: i32) -> (i32, i32) {
    %c0_i32 = arith.constant 0 : i32
    return %arg0, %arg1 : i32, i32
  }
}

module attributes {stable_mosaic.version = 11 : i64} {
  func.func @_gemm_kernel(%arg0: i32, %arg1: i32, %arg2: i32, %arg3: memref<16x512xbf16, #tpu.memory_space<vmem>>, %arg4: memref<512x128xbf16, #tpu.memory_space<vmem>>, %arg5: memref<1x128xf32, #tpu.memory_space<vmem>>, %arg6: memref<16x128xbf16, #tpu.memory_space<vmem>>, %arg7: memref<16x128xf32, #tpu.memory_space<vmem>>) attributes {dimension_semantics = [#tpu.dimension_semantics<parallel>, #tpu.dimension_semantics<parallel>, #tpu.dimension_semantics<arbitrary>], iteration_bounds = array<i64: 1, 1, 1>, scalar_prefetch = 0 : i64, scratch_operands = 1 : i64, tpu.core_type = #tpu.core_type<tc>, window_params = [{transform_indices = @transform_0, window_bounds = array<i64: 16, 512>}, {transform_indices = @transform_1, window_bounds = array<i64: 512, 128>}, {transform_indices = @transform_2, window_bounds = array<i64: 1, 128>}, {transform_indices = @transform_3, window_bounds = array<i64: 16, 128>}]} {
    %c0_i32 = arith.constant 0 : i32
    %0 = arith.cmpi eq, %arg2, %c0_i32 : i32
    %1 = arith.extui %0 : i1 to i32
    %c0_i32_0 = arith.constant 0 : i32
    %2 = arith.cmpi ne, %1, %c0_i32_0 : i32
    scf.if %2 {
      %c0_10 = arith.constant 0 : index
      %c0_11 = arith.constant 0 : index
      %12 = vector.load %arg5[%c0_10, %c0_11] : memref<1x128xf32, #tpu.memory_space<vmem>>, vector<1x128xf32>
      %13 = vector.shape_cast %12 : vector<1x128xf32> to vector<1x128xf32>
      %14 = vector.broadcast %13 : vector<1x128xf32> to vector<16x128xf32>
      %c0_12 = arith.constant 0 : index
      %c0_13 = arith.constant 0 : index
      %15 = vector.load %arg7[%c0_12, %c0_13] : memref<16x128xf32, #tpu.memory_space<vmem>>, vector<16x128xf32>
      tpu.vector_store %arg7[%c0_12, %c0_13], %14 {strides = array<i32>} : memref<16x128xf32, #tpu.memory_space<vmem>>, vector<16x128xf32>,
    } else {
    }
    %c0 = arith.constant 0 : index
    %c0_1 = arith.constant 0 : index
    %3 = vector.load %arg7[%c0, %c0_1] : memref<16x128xf32, #tpu.memory_space<vmem>>, vector<16x128xf32>
    %c0_2 = arith.constant 0 : index
    %c0_3 = arith.constant 0 : index
    %4 = vector.load %arg3[%c0_2, %c0_3] : memref<16x512xbf16, #tpu.memory_space<vmem>>, vector<16x512xbf16>
    %c0_4 = arith.constant 0 : index
    %c0_5 = arith.constant 0 : index
    %5 = vector.load %arg4[%c0_4, %c0_5] : memref<512x128xbf16, #tpu.memory_space<vmem>>, vector<512x128xbf16>
    %cst = arith.constant dense<0.000000e+00> : vector<16x128xf32>
    %6 = tpu.matmul %4, %5, %cst {dimension_numbers = #tpu.dot_dimension_numbers<[1], [0], [0], [1], [0, 0, 1, 1], [], []>} : vector<16x512xbf16>, vector<512x128xbf16>, vector<16x128xf32> -> vector<16x128xf32>
    %7 = arith.addf %3, %6 : vector<16x128xf32>
    %c0_6 = arith.constant 0 : index
    %c0_7 = arith.constant 0 : index
    %8 = vector.load %arg7[%c0_6, %c0_7] : memref<16x128xf32, #tpu.memory_space<vmem>>, vector<16x128xf32>
    tpu.vector_store %arg7[%c0_6, %c0_7], %7 {strides = array<i32>} : memref<16x128xf32, #tpu.memory_space<vmem>>, vector<16x128xf32>,
    %c0_i32_8 = arith.constant 0 : i32
    %9 = arith.cmpi eq, %arg2, %c0_i32_8 : i32
    %10 = arith.extui %9 : i1 to i32
    %c0_i32_9 = arith.constant 0 : i32
    %11 = arith.cmpi ne, %10, %c0_i32_9 : i32
    scf.if %11 {
      %c0_10 = arith.constant 0 : index
      %c0_11 = arith.constant 0 : index
      %12 = vector.load %arg7[%c0_10, %c0_11] : memref<16x128xf32, #tpu.memory_space<vmem>>, vector<16x128xf32>
      %cst_12 = arith.constant 0.000000e+00 : f32
      %13 = vector.broadcast %cst_12 : f32 to vector<16x128xf32>
      %14 = arith.maximumf %12, %13 : vector<16x128xf32>
      %15 = arith.truncf %14 : vector<16x128xf32> to vector<16x128xbf16>
      %c0_13 = arith.constant 0 : index
      %c0_14 = arith.constant 0 : index
      %16 = vector.load %arg6[%c0_13, %c0_14] : memref<16x128xbf16, #tpu.memory_space<vmem>>, vector<16x128xbf16>
      tpu.vector_store %arg6[%c0_13, %c0_14], %15 {strides = array<i32>} : memref<16x128xbf16, #tpu.memory_space<vmem>>, vector<16x128xbf16>,
    } else {
    }
    return
  }
  func.func @transform_0(%arg0: i32, %arg1: i32, %arg2: i32) -> (i32, i32) {
    %c0_i32 = arith.constant 0 : i32
    return %arg0, %arg2 : i32, i32
  }
  func.func @transform_1(%arg0: i32, %arg1: i32, %arg2: i32) -> (i32, i32) {
    %c0_i32 = arith.constant 0 : i32
    return %arg2, %arg1 : i32, i32
  }
  func.func @transform_2(%arg0: i32, %arg1: i32, %arg2: i32) -> (i32, i32) {
    %c0_i32 = arith.constant 0 : i32
    %c0_i32_0 = arith.constant 0 : i32
    return %c0_i32, %arg1 : i32, i32
  }
  func.func @transform_3(%arg0: i32, %arg1: i32, %arg2: i32) -> (i32, i32) {
    %c0_i32 = arith.constant 0 : i32
    return %arg0, %arg1 : i32, i32
  }
}

module attributes {stable_mosaic.version = 11 : i64} {
  func.func @_gemm_kernel(%arg0: i32, %arg1: i32, %arg2: i32, %arg3: memref<16x512xbf16, #tpu.memory_space<vmem>>, %arg4: memref<512x128xbf16, #tpu.memory_space<vmem>>, %arg5: memref<1x128xf32, #tpu.memory_space<vmem>>, %arg6: memref<16x128xbf16, #tpu.memory_space<vmem>>, %arg7: memref<16x128xf32, #tpu.memory_space<vmem>>) attributes {dimension_semantics = [#tpu.dimension_semantics<parallel>, #tpu.dimension_semantics<parallel>, #tpu.dimension_semantics<arbitrary>], iteration_bounds = array<i64: 2, 1, 9>, scalar_prefetch = 0 : i64, scratch_operands = 1 : i64, tpu.core_type = #tpu.core_type<tc>, window_params = [{transform_indices = @transform_0, window_bounds = array<i64: 16, 512>}, {transform_indices = @transform_1, window_bounds = array<i64: 512, 128>}, {transform_indices = @transform_2, window_bounds = array<i64: 1, 128>}, {transform_indices = @transform_3, window_bounds = array<i64: 16, 128>}]} {
    %c0_i32 = arith.constant 0 : i32
    %0 = arith.cmpi eq, %arg2, %c0_i32 : i32
    %1 = arith.extui %0 : i1 to i32
    %c0_i32_0 = arith.constant 0 : i32
    %2 = arith.cmpi ne, %1, %c0_i32_0 : i32
    scf.if %2 {
      %c0_9 = arith.constant 0 : index
      %c0_10 = arith.constant 0 : index
      %12 = vector.load %arg5[%c0_9, %c0_10] : memref<1x128xf32, #tpu.memory_space<vmem>>, vector<1x128xf32>
      %13 = vector.shape_cast %12 : vector<1x128xf32> to vector<1x128xf32>
      %14 = vector.broadcast %13 : vector<1x128xf32> to vector<16x128xf32>
      %c0_11 = arith.constant 0 : index
      %c0_12 = arith.constant 0 : index
      %15 = vector.load %arg7[%c0_11, %c0_12] : memref<16x128xf32, #tpu.memory_space<vmem>>, vector<16x128xf32>
      tpu.vector_store %arg7[%c0_11, %c0_12], %14 {strides = array<i32>} : memref<16x128xf32, #tpu.memory_space<vmem>>, vector<16x128xf32>,
    } else {
    }
    %c0 = arith.constant 0 : index
    %c0_1 = arith.constant 0 : index
    %3 = vector.load %arg7[%c0, %c0_1] : memref<16x128xf32, #tpu.memory_space<vmem>>, vector<16x128xf32>
    %c0_2 = arith.constant 0 : index
    %c0_3 = arith.constant 0 : index
    %4 = vector.load %arg3[%c0_2, %c0_3] : memref<16x512xbf16, #tpu.memory_space<vmem>>, vector<16x512xbf16>
    %c0_4 = arith.constant 0 : index
    %c0_5 = arith.constant 0 : index
    %5 = vector.load %arg4[%c0_4, %c0_5] : memref<512x128xbf16, #tpu.memory_space<vmem>>, vector<512x128xbf16>
    %cst = arith.constant dense<0.000000e+00> : vector<16x128xf32>
    %6 = tpu.matmul %4, %5, %cst {dimension_numbers = #tpu.dot_dimension_numbers<[1], [0], [0], [1], [0, 0, 1, 1], [], []>} : vector<16x512xbf16>, vector<512x128xbf16>, vector<16x128xf32> -> vector<16x128xf32>
    %7 = arith.addf %3, %6 : vector<16x128xf32>
    %c0_6 = arith.constant 0 : index
    %c0_7 = arith.constant 0 : index
    %8 = vector.load %arg7[%c0_6, %c0_7] : memref<16x128xf32, #tpu.memory_space<vmem>>, vector<16x128xf32>
    tpu.vector_store %arg7[%c0_6, %c0_7], %7 {strides = array<i32>} : memref<16x128xf32, #tpu.memory_space<vmem>>, vector<16x128xf32>,
    %c8_i32 = arith.constant 8 : i32
    %9 = arith.cmpi eq, %arg2, %c8_i32 : i32
    %10 = arith.extui %9 : i1 to i32
    %c0_i32_8 = arith.constant 0 : i32
    %11 = arith.cmpi ne, %10, %c0_i32_8 : i32
    scf.if %11 {
      %c0_9 = arith.constant 0 : index
      %c0_10 = arith.constant 0 : index
      %12 = vector.load %arg7[%c0_9, %c0_10] : memref<16x128xf32, #tpu.memory_space<vmem>>, vector<16x128xf32>
      %cst_11 = arith.constant 0.000000e+00 : f32
      %13 = vector.broadcast %cst_11 : f32 to vector<16x128xf32>
      %14 = arith.maximumf %12, %13 : vector<16x128xf32>
      %15 = arith.truncf %14 : vector<16x128xf32> to vector<16x128xbf16>
      %c0_12 = arith.constant 0 : index
      %c0_13 = arith.constant 0 : index
      %16 = vector.load %arg6[%c0_12, %c0_13] : memref<16x128xbf16, #tpu.memory_space<vmem>>, vector<16x128xbf16>
      tpu.vector_store %arg6[%c0_12, %c0_13], %15 {strides = array<i32>} : memref<16x128xbf16, #tpu.memory_space<vmem>>, vector<16x128xbf16>,
    } else {
    }
    return
  }
  func.func @transform_0(%arg0: i32, %arg1: i32, %arg2: i32) -> (i32, i32) {
    %c0_i32 = arith.constant 0 : i32
    return %arg0, %arg2 : i32, i32
  }
  func.func @transform_1(%arg0: i32, %arg1: i32, %arg2: i32) -> (i32, i32) {
    %c0_i32 = arith.constant 0 : i32
    return %arg2, %arg1 : i32, i32
  }
  func.func @transform_2(%arg0: i32, %arg1: i32, %arg2: i32) -> (i32, i32) {
    %c0_i32 = arith.constant 0 : i32
    %c0_i32_0 = arith.constant 0 : i32
    return %c0_i32, %arg1 : i32, i32
  }
  func.func @transform_3(%arg0: i32, %arg1: i32, %arg2: i32) -> (i32, i32) {
    %c0_i32 = arith.constant 0 : i32
    return %arg0, %arg1 : i32, i32
  }
}

module attributes {stable_mosaic.version = 11 : i64} {
  func.func @_gemm_kernel(%arg0: i32, %arg1: i32, %arg2: i32, %arg3: memref<32x512xbf16, #tpu.memory_space<vmem>>, %arg4: memref<512x256xbf16, #tpu.memory_space<vmem>>, %arg5: memref<1x256xf32, #tpu.memory_space<vmem>>, %arg6: memref<32x256xbf16, #tpu.memory_space<vmem>>, %arg7: memref<32x256xf32, #tpu.memory_space<vmem>>) attributes {dimension_semantics = [#tpu.dimension_semantics<parallel>, #tpu.dimension_semantics<parallel>, #tpu.dimension_semantics<arbitrary>], iteration_bounds = array<i64: 1, 2, 1>, scalar_prefetch = 0 : i64, scratch_operands = 1 : i64, tpu.core_type = #tpu.core_type<tc>, window_params = [{transform_indices = @transform_0, window_bounds = array<i64: 32, 512>}, {transform_indices = @transform_1, window_bounds = array<i64: 512, 256>}, {transform_indices = @transform_2, window_bounds = array<i64: 1, 256>}, {transform_indices = @transform_3, window_bounds = array<i64: 32, 256>}]} {
    %c0_i32 = arith.constant 0 : i32
    %0 = arith.cmpi eq, %arg2, %c0_i32 : i32
    %1 = arith.extui %0 : i1 to i32
    %c0_i32_0 = arith.constant 0 : i32
    %2 = arith.cmpi ne, %1, %c0_i32_0 : i32
    scf.if %2 {
      %c0_10 = arith.constant 0 : index
      %c0_11 = arith.constant 0 : index
      %12 = vector.load %arg5[%c0_10, %c0_11] : memref<1x256xf32, #tpu.memory_space<vmem>>, vector<1x256xf32>
      %13 = vector.shape_cast %12 : vector<1x256xf32> to vector<1x256xf32>
      %14 = vector.broadcast %13 : vector<1x256xf32> to vector<32x256xf32>
      %c0_12 = arith.constant 0 : index
      %c0_13 = arith.constant 0 : index
      %15 = vector.load %arg7[%c0_12, %c0_13] : memref<32x256xf32, #tpu.memory_space<vmem>>, vector<32x256xf32>
      tpu.vector_store %arg7[%c0_12, %c0_13], %14 {strides = array<i32>} : memref<32x256xf32, #tpu.memory_space<vmem>>, vector<32x256xf32>,
    } else {
    }
    %c0 = arith.constant 0 : index
    %c0_1 = arith.constant 0 : index
    %3 = vector.load %arg7[%c0, %c0_1] : memref<32x256xf32, #tpu.memory_space<vmem>>, vector<32x256xf32>
    %c0_2 = arith.constant 0 : index
    %c0_3 = arith.constant 0 : index
    %4 = vector.load %arg3[%c0_2, %c0_3] : memref<32x512xbf16, #tpu.memory_space<vmem>>, vector<32x512xbf16>
    %c0_4 = arith.constant 0 : index
    %c0_5 = arith.constant 0 : index
    %5 = vector.load %arg4[%c0_4, %c0_5] : memref<512x256xbf16, #tpu.memory_space<vmem>>, vector<512x256xbf16>
    %cst = arith.constant dense<0.000000e+00> : vector<32x256xf32>
    %6 = tpu.matmul %4, %5, %cst {dimension_numbers = #tpu.dot_dimension_numbers<[1], [0], [0], [1], [0, 0, 1, 1], [], []>} : vector<32x512xbf16>, vector<512x256xbf16>, vector<32x256xf32> -> vector<32x256xf32>
    %7 = arith.addf %3, %6 : vector<32x256xf32>
    %c0_6 = arith.constant 0 : index
    %c0_7 = arith.constant 0 : index
    %8 = vector.load %arg7[%c0_6, %c0_7] : memref<32x256xf32, #tpu.memory_space<vmem>>, vector<32x256xf32>
    tpu.vector_store %arg7[%c0_6, %c0_7], %7 {strides = array<i32>} : memref<32x256xf32, #tpu.memory_space<vmem>>, vector<32x256xf32>,
    %c0_i32_8 = arith.constant 0 : i32
    %9 = arith.cmpi eq, %arg2, %c0_i32_8 : i32
    %10 = arith.extui %9 : i1 to i32
    %c0_i32_9 = arith.constant 0 : i32
    %11 = arith.cmpi ne, %10, %c0_i32_9 : i32
    scf.if %11 {
      %c0_10 = arith.constant 0 : index
      %c0_11 = arith.constant 0 : index
      %12 = vector.load %arg7[%c0_10, %c0_11] : memref<32x256xf32, #tpu.memory_space<vmem>>, vector<32x256xf32>
      %cst_12 = arith.constant 0.000000e+00 : f32
      %13 = vector.broadcast %cst_12 : f32 to vector<32x256xf32>
      %14 = arith.maximumf %12, %13 : vector<32x256xf32>
      %15 = arith.truncf %14 : vector<32x256xf32> to vector<32x256xbf16>
      %c0_13 = arith.constant 0 : index
      %c0_14 = arith.constant 0 : index
      %16 = vector.load %arg6[%c0_13, %c0_14] : memref<32x256xbf16, #tpu.memory_space<vmem>>, vector<32x256xbf16>
      tpu.vector_store %arg6[%c0_13, %c0_14], %15 {strides = array<i32>} : memref<32x256xbf16, #tpu.memory_space<vmem>>, vector<32x256xbf16>,
    } else {
    }
    return
  }
  func.func @transform_0(%arg0: i32, %arg1: i32, %arg2: i32) -> (i32, i32) {
    %c0_i32 = arith.constant 0 : i32
    return %arg0, %arg2 : i32, i32
  }
  func.func @transform_1(%arg0: i32, %arg1: i32, %arg2: i32) -> (i32, i32) {
    %c0_i32 = arith.constant 0 : i32
    return %arg2, %arg1 : i32, i32
  }
  func.func @transform_2(%arg0: i32, %arg1: i32, %arg2: i32) -> (i32, i32) {
    %c0_i32 = arith.constant 0 : i32
    %c0_i32_0 = arith.constant 0 : i32
    return %c0_i32, %arg1 : i32, i32
  }
  func.func @transform_3(%arg0: i32, %arg1: i32, %arg2: i32) -> (i32, i32) {
    %c0_i32 = arith.constant 0 : i32
    return %arg0, %arg1 : i32, i32
  }
}

module attributes {stable_mosaic.version = 11 : i64} {
  func.func @_gemm_kernel(%arg0: i32, %arg1: i32, %arg2: i32, %arg3: memref<64x512xbf16, #tpu.memory_space<vmem>>, %arg4: memref<512x128xbf16, #tpu.memory_space<vmem>>, %arg5: memref<1x128xf32, #tpu.memory_space<vmem>>, %arg6: memref<64x128xbf16, #tpu.memory_space<vmem>>, %arg7: memref<64x128xbf16, #tpu.memory_space<vmem>>, %arg8: memref<64x128xf32, #tpu.memory_space<vmem>>) attributes {dimension_semantics = [#tpu.dimension_semantics<parallel>, #tpu.dimension_semantics<parallel>, #tpu.dimension_semantics<arbitrary>], iteration_bounds = array<i64: 2, 1, 9>, scalar_prefetch = 0 : i64, scratch_operands = 1 : i64, tpu.core_type = #tpu.core_type<tc>, window_params = [{transform_indices = @transform_0, window_bounds = array<i64: 64, 512>}, {transform_indices = @transform_1, window_bounds = array<i64: 512, 128>}, {transform_indices = @transform_2, window_bounds = array<i64: 1, 128>}, {transform_indices = @transform_3, window_bounds = array<i64: 64, 128>}, {transform_indices = @transform_4, window_bounds = array<i64: 64, 128>}]} {
    %c0_i32 = arith.constant 0 : i32
    %0 = arith.cmpi eq, %arg2, %c0_i32 : i32
    %1 = arith.extui %0 : i1 to i32
    %c0_i32_0 = arith.constant 0 : i32
    %2 = arith.cmpi ne, %1, %c0_i32_0 : i32
    scf.if %2 {
      %c0_9 = arith.constant 0 : index
      %c0_10 = arith.constant 0 : index
      %12 = vector.load %arg5[%c0_9, %c0_10] : memref<1x128xf32, #tpu.memory_space<vmem>>, vector<1x128xf32>
      %13 = vector.shape_cast %12 : vector<1x128xf32> to vector<1x128xf32>
      %14 = vector.broadcast %13 : vector<1x128xf32> to vector<64x128xf32>
      %c0_11 = arith.constant 0 : index
      %c0_12 = arith.constant 0 : index
      %15 = vector.load %arg8[%c0_11, %c0_12] : memref<64x128xf32, #tpu.memory_space<vmem>>, vector<64x128xf32>
      tpu.vector_store %arg8[%c0_11, %c0_12], %14 {strides = array<i32>} : memref<64x128xf32, #tpu.memory_space<vmem>>, vector<64x128xf32>,
    } else {
    }
    %c0 = arith.constant 0 : index
    %c0_1 = arith.constant 0 : index
    %3 = vector.load %arg8[%c0, %c0_1] : memref<64x128xf32, #tpu.memory_space<vmem>>, vector<64x128xf32>
    %c0_2 = arith.constant 0 : index
    %c0_3 = arith.constant 0 : index
    %4 = vector.load %arg3[%c0_2, %c0_3] : memref<64x512xbf16, #tpu.memory_space<vmem>>, vector<64x512xbf16>
    %c0_4 = arith.constant 0 : index
    %c0_5 = arith.constant 0 : index
    %5 = vector.load %arg4[%c0_4, %c0_5] : memref<512x128xbf16, #tpu.memory_space<vmem>>, vector<512x128xbf16>
    %cst = arith.constant dense<0.000000e+00> : vector<64x128xf32>
    %6 = tpu.matmul %4, %5, %cst {dimension_numbers = #tpu.dot_dimension_numbers<[1], [0], [0], [1], [0, 0, 1, 1], [], []>} : vector<64x512xbf16>, vector<512x128xbf16>, vector<64x128xf32> -> vector<64x128xf32>
    %7 = arith.addf %3, %6 : vector<64x128xf32>
    %c0_6 = arith.constant 0 : index
    %c0_7 = arith.constant 0 : index
    %8 = vector.load %arg8[%c0_6, %c0_7] : memref<64x128xf32, #tpu.memory_space<vmem>>, vector<64x128xf32>
    tpu.vector_store %arg8[%c0_6, %c0_7], %7 {strides = array<i32>} : memref<64x128xf32, #tpu.memory_space<vmem>>, vector<64x128xf32>,
    %c8_i32 = arith.constant 8 : i32
    %9 = arith.cmpi eq, %arg2, %c8_i32 : i32
    %10 = arith.extui %9 : i1 to i32
    %c0_i32_8 = arith.constant 0 : i32
    %11 = arith.cmpi ne, %10, %c0_i32_8 : i32
    scf.if %11 {
      %c0_9 = arith.constant 0 : index
      %c0_10 = arith.constant 0 : index
      %12 = vector.load %arg8[%c0_9, %c0_10] : memref<64x128xf32, #tpu.memory_space<vmem>>, vector<64x128xf32>
      %cst_11 = arith.constant 0.000000e+00 : f32
      %13 = vector.broadcast %cst_11 : f32 to vector<64x128xf32>
      %14 = arith.maximumf %12, %13 : vector<64x128xf32>
      %c0_12 = arith.constant 0 : index
      %c0_13 = arith.constant 0 : index
      %15 = vector.load %arg6[%c0_12, %c0_13] : memref<64x128xbf16, #tpu.memory_space<vmem>>, vector<64x128xbf16>
      %16 = arith.extf %15 : vector<64x128xbf16> to vector<64x128xf32>
      %17 = arith.addf %14, %16 : vector<64x128xf32>
      %18 = arith.truncf %17 : vector<64x128xf32> to vector<64x128xbf16>
      %c0_14 = arith.constant 0 : index
      %c0_15 = arith.constant 0 : index
      %19 = vector.load %arg7[%c0_14, %c0_15] : memref<64x128xbf16, #tpu.memory_space<vmem>>, vector<64x128xbf16>
      tpu.vector_store %arg7[%c0_14, %c0_15], %18 {strides = array<i32>} : memref<64x128xbf16, #tpu.memory_space<vmem>>, vector<64x128xbf16>,
    } else {
    }
    return
  }
  func.func @transform_0(%arg0: i32, %arg1: i32, %arg2: i32) -> (i32, i32) {
    %c0_i32 = arith.constant 0 : i32
    return %arg0, %arg2 : i32, i32
  }
  func.func @transform_1(%arg0: i32, %arg1: i32, %arg2: i32) -> (i32, i32) {
    %c0_i32 = arith.constant 0 : i32
    return %arg2, %arg1 : i32, i32
  }
  func.func @transform_2(%arg0: i32, %arg1: i32, %arg2: i32) -> (i32, i32) {
    %c0_i32 = arith.constant 0 : i32
    %c0_i32_0 = arith.constant 0 : i32
    return %c0_i32, %arg1 : i32, i32
  }
  func.func @transform_3(%arg0: i32, %arg1: i32, %arg2: i32) -> (i32, i32) {
    %c0_i32 = arith.constant 0 : i32
    return %arg0, %arg1 : i32, i32
  }
  func.func @transform_4(%arg0: i32, %arg1: i32, %arg2: i32) -> (i32, i32) {
    %c0_i32 = arith.constant 0 : i32
    return %arg0, %arg1 : i32, i32
  }
}

module attributes {stable_mosaic.version = 11 : i64} {
  func.func @_gemm_kernel(%arg0: i32, %arg1: i32, %arg2: i32, %arg3: memref<256x384xbf16, #tpu.memory_space<vmem>>, %arg4: memref<384x128xbf16, #tpu.memory_space<vmem>>, %arg5: memref<1x128xf32, #tpu.memory_space<vmem>>, %arg6: memref<256x128xf32, #tpu.memory_space<vmem>>, %arg7: memref<256x128xf32, #tpu.memory_space<vmem>>) attributes {dimension_semantics = [#tpu.dimension_semantics<parallel>, #tpu.dimension_semantics<parallel>, #tpu.dimension_semantics<arbitrary>], iteration_bounds = array<i64: 2, 1, 1>, scalar_prefetch = 0 : i64, scratch_operands = 1 : i64, tpu.core_type = #tpu.core_type<tc>, window_params = [{transform_indices = @transform_0, window_bounds = array<i64: 256, 384>}, {transform_indices = @transform_1, window_bounds = array<i64: 384, 128>}, {transform_indices = @transform_2, window_bounds = array<i64: 1, 128>}, {transform_indices = @transform_3, window_bounds = array<i64: 256, 128>}]} {
    %c0_i32 = arith.constant 0 : i32
    %0 = arith.cmpi eq, %arg2, %c0_i32 : i32
    %1 = arith.extui %0 : i1 to i32
    %c0_i32_0 = arith.constant 0 : i32
    %2 = arith.cmpi ne, %1, %c0_i32_0 : i32
    scf.if %2 {
      %c0_10 = arith.constant 0 : index
      %c0_11 = arith.constant 0 : index
      %12 = vector.load %arg5[%c0_10, %c0_11] : memref<1x128xf32, #tpu.memory_space<vmem>>, vector<1x128xf32>
      %13 = vector.shape_cast %12 : vector<1x128xf32> to vector<1x128xf32>
      %14 = vector.broadcast %13 : vector<1x128xf32> to vector<256x128xf32>
      %c0_12 = arith.constant 0 : index
      %c0_13 = arith.constant 0 : index
      %15 = vector.load %arg7[%c0_12, %c0_13] : memref<256x128xf32, #tpu.memory_space<vmem>>, vector<256x128xf32>
      tpu.vector_store %arg7[%c0_12, %c0_13], %14 {strides = array<i32>} : memref<256x128xf32, #tpu.memory_space<vmem>>, vector<256x128xf32>,
    } else {
    }
    %c0 = arith.constant 0 : index
    %c0_1 = arith.constant 0 : index
    %3 = vector.load %arg7[%c0, %c0_1] : memref<256x128xf32, #tpu.memory_space<vmem>>, vector<256x128xf32>
    %c0_2 = arith.constant 0 : index
    %c0_3 = arith.constant 0 : index
    %4 = vector.load %arg3[%c0_2, %c0_3] : memref<256x384xbf16, #tpu.memory_space<vmem>>, vector<256x384xbf16>
    %c0_4 = arith.constant 0 : index
    %c0_5 = arith.constant 0 : index
    %5 = vector.load %arg4[%c0_4, %c0_5] : memref<384x128xbf16, #tpu.memory_space<vmem>>, vector<384x128xbf16>
    %cst = arith.constant dense<0.000000e+00> : vector<256x128xf32>
    %6 = tpu.matmul %4, %5, %cst {dimension_numbers = #tpu.dot_dimension_numbers<[1], [0], [0], [1], [0, 0, 1, 1], [], []>} : vector<256x384xbf16>, vector<384x128xbf16>, vector<256x128xf32> -> vector<256x128xf32>
    %7 = arith.addf %3, %6 : vector<256x128xf32>
    %c0_6 = arith.constant 0 : index
    %c0_7 = arith.constant 0 : index
    %8 = vector.load %arg7[%c0_6, %c0_7] : memref<256x128xf32, #tpu.memory_space<vmem>>, vector<256x128xf32>
    tpu.vector_store %arg7[%c0_6, %c0_7], %7 {strides = array<i32>} : memref<256x128xf32, #tpu.memory_space<vmem>>, vector<256x128xf32>,
    %c0_i32_8 = arith.constant 0 : i32
    %9 = arith.cmpi eq, %arg2, %c0_i32_8 : i32
    %10 = arith.extui %9 : i1 to i32
    %c0_i32_9 = arith.constant 0 : i32
    %11 = arith.cmpi ne, %10, %c0_i32_9 : i32
    scf.if %11 {
      %c0_10 = arith.constant 0 : index
      %c0_11 = arith.constant 0 : index
      %12 = vector.load %arg7[%c0_10, %c0_11] : memref<256x128xf32, #tpu.memory_space<vmem>>, vector<256x128xf32>
      %c0_12 = arith.constant 0 : index
      %c0_13 = arith.constant 0 : index
      %13 = vector.load %arg6[%c0_12, %c0_13] : memref<256x128xf32, #tpu.memory_space<vmem>>, vector<256x128xf32>
      tpu.vector_store %arg6[%c0_12, %c0_13], %12 {strides = array<i32>} : memref<256x128xf32, #tpu.memory_space<vmem>>, vector<256x128xf32>,
    } else {
    }
    return
  }
  func.func @transform_0(%arg0: i32, %arg1: i32, %arg2: i32) -> (i32, i32) {
    %c0_i32 = arith.constant 0 : i32
    return %arg0, %arg2 : i32, i32
  }
  func.func @transform_1(%arg0: i32, %arg1: i32, %arg2: i32) -> (i32, i32) {
    %c0_i32 = arith.constant 0 : i32
    return %arg2, %arg1 : i32, i32
  }
  func.func @transform_2(%arg0: i32, %arg1: i32, %arg2: i32) -> (i32, i32) {
    %c0_i32 = arith.constant 0 : i32
    %c0_i32_0 = arith.constant 0 : i32
    return %c0_i32, %arg1 : i32, i32
  }
  func.func @transform_3(%arg0: i32, %arg1: i32, %arg2: i32) -> (i32, i32) {
    %c0_i32 = arith.constant 0 : i32
    return %arg0, %arg1 : i32, i32
  }
}

</mosaic_0001>

<bundles_post_ra>
// kernel: generator_forward.9
= control target key start
LH: loop header
LB: loop body
LE: loop exit
PB: predicated region body
PF: predicated region fallthrough
CT: control target
= control target key end

     0   :  { %s831_s12 = smov 0   ;;  %s833_s13 = smov 0   ;;  %s904_s0 = inlined_call_operand.vmem [shape: bf16[128,128], index: 0, kind: input, shape index: {}]   ;;  %s905_s1 = inlined_call_operand.vmem [shape: bf16[128,128], index: 1, kind: input, shape index: {}]   ;;  %s906_s2 = inlined_call_operand.vmem [shape: f32[1,128], index: 2, kind: input, shape index: {}]   ;;  %s907_s3 = inlined_call_operand.vmem [shape: bf16[128,128], index: 3, kind: output, shape index: {}]  }
   0x1   :  { %s835_s14 = smov 0  }
   0x2 LB: > { %s32_s15 = sadd.s32 1, %s805_s13  ;;  %p640_p0 = scmp.ge.s32.totalorder %s809_s14, 1  ;;  %s809_s14 = sphi %s835_s14, %s13_s14   ;;  %s805_s13 = sphi %s833_s13, %s909_s13   ;;  %s801_s12 = sphi %s831_s12, %s908_s12  }
   0x3   : > { %p34_p1 = scmp.ge.s32.totalorder %s32_s15, 2  ;;  %p188_p2 = scmp.lt.s32.totalorder %s809_s14, 3 }
   0x5   : > { %s911_s15 = smov (%p34_p1, %s32_s15), 0  ;;  %p189_p3 = pnand %p640_p0, %p188_p2 }
   0x6   : > { %s641_s18 = sshll.u32 (!%p189_p3), %s801_s12, 3 }
   0x7   : > { %192 = sbr.rel (%p189_p3) target bundleno = 251 (0xfb), region = 32  ;;  %p230_p4 = scmp.lt.s32.totalorder (!%p189_p3), %s641_s18, 15 }
   0xc   : > { %v775_v0 = vld [vmem:[%s905_s1 + $0x38] sm:$0xff]   ;;  %v776_v1 = vld [vmem:[%s905_s1 + $0x30] sm:$0xff]   ;;  %s913_s18 = smov (!%p230_p4, %s641_s18), 15  ;;  %v777_v2 = vld [vmem:[%s905_s1 + $0x28] sm:$0xff]  }
   0xd   : > { %711 = vmatprep.subr.bf16.mxu0 %v775_v0  ;;  %735 = vmatprep.subr.bf16.mxu1 %v775_v0  ;;  %s642_s23 = sshll.u32 %s913_s18, 2  ;;  %v778_v3 = vld [vmem:[%s905_s1 + $0x20] sm:$0xff]   ;;  %v779_v6 = vld [vmem:[%s905_s1 + $0x18] sm:$0xff]   ;;  %v780_v7 = vld [vmem:[%s905_s1 + $0x10] sm:$0xff]  }
   0xe   : > { %712 = vmatpush3.bf16.msra.mxu0 %v775_v0  ;;  %743 = vmatpush3.bf16.msra.mxu1 %v775_v0  ;;  %s866_s26 = scalar_lea.vmem %s904_s0, %s642_s23  ;;  %v781_v8 = vld [vmem:[%s905_s1 + $0x8] sm:$0xff]   ;;  %v782_v9 = vld [vmem:[%s905_s1] sm:$0xff]   ;;  %s257_s17 = scalar_lea.vmem %s907_s3, %s642_s23 }
   0xf   : > { %713 = vmatprep.subr.bf16.mxu0 %v776_v1  ;;  %736 = vmatprep.subr.bf16.mxu1 %v776_v1  ;;  %v783_v4 = vld [vmem:[%s866_s26] sm:$0xff]   ;;  %v784_v5 = vld [vmem:[%s866_s26 + $0x10] sm:$0xff]   ;;  %v785_v10 = vld [vmem:[%s866_s26 + $0x8] sm:$0xff]  }
  0x10   : > { %727 = vmatprep.mubr.bf16.mxu0 %v783_v4  ;;  %731 = vmatprep.mubr.bf16.mxu1 %v784_v5  ;;  %v786_v11 = vld [vmem:[%s866_s26 + $0x18] sm:$0xff]   ;;  %v645_v12 = vld [vmem:[%s906_s2] ss:$0 sm:$0xff] }
  0x12   : > { %714 = vmatpush3.bf16.msra.mxu0 %v776_v1  ;;  %744 = vmatpush3.bf16.msra.mxu1 %v776_v1 }
  0x13   : > { %715 = vmatprep.subr.bf16.mxu0 %v777_v2  ;;  %737 = vmatprep.subr.bf16.mxu1 %v777_v2 }
  0x16   : > { %716 = vmatpush3.bf16.msra.mxu0 %v777_v2  ;;  %745 = vmatpush3.bf16.msra.mxu1 %v777_v2 }
  0x17   : > { %717 = vmatprep.subr.bf16.mxu0 %v778_v3  ;;  %738 = vmatprep.subr.bf16.mxu1 %v778_v3 }
  0x1a   : > { %718 = vmatpush3.bf16.msra.mxu0 %v778_v3  ;;  %746 = vmatpush3.bf16.msra.mxu1 %v778_v3 }
  0x1b   : > { %719 = vmatprep.subr.bf16.mxu0 %v779_v6  ;;  %739 = vmatprep.subr.bf16.mxu1 %v779_v6 }
  0x1e   : > { %720 = vmatpush3.bf16.msra.mxu0 %v779_v6  ;;  %747 = vmatpush3.bf16.msra.mxu1 %v779_v6 }
  0x1f   : > { %721 = vmatprep.subr.bf16.mxu0 %v780_v7  ;;  %740 = vmatprep.subr.bf16.mxu1 %v780_v7 }
  0x22   : > { %722 = vmatpush3.bf16.msra.mxu0 %v780_v7  ;;  %748 = vmatpush3.bf16.msra.mxu1 %v780_v7 }
  0x23   : > { %723 = vmatprep.subr.bf16.mxu0 %v781_v8  ;;  %741 = vmatprep.subr.bf16.mxu1 %v781_v8 }
  0x26   : > { %724 = vmatpush3.bf16.msra.mxu0 %v781_v8  ;;  %749 = vmatpush3.bf16.msra.mxu1 %v781_v8 }
  0x27   : > { %725 = vmatprep.subr.bf16.mxu0 %v782_v9  ;;  %742 = vmatprep.subr.bf16.mxu1 %v782_v9 }
  0x2a   : > { %726 = vmatpush3.bf16.msra.mxu0 %v782_v9  ;;  %750 = vmatpush3.bf16.msra.mxu1 %v782_v9 }
  0x2d   : > { %728 = vmatmul.mubr.bf16.vlgmr.msra.gmra.mxu0 %v785_v10  ;;  %732 = vmatmul.mubr.bf16.vlgmr.msra.gmra.mxu1 %v786_v11 }
  0xed   : > { %v729_v13 = vpop.f32.mrf.mxu0  ;;  %v733_v14 = vpop.f32.mrf.mxu1 }
  0xee   : > { %v450_v15 = vadd.f32 %v729_v13, %v645_v12  ;;  %v454_v16 = vadd.f32 %v733_v14, %v645_v12 }
  0xef   : > { %v417_v17 = vpop.f32.mrf.mxu0  ;;  %v433_v18 = vpop.f32.mrf.mxu1 }
  0xf0   : > { %v448_v19 = vadd.f32 %v645_v12, %v417_v17  ;;  %v452_v20 = vadd.f32 %v645_v12, %v433_v18  ;;  %v477_v25 = vmax.f32 %v450_v15, 0.0  ;;  %v481_v26 = vmax.f32 %v454_v16, 0.0 }
  0xf1   : > { %v730_v21 = vpop.f32.mrf.mxu0  ;;  %v734_v22 = vpop.f32.mrf.mxu1 }
  0xf2   : > { %v451_v23 = vadd.f32 %v730_v21, %v645_v12  ;;  %v455_v24 = vadd.f32 %v734_v22, %v645_v12  ;;  %v475_v33 = vmax.f32 %v448_v19, 0.0  ;;  %v479_v34 = vmax.f32 %v452_v20, 0.0 }
  0xf3   : > { %v420_v27 = vpop.f32.mrf.mxu0  ;;  %v436_v28 = vpop.f32.mrf.mxu1 }
  0xf4   : > { %v478_v29 = vmax.f32 %v451_v23, 0.0  ;;  %v482_v30 = vmax.f32 %v455_v24, 0.0  ;;  %v449_v31 = vadd.f32 %v645_v12, %v420_v27  ;;  %v453_v32 = vadd.f32 %v645_v12, %v436_v28 }
  0xf6   : > { %v684_v35 = vpack.c.bf16 %v478_v29, %v477_v25  ;;  %v694_v36 = vpack.c.bf16 %v482_v30, %v481_v26  ;;  %v476_v37 = vmax.f32 %v449_v31, 0.0  ;;  %v480_v38 = vmax.f32 %v453_v32, 0.0 }
  0xf8   : > { %696 = vst [vmem:[%s257_s17 + $0x8] sm:$0xff] %v684_v35   ;;  %698 = vst [vmem:[%s257_s17 + $0x18] sm:$0xff] %v694_v36   ;;  %v679_v39 = vpack.c.bf16 %v476_v37, %v475_v33  ;;  %v689_v40 = vpack.c.bf16 %v480_v38, %v479_v34 }
  0xfa   : > { %680 = vst [vmem:[%s257_s17] sm:$0xff] %v679_v39   ;;  %697 = vst [vmem:[%s257_s17 + $0x10] sm:$0xff] %v689_v40  }
  0xfb PF: > { %s13_s14 = sadd.s32 1, %s809_s14   ;;  %s908_s12 = smov %s805_s13 }
  0xfc   : > { %p10_p5 = scmp.ge.s32.totalorder %s13_s14, 4   ;;  %s909_s13 = smov %s911_s15 }
  0xfe   :  { %12 = sbr.rel (!%p10_p5) target bundleno = 2 (0x2), region = 76 }

// kernel: generator_forward.10
= control target key start
LH: loop header
LB: loop body
LE: loop exit
PB: predicated region body
PF: predicated region fallthrough
CT: control target
= control target key end

     0   :  { %s1434_s12 = smov 0   ;;  %s1436_s13 = smov 0   ;;  %s1694_s0 = inlined_call_operand.vmem [shape: bf16[32,384], index: 0, kind: input, shape index: {}]   ;;  %s1695_s1 = inlined_call_operand.vmem [shape: bf16[384,512], index: 1, kind: input, shape index: {}]   ;;  %s1696_s2 = inlined_call_operand.vmem [shape: f32[1,512], index: 2, kind: input, shape index: {}]   ;;  %s1697_s3 = inlined_call_operand.vmem [shape: bf16[32,512], index: 3, kind: output, shape index: {}]  }
   0x1   :  { %s1438_s14 = smov 0   ;;  %s1440_s15 = smov 0  }
   0x2   :  { %s1442_s16 = smov 0  }
   0x3 LB: > { %s28_s17 = sadd.s32 1, %s1407_s15  ;;  %s1171_s18 = sadd.s32 4294967295, %s1411_s16   ;;  %s1411_s16 = sphi %s1442_s16, %s13_s16   ;;  %s1407_s15 = sphi %s1440_s15, %s1702_s15   ;;  %s1403_s14 = sphi %s1438_s14, %s1701_s14   ;;  %s1399_s13 = sphi %s1436_s13, %s1700_s13   ;;  %s1395_s12 = sphi %s1434_s12, %s1699_s12  }
   0x4   : > { %p30_p0 = scmp.ge.s32.totalorder %s28_s17, 2  ;;  %p76_p1 = scmp.ne.s32.totalorder %s1399_s13, %s1395_s12 }
   0x5   : > { %p77_p2 = scmp.eq.s32.totalorder %s1411_s16, 0  ;;  %p134_p4 = scmp.eq.s32.totalorder %s1171_s18, 1 }
   0x6   : > { %s1704_s17 = smov (%p30_p0, %s28_s17), 0  ;;  %s69_s20 = sadd.s32 1, %s1399_s13 }
   0x7   : > { %p78_p3 = por %p77_p2, %p76_p1  ;;  %s65_s19 = ssub.s32 %s1407_s15, %s1704_s17 }
   0x8   : > { %p67_p5 = scmp.eq.s32.totalorder %s65_s19, 0  ;;  %p1469_p6 = por %p134_p4, %p76_p1 }
   0x9   : > { %p1175_p7 = scmp.ge.s32.totalorder %s1411_s16, 2 }
   0xa   : > { %s1474_s22 = scalar_select %p67_p5, %s1399_s13, %s69_s20  }
   0xb   : > { %171 = sbr.rel (%p1175_p7) target bundleno = 44 (0x2c), region = 20 }
  0x10   : > { %174 = sbr.rel (!%p78_p3) target bundleno = 44 (0x2c), region = 24  ;;  %s176_s23 = sand.u32 (%p78_p3), 1, %s1399_s13  }
  0x11   : > { %s1244_s24 = sshll.u32 (%p78_p3), %s1407_s15, 3  ;;  %s1250_s25 = smul.u32 (%p78_p3), 384, %s176_s23 }
  0x12   : > { %s1482_s28 = scalar_lea.vmem (%p78_p3), %s1695_s1, %s1244_s24 }
  0x13   : > { %v307_v0 = vld [vmem:[%s1482_s28] sm:$0xff] (%p78_p3)  ;;  %v309_v1 = vld [vmem:[%s1482_s28 + $0x10] sm:$0xff] (%p78_p3)  ;;  %s1490_s29 = scalar_lea.vmem (%p78_p3), [#allocation3], %s1250_s25 }
  0x14   : > { %v311_v2 = vld [vmem:[%s1482_s28 + $0x20] sm:$0xff] (%p78_p3)  ;;  %v313_v3 = vld [vmem:[%s1482_s28 + $0x30] sm:$0xff] (%p78_p3)  ;;  %308 = vst [vmem:[%s1490_s29] sm:$0xff] (%p78_p3), %v307_v0  ;;  %310 = vst [vmem:[%s1490_s29 + $0x8] sm:$0xff] (%p78_p3), %v309_v1 }
  0x15   : > { %v315_v4 = vld [vmem:[%s1482_s28 + $0x40] sm:$0xff]  ;;  %v317_v5 = vld [vmem:[%s1482_s28 + $0x50] sm:$0xff]  ;;  %312 = vst [vmem:[%s1490_s29 + $0x10] sm:$0xff] %v311_v2  ;;  %314 = vst [vmem:[%s1490_s29 + $0x18] sm:$0xff] %v313_v3 }
  0x16   : > { %316 = vst [vmem:[%s1490_s29 + $0x20] sm:$0xff] %v315_v4  ;;  %318 = vst [vmem:[%s1490_s29 + $0x28] sm:$0xff] %v317_v5  ;;  %v319_v6 = vld [vmem:[%s1482_s28 + $0x60] sm:$0xff]  ;;  %v321_v7 = vld [vmem:[%s1482_s28 + $0x70] sm:$0xff] }
  0x17   : > { %v323_v8 = vld [vmem:[%s1482_s28 + $0x80] sm:$0xff]  ;;  %320 = vst [vmem:[%s1490_s29 + $0x30] sm:$0xff] %v319_v6  ;;  %322 = vst [vmem:[%s1490_s29 + $0x38] sm:$0xff] %v321_v7  ;;  %v325_v9 = vld [vmem:[%s1482_s28 + $0x90] sm:$0xff] }
  0x18   : > { %324 = vst [vmem:[%s1490_s29 + $0x40] sm:$0xff] %v323_v8  ;;  %v327_v10 = vld [vmem:[%s1482_s28 + $0xa0] sm:$0xff]  ;;  %v329_v11 = vld [vmem:[%s1482_s28 + $0xb0] sm:$0xff]  ;;  %326 = vst [vmem:[%s1490_s29 + $0x48] sm:$0xff] %v325_v9 }
  0x19   : > { %328 = vst [vmem:[%s1490_s29 + $0x50] sm:$0xff] %v327_v10  ;;  %330 = vst [vmem:[%s1490_s29 + $0x58] sm:$0xff] %v329_v11  ;;  %v331_v12 = vld [vmem:[%s1482_s28 + $0xc0] sm:$0xff]  ;;  %v333_v13 = vld [vmem:[%s1482_s28 + $0xd0] sm:$0xff] }
  0x1a   : > { %v335_v14 = vld [vmem:[%s1482_s28 + $0xe0] sm:$0xff]  ;;  %332 = vst [vmem:[%s1490_s29 + $0x60] sm:$0xff] %v331_v12  ;;  %334 = vst [vmem:[%s1490_s29 + $0x68] sm:$0xff] %v333_v13  ;;  %v337_v15 = vld [vmem:[%s1482_s28 + $0xf0] sm:$0xff] }
  0x1b   : > { %336 = vst [vmem:[%s1490_s29 + $0x70] sm:$0xff] %v335_v14  ;;  %v339_v16 = vld [vmem:[%s1482_s28 + $0x100] sm:$0xff]  ;;  %v341_v17 = vld [vmem:[%s1482_s28 + $0x110] sm:$0xff]  ;;  %338 = vst [vmem:[%s1490_s29 + $0x78] sm:$0xff] %v337_v15 }
  0x1c   : > { %340 = vst [vmem:[%s1490_s29 + $0x80] sm:$0xff] %v339_v16  ;;  %342 = vst [vmem:[%s1490_s29 + $0x88] sm:$0xff] %v341_v17  ;;  %v343_v18 = vld [vmem:[%s1482_s28 + $0x120] sm:$0xff]  ;;  %v345_v19 = vld [vmem:[%s1482_s28 + $0x130] sm:$0xff] }
  0x1d   : > { %v347_v20 = vld [vmem:[%s1482_s28 + $0x140] sm:$0xff]  ;;  %344 = vst [vmem:[%s1490_s29 + $0x90] sm:$0xff] %v343_v18  ;;  %346 = vst [vmem:[%s1490_s29 + $0x98] sm:$0xff] %v345_v19  ;;  %v349_v21 = vld [vmem:[%s1482_s28 + $0x150] sm:$0xff] }
  0x1e   : > { %348 = vst [vmem:[%s1490_s29 + $0xa0] sm:$0xff] %v347_v20  ;;  %v351_v22 = vld [vmem:[%s1482_s28 + $0x160] sm:$0xff]  ;;  %v353_v23 = vld [vmem:[%s1482_s28 + $0x170] sm:$0xff]  ;;  %350 = vst [vmem:[%s1490_s29 + $0xa8] sm:$0xff] %v349_v21 }
  0x1f   : > { %352 = vst [vmem:[%s1490_s29 + $0xb0] sm:$0xff] %v351_v22  ;;  %354 = vst [vmem:[%s1490_s29 + $0xb8] sm:$0xff] %v353_v23  ;;  %v355_v24 = vld [vmem:[%s1482_s28 + $0x180] sm:$0xff]  ;;  %v357_v25 = vld [vmem:[%s1482_s28 + $0x190] sm:$0xff] }
  0x20   : > { %v359_v26 = vld [vmem:[%s1482_s28 + $0x1a0] sm:$0xff]  ;;  %356 = vst [vmem:[%s1490_s29 + $0xc0] sm:$0xff] %v355_v24  ;;  %358 = vst [vmem:[%s1490_s29 + $0xc8] sm:$0xff] %v357_v25  ;;  %v361_v27 = vld [vmem:[%s1482_s28 + $0x1b0] sm:$0xff] }
  0x21   : > { %360 = vst [vmem:[%s1490_s29 + $0xd0] sm:$0xff] %v359_v26  ;;  %v363_v28 = vld [vmem:[%s1482_s28 + $0x1c0] sm:$0xff]  ;;  %v365_v29 = vld [vmem:[%s1482_s28 + $0x1d0] sm:$0xff]  ;;  %362 = vst [vmem:[%s1490_s29 + $0xd8] sm:$0xff] %v361_v27 }
  0x22   : > { %364 = vst [vmem:[%s1490_s29 + $0xe0] sm:$0xff] %v363_v28  ;;  %366 = vst [vmem:[%s1490_s29 + $0xe8] sm:$0xff] %v365_v29  ;;  %v367_v30 = vld [vmem:[%s1482_s28 + $0x1e0] sm:$0xff]  ;;  %v369_v31 = vld [vmem:[%s1482_s28 + $0x1f0] sm:$0xff] }
  0x23   : > { %v371_v32 = vld [vmem:[%s1482_s28 + $0x200] sm:$0xff]  ;;  %368 = vst [vmem:[%s1490_s29 + $0xf0] sm:$0xff] %v367_v30  ;;  %370 = vst [vmem:[%s1490_s29 + $0xf8] sm:$0xff] %v369_v31  ;;  %v373_v33 = vld [vmem:[%s1482_s28 + $0x210] sm:$0xff] }
  0x24   : > { %372 = vst [vmem:[%s1490_s29 + $0x100] sm:$0xff] %v371_v32  ;;  %v375_v34 = vld [vmem:[%s1482_s28 + $0x220] sm:$0xff]  ;;  %v377_v35 = vld [vmem:[%s1482_s28 + $0x230] sm:$0xff]  ;;  %374 = vst [vmem:[%s1490_s29 + $0x108] sm:$0xff] %v373_v33 }
  0x25   : > { %376 = vst [vmem:[%s1490_s29 + $0x110] sm:$0xff] %v375_v34  ;;  %378 = vst [vmem:[%s1490_s29 + $0x118] sm:$0xff] %v377_v35  ;;  %v379_v36 = vld [vmem:[%s1482_s28 + $0x240] sm:$0xff]  ;;  %v381_v37 = vld [vmem:[%s1482_s28 + $0x250] sm:$0xff] }
  0x26   : > { %v383_v38 = vld [vmem:[%s1482_s28 + $0x260] sm:$0xff]  ;;  %380 = vst [vmem:[%s1490_s29 + $0x120] sm:$0xff] %v379_v36  ;;  %382 = vst [vmem:[%s1490_s29 + $0x128] sm:$0xff] %v381_v37  ;;  %v385_v39 = vld [vmem:[%s1482_s28 + $0x270] sm:$0xff] }
  0x27   : > { %384 = vst [vmem:[%s1490_s29 + $0x130] sm:$0xff] %v383_v38  ;;  %v387_v40 = vld [vmem:[%s1482_s28 + $0x280] sm:$0xff]  ;;  %v389_v41 = vld [vmem:[%s1482_s28 + $0x290] sm:$0xff]  ;;  %386 = vst [vmem:[%s1490_s29 + $0x138] sm:$0xff] %v385_v39 }
  0x28   : > { %388 = vst [vmem:[%s1490_s29 + $0x140] sm:$0xff] %v387_v40  ;;  %390 = vst [vmem:[%s1490_s29 + $0x148] sm:$0xff] %v389_v41  ;;  %v391_v42 = vld [vmem:[%s1482_s28 + $0x2a0] sm:$0xff]  ;;  %v393_v43 = vld [vmem:[%s1482_s28 + $0x2b0] sm:$0xff] }
  0x29   : > { %v395_v44 = vld [vmem:[%s1482_s28 + $0x2c0] sm:$0xff]  ;;  %392 = vst [vmem:[%s1490_s29 + $0x150] sm:$0xff] %v391_v42  ;;  %394 = vst [vmem:[%s1490_s29 + $0x158] sm:$0xff] %v393_v43  ;;  %v397_v45 = vld [vmem:[%s1482_s28 + $0x2d0] sm:$0xff] }
  0x2a   : > { %396 = vst [vmem:[%s1490_s29 + $0x160] sm:$0xff] %v395_v44  ;;  %v399_v46 = vld [vmem:[%s1482_s28 + $0x2e0] sm:$0xff]  ;;  %v401_v47 = vld [vmem:[%s1482_s28 + $0x2f0] sm:$0xff]  ;;  %398 = vst [vmem:[%s1490_s29 + $0x168] sm:$0xff] %v397_v45 }
  0x2b   : > { %400 = vst [vmem:[%s1490_s29 + $0x170] sm:$0xff] %v399_v46  ;;  %402 = vst [vmem:[%s1490_s29 + $0x178] sm:$0xff] %v401_v47 }
  0x2c PF: > { %p1178_p8 = scmp.ge.s32.totalorder %s1411_s16, 1  ;;  %p415_p9 = scmp.lt.s32.totalorder %s1411_s16, 3 }
  0x2e   : > { %p416_p10 = pnand %p1178_p8, %p415_p9 }
  0x2f   : > { %s422_s30 = sand.u32 (!%p416_p10), 1, %s1395_s12   ;;  %s1180_s26 = sshll.u32 (!%p416_p10), %s1403_s14, 1 }
  0x30   : > { %419 = sbr.rel (%p416_p10) target bundleno = 343 (0x157), region = 66  ;;  %p473_p11 = scmp.lt.s32.totalorder (!%p416_p10), %s1180_s26, 3 }
  0x31   : > { %s1251_s4 = smul.u32 (!%p416_p10), 384, %s422_s30 }
  0x33   : > { %s1591_s7 = scalar_lea.vmem (!%p416_p10), [#allocation3], %s1251_s4  ;;  %s1179_s4 = sshll.u32 (!%p416_p10), %s422_s30, 5 }
  0x34   : > { %s1663_s5 = scalar_lea.vmem (!%p416_p10), [#allocation4], %s1179_s4 }
  0x35   : > { %v1413_v48 = vmov 0   ;;  %v1368_v49 = vld [vmem:[%s1694_s0 + $0x4] ss:$12 sps:$4 sm:$0xff]   ;;  %v1293_v50 = vld [vmem:[%s1591_s7 + $0x74] ss:$8 sps:$4 sm:$0xff]   ;;  %v486_v40 = vlaneseq  ;;  %s1706_s26 = smov (!%p473_p11, %s1180_s26), 3 }
  0x36   : > { %925 = vmatprep.mubr.bf16.mxu1 %v1413_v48  ;;  %872 = vmatprep.mubr.bf16.mxu0 %v1368_v49  ;;  %v1295_v51 = vld [vmem:[%s1591_s7 + $0x70] ss:$8 sps:$4 sm:$0xff]   ;;  %v1296_v52 = vld [vmem:[%s1591_s7 + $0x64] ss:$8 sps:$4 sm:$0xff]   ;;  %v1298_v53 = vld [vmem:[%s1591_s7 + $0x60] ss:$8 sps:$4 sm:$0xff]   ;;  %s475_s29 = scalar_lea.vmem %s1696_s2, %s1706_s26 }
  0x37   : > { %840 = vmatprep.subr.bf16.mxu0 %v1293_v50  ;;  %v1299_v54 = vld [vmem:[%s1591_s7 + $0x54] ss:$8 sps:$4 sm:$0xff]   ;;  %v1301_v55 = vld [vmem:[%s1591_s7 + $0x50] ss:$8 sps:$4 sm:$0xff]   ;;  %v1302_v56 = vld [vmem:[%s1591_s7 + $0x44] ss:$8 sps:$4 sm:$0xff]  }
  0x38   : > { %841 = vmatpush1.bf16.msra.mxu0 %v1295_v51  ;;  %v1314_v57 = vld [vmem:[%s1591_s7 + $0x174] ss:$8 sps:$4 sm:$0xff]   ;;  %v1316_v58 = vld [vmem:[%s1591_s7 + $0x170] ss:$8 sps:$4 sm:$0xff]   ;;  %v1304_v59 = vld [vmem:[%s1591_s7 + $0x40] ss:$8 sps:$4 sm:$0xff]  }
  0x39   : > { %842 = vmatprep.subr.bf16.mxu0 %v1296_v52  ;;  %v1305_v60 = vld [vmem:[%s1591_s7 + $0x34] ss:$8 sps:$4 sm:$0xff]   ;;  %893 = vmatprep.subr.bf16.mxu1 %v1314_v57  ;;  %v1320_v61 = vld [vmem:[%s1591_s7 + $0x164] ss:$8 sps:$4 sm:$0xff]   ;;  %v1322_v62 = vld [vmem:[%s1591_s7 + $0x160] ss:$8 sps:$4 sm:$0xff]  }
  0x3a   : > { %894 = vmatpush1.bf16.msra.mxu1 %v1316_v58  ;;  %v1307_v63 = vld [vmem:[%s1591_s7 + $0x30] ss:$8 sps:$4 sm:$0xff]   ;;  %v1326_v0 = vld [vmem:[%s1591_s7 + $0x154] ss:$8 sps:$4 sm:$0xff]   ;;  %v1308_v1 = vld [vmem:[%s1591_s7 + $0x24] ss:$8 sps:$4 sm:$0xff]  }
  0x3b   : > { %895 = vmatprep.subr.bf16.mxu1 %v1320_v61  ;;  %v1328_v2 = vld [vmem:[%s1591_s7 + $0x150] ss:$8 sps:$4 sm:$0xff]   ;;  %v1332_v3 = vld [vmem:[%s1591_s7 + $0x144] ss:$8 sps:$4 sm:$0xff]   ;;  %v1310_v4 = vld [vmem:[%s1591_s7 + $0x20] ss:$8 sps:$4 sm:$0xff]  }
  0x3c   : > { %843 = vmatpush1.bf16.msra.mxu0 %v1298_v53  ;;  %v1311_v5 = vld [vmem:[%s1591_s7 + $0x14] ss:$8 sps:$4 sm:$0xff]   ;;  %v1334_v6 = vld [vmem:[%s1591_s7 + $0x140] ss:$8 sps:$4 sm:$0xff]   ;;  %v1313_v8 = vld [vmem:[%s1591_s7 + $0x10] ss:$8 sps:$4 sm:$0xff]  }
  0x3d   : > { %844 = vmatprep.subr.bf16.mxu0 %v1299_v54  ;;  %v1338_v7 = vld [vmem:[%s1591_s7 + $0x134] ss:$8 sps:$4 sm:$0xff]   ;;  %v1317_v9 = vld [vmem:[%s1591_s7 + $0x4] ss:$8 sps:$4 sm:$0xff]   ;;  %v1340_v10 = vld [vmem:[%s1591_s7 + $0x130] ss:$8 sps:$4 sm:$0xff]  }
  0x3e   : > { %896 = vmatpush1.bf16.msra.mxu1 %v1322_v62  ;;  %v1344_v11 = vld [vmem:[%s1591_s7 + $0x124] ss:$8 sps:$4 sm:$0xff]   ;;  %v1319_v12 = vld [vmem:[%s1591_s7] ss:$8 sps:$4 sm:$0xff]   ;;  %v1323_v13 = vld [vmem:[%s1591_s7 + $0xf4] ss:$8 sps:$4 sm:$0xff]  }
  0x3f   : > { %897 = vmatprep.subr.bf16.mxu1 %v1326_v0  ;;  %v1346_v14 = vld [vmem:[%s1591_s7 + $0x120] ss:$8 sps:$4 sm:$0xff]   ;;  %v1350_v15 = vld [vmem:[%s1591_s7 + $0x114] ss:$8 sps:$4 sm:$0xff]   ;;  %v1325_v16 = vld [vmem:[%s1591_s7 + $0xf0] ss:$8 sps:$4 sm:$0xff]  }
  0x40   : > { %845 = vmatpush1.bf16.msra.mxu0 %v1301_v55  ;;  %v1329_v17 = vld [vmem:[%s1591_s7 + $0xe4] ss:$8 sps:$4 sm:$0xff]   ;;  %v1352_v18 = vld [vmem:[%s1591_s7 + $0x110] ss:$8 sps:$4 sm:$0xff]   ;;  %v1331_v20 = vld [vmem:[%s1591_s7 + $0xe0] ss:$8 sps:$4 sm:$0xff]  }
  0x41   : > { %846 = vmatprep.subr.bf16.mxu0 %v1302_v56  ;;  %v1356_v19 = vld [vmem:[%s1591_s7 + $0x104] ss:$8 sps:$4 sm:$0xff]   ;;  %v1335_v21 = vld [vmem:[%s1591_s7 + $0xd4] ss:$8 sps:$4 sm:$0xff]   ;;  %v1358_v22 = vld [vmem:[%s1591_s7 + $0x100] ss:$8 sps:$4 sm:$0xff]  }
  0x42   : > { %898 = vmatpush1.bf16.msra.mxu1 %v1328_v2  ;;  %v1337_v23 = vld [vmem:[%s1591_s7 + $0xd0] ss:$8 sps:$4 sm:$0xff]   ;;  %v1341_v24 = vld [vmem:[%s1591_s7 + $0xc4] ss:$8 sps:$4 sm:$0xff]   ;;  %v1362_v25 = vld [vmem:[%s1694_s0 + $0x8] ss:$12 sps:$4 sm:$0xff]  }
  0x43   : > { %899 = vmatprep.subr.bf16.mxu1 %v1332_v3  ;;  %v1343_v26 = vld [vmem:[%s1591_s7 + $0xc0] ss:$8 sps:$4 sm:$0xff]   ;;  %v1347_v27 = vld [vmem:[%s1591_s7 + $0xb4] ss:$8 sps:$4 sm:$0xff]   ;;  %v1349_v28 = vld [vmem:[%s1591_s7 + $0xb0] ss:$8 sps:$4 sm:$0xff]  }
  0x44   : > { %847 = vmatpush1.bf16.msra.mxu0 %v1304_v59  ;;  %v1353_v29 = vld [vmem:[%s1591_s7 + $0xa4] ss:$8 sps:$4 sm:$0xff]   ;;  %v1355_v31 = vld [vmem:[%s1591_s7 + $0xa0] ss:$8 sps:$4 sm:$0xff]   ;;  %v1359_v32 = vld [vmem:[%s1591_s7 + $0x94] ss:$8 sps:$4 sm:$0xff]  }
  0x45   : > { %848 = vmatprep.subr.bf16.mxu0 %v1305_v60  ;;  %v1369_v30 = vld [vmem:[%s1694_s0 + $0x20] ss:$12 sps:$4 sm:$0xff]   ;;  %v1361_v33 = vld [vmem:[%s1591_s7 + $0x90] ss:$8 sps:$4 sm:$0xff]   ;;  %v1370_v37 = vld [vmem:[%s1694_s0 + $0x1c] ss:$12 sps:$4 sm:$0xff]  }
  0x46   : > { %900 = vmatpush1.bf16.msra.mxu1 %v1334_v6  ;;  %v1363_v34 = vld [vmem:[%s1591_s7 + $0x84] ss:$8 sps:$4 sm:$0xff]   ;;  %v1365_v35 = vld [vmem:[%s1591_s7 + $0x80] ss:$8 sps:$4 sm:$0xff]   ;;  %v487_v42 = vshrl.u32 %v486_v40, 7  ;;  %s1249_s12 = sshll.u32 (%p1469_p6), %s1403_s14, 3 }
  0x47   : > { %901 = vmatprep.subr.bf16.mxu1 %v1338_v7  ;;  %v1366_v36 = vld [vmem:[%s1694_s0] ss:$12 sps:$4 sm:$0xff]   ;;  %v1372_v38 = vld [vmem:[%s1694_s0 + $0x18] ss:$12 sps:$4 sm:$0xff]   ;;  %s1021_s7 = scalar_lea.vmem (%p1469_p6), %s1697_s3, %s1249_s12 }
  0x48   : > { %849 = vmatpush1.bf16.msra.mxu0 %v1307_v63  ;;  %v488_v44 = vsub.s32 0, %v487_v42  ;;  %v484_v45 = vld [vmem:[%s475_s29] sm:$0x3]  ;;  %v492_v46 = vsub.s32 1, %v487_v42 }
  0x49   : > { %850 = vmatprep.subr.bf16.mxu0 %v1308_v1 }
  0x4a   : > { %902 = vmatpush1.bf16.msra.mxu1 %v1340_v10  ;;  %v493_v51 = vrot.slane %v484_v45, %v492_v46 }
  0x4b   : > { %903 = vmatprep.subr.bf16.mxu1 %v1344_v11 }
  0x4c   : > { %851 = vmatpush1.bf16.msra.mxu0 %v1310_v4 }
  0x4d   : > { %852 = vmatprep.subr.bf16.mxu0 %v1311_v5 }
  0x4e   : > { %904 = vmatpush1.bf16.msra.mxu1 %v1346_v14 }
  0x4f   : > { %905 = vmatprep.subr.bf16.mxu1 %v1350_v15 }
  0x50   : > { %853 = vmatpush1.bf16.msra.mxu0 %v1313_v8 }
  0x51   : > { %854 = vmatprep.subr.bf16.mxu0 %v1317_v9 }
  0x52   : > { %906 = vmatpush1.bf16.msra.mxu1 %v1352_v18 }
  0x53   : > { %907 = vmatprep.subr.bf16.mxu1 %v1356_v19 }
  0x54   : > { %855 = vmatpush1.bf16.msra.mxu0 %v1319_v12 }
  0x55   : > { %856 = vmatprep.subr.bf16.mxu0 %v1323_v13 }
  0x56   : > { %908 = vmatpush1.bf16.msra.mxu1 %v1358_v22 }
  0x58   : > { %857 = vmatpush2.bf16.msra.mxu0 %v1325_v16 }
  0x59   : > { %858 = vmatprep.subr.bf16.mxu0 %v1329_v17  ;;  %926 = vmatmul.mubr.bf16.vlgmr.msra.gmra.mxu1 %v1362_v25 }
  0x5a   : > { %935 = vmatprep.mubr.bf16.mxu1 %v1413_v48  ;;  %v489_v48 = vrot.slane %v484_v45, %v488_v44 }
  0x5c   : > { %859 = vmatpush2.bf16.msra.mxu0 %v1331_v20 }
  0x5d   : > { %860 = vmatprep.subr.bf16.mxu0 %v1335_v21 }
  0x60   : > { %861 = vmatpush2.bf16.msra.mxu0 %v1337_v23 }
  0x61   : > { %862 = vmatprep.subr.bf16.mxu0 %v1341_v24  ;;  %936 = vmatmul.mubr.bf16.gmra.mxu1 %v1369_v30 }
  0x64   : > { %863 = vmatpush2.bf16.msra.mxu0 %v1343_v26 }
  0x65   : > { %864 = vmatprep.subr.bf16.mxu0 %v1347_v27 }
  0x68   : > { %865 = vmatpush2.bf16.msra.mxu0 %v1349_v28 }
  0x69   : > { %866 = vmatprep.subr.bf16.mxu0 %v1353_v29 }
  0x6c   : > { %867 = vmatpush2.bf16.msra.mxu0 %v1355_v31 }
  0x6d   : > { %868 = vmatprep.subr.bf16.mxu0 %v1359_v32 }
  0x70   : > { %869 = vmatpush2.bf16.msra.mxu0 %v1361_v33 }
  0x71   : > { %870 = vmatprep.subr.bf16.mxu0 %v1363_v34 }
  0x74   : > { %871 = vmatpush2.bf16.msra.mxu0 %v1365_v35 }
  0x77   : > { %873 = vmatmul.mubr.bf16.vlgmr.msra.gmra.mxu0 %v1366_v36 }
  0x78   : > { %882 = vmatprep.mubr.bf16.mxu0 %v1370_v37 }
  0x7f   : > { %883 = vmatmul.mubr.bf16.gmra.mxu0 %v1372_v38 }
 0x119   : > { %v927_v39 = vpop.f32.mrf.mxu1 }
 0x11b   : > { %v929_v41 = vpop.f32.mrf.mxu1 }
 0x11d   : > { %v931_v43 = vpop.f32.mrf.mxu1 }
 0x11f   : > { %v933_v47 = vpop.f32.mrf.mxu1 }
 0x121   : > { %v937_v53 = vpop.f32.mrf.mxu1 }
 0x123   : > { %v939_v59 = vpop.f32.mrf.mxu1 }
 0x125   : > { %v941_v5 = vpop.f32.mrf.mxu1 }
 0x127   : > { %v943_v15 = vpop.f32.mrf.mxu1 }
 0x137   : > { %v874_v49 = vpop.f32.mrf.mxu0 }
 0x138   : > { %v928_v50 = vadd.f32 %v927_v39, %v874_v49 }
 0x139   : > { %v876_v52 = vpop.f32.mrf.mxu0 }
 0x13a   : > { %v946_v54 = vadd.f32 %v928_v50, %v489_v48  ;;  %v930_v55 = vadd.f32 %v929_v41, %v876_v52 }
 0x13b   : > { %v878_v56 = vpop.f32.mrf.mxu0 }
 0x13c   : > { %v947_v57 = vadd.f32 %v930_v55, %v493_v51  ;;  %v932_v58 = vadd.f32 %v931_v43, %v878_v56  ;;  %v973_v61 = vmax.f32 %v946_v54, 0.0 }
 0x13d   : > { %v880_v60 = vpop.f32.mrf.mxu0 }
 0x13e   : > { %v974_v62 = vmax.f32 %v947_v57, 0.0  ;;  %v948_v63 = vadd.f32 %v932_v58, %v489_v48  ;;  %v934_v0 = vadd.f32 %v933_v47, %v880_v60 }
 0x13f   : > { %v884_v1 = vpop.f32.mrf.mxu0 }
 0x140   : > { %v1245_v2 = vpack.c.bf16 %v974_v62, %v973_v61  ;;  %v949_v3 = vadd.f32 %v934_v0, %v493_v51  ;;  %v938_v4 = vadd.f32 %v937_v53, %v884_v1  ;;  %v975_v7 = vmax.f32 %v948_v63, 0.0 }
 0x141   : > { %v886_v6 = vpop.f32.mrf.mxu0 }
 0x142   : > { %1005 = vst [vmem:[%s1663_s5] sm:$0xff] %v1245_v2  ;;  %v976_v8 = vmax.f32 %v949_v3, 0.0  ;;  %v950_v9 = vadd.f32 %v938_v4, %v489_v48  ;;  %v940_v10 = vadd.f32 %v939_v59, %v886_v6 }
 0x143   : > { %v888_v11 = vpop.f32.mrf.mxu0 }
 0x144   : > { %v1246_v12 = vpack.c.bf16 %v976_v8, %v975_v7  ;;  %v951_v13 = vadd.f32 %v940_v10, %v493_v51  ;;  %v942_v14 = vadd.f32 %v941_v5, %v888_v11  ;;  %v977_v17 = vmax.f32 %v950_v9, 0.0 }
 0x145   : > { %v890_v16 = vpop.f32.mrf.mxu0 }
 0x146   : > { %1006 = vst [vmem:[%s1663_s5 + $0x8] sm:$0xff] %v1246_v12  ;;  %v978_v18 = vmax.f32 %v951_v13, 0.0  ;;  %v952_v19 = vadd.f32 %v942_v14, %v489_v48  ;;  %v944_v20 = vadd.f32 %v943_v15, %v890_v16 }
 0x148   : > { %v1247_v21 = vpack.c.bf16 %v978_v18, %v977_v17  ;;  %v953_v22 = vadd.f32 %v944_v20, %v493_v51  ;;  %v979_v23 = vmax.f32 %v952_v19, 0.0 }
 0x149   : > { %v1056_v26 = vld [vmem:[%s1663_s5] sm:$0xff] (%p1469_p6) }
 0x14a   : > { %1007 = vst [vmem:[%s1663_s5 + $0x10] sm:$0xff] %v1247_v21  ;;  %v980_v24 = vmax.f32 %v953_v22, 0.0  ;;  %1015 = sbr.rel (!%p1469_p6) target bundleno = 343 (0x157), region = 82  ;;  %1057 = vst [vmem:[%s1021_s7] sm:$0xff] (%p1469_p6), %v1056_v26 }
 0x14c   : > { %v1248_v25 = vpack.c.bf16 %v980_v24, %v979_v23 }
 0x14d   : > { %v1058_v27 = vld [vmem:[%s1663_s5 + $0x8] sm:$0xff] (%p1469_p6) }
 0x14e   : > { %1008 = vst [vmem:[%s1663_s5 + $0x18] sm:$0xff] %v1248_v25  ;;  %1059 = vst [vmem:[%s1021_s7 + $0x10] sm:$0xff] (%p1469_p6), %v1058_v27 }
 0x151   : > { %v1060_v28 = vld [vmem:[%s1663_s5 + $0x10] sm:$0xff] }
 0x152   : > { %1061 = vst [vmem:[%s1021_s7 + $0x20] sm:$0xff] %v1060_v28 }
 0x155   : > { %v1062_v29 = vld [vmem:[%s1663_s5 + $0x18] sm:$0xff] }
 0x156   : > { %1063 = vst [vmem:[%s1021_s7 + $0x30] sm:$0xff] %v1062_v29 }
 0x157 PF: > { %s13_s16 = sadd.s32 1, %s1411_s16   ;;  %s1699_s12 = smov %s1399_s13 }
 0x158   : > { %p10_p12 = scmp.ge.s32.totalorder %s13_s16, 4   ;;  %s1700_s13 = smov %s1474_s22 }
 0x159   : > { %s1701_s14 = smov %s1407_s15  ;;  %s1702_s15 = smov %s1704_s17 }
 0x15a   :  { %12 = sbr.rel (!%p10_p12) target bundleno = 3 (0x3), region = 157 }

// kernel: generator_forward.11
= control target key start
LH: loop header
LB: loop body
LE: loop exit
PB: predicated region body
PF: predicated region fallthrough
CT: control target
= control target key end

     0   :  { %s991_s12 = smov 0   ;;  %s993_s13 = smov 0   ;;  %s1130_s0 = inlined_call_operand.vmem [shape: bf16[32,512], index: 0, kind: input, shape index: {}]   ;;  %s1131_s1 = inlined_call_operand.vmem [shape: bf16[512,128], index: 1, kind: input, shape index: {}]   ;;  %s1132_s2 = inlined_call_operand.vmem [shape: f32[1,128], index: 2, kind: input, shape index: {}]   ;;  %s1133_s3 = inlined_call_operand.vmem [shape: bf16[32,128], index: 3, kind: output, shape index: {}]  }
   0x1   :  { %s995_s14 = smov 0  }
   0x2 LB: > { %s32_s15 = sadd.s32 1, %s965_s13  ;;  %p786_p0 = scmp.ge.s32.totalorder %s969_s14, 1  ;;  %s969_s14 = sphi %s995_s14, %s13_s14   ;;  %s965_s13 = sphi %s993_s13, %s1135_s13   ;;  %s961_s12 = sphi %s991_s12, %s1134_s12  }
   0x3   : > { %p34_p1 = scmp.ge.s32.totalorder %s32_s15, 2  ;;  %p191_p2 = scmp.lt.s32.totalorder %s969_s14, 3 }
   0x5   : > { %s1137_s15 = smov (%p34_p1, %s32_s15), 0  ;;  %p192_p3 = pnand %p786_p0, %p191_p2 }
   0x6   : > { %s787_s25 = sshll.u32 (!%p192_p3), %s961_s12, 1 }
   0x7   : > { %195 = sbr.rel (%p192_p3) target bundleno = 257 (0x101), region = 32  ;;  %p236_p4 = scmp.lt.s32.totalorder (!%p192_p3), %s787_s25, 3 }
   0xc   : > { %v909_v0 = vld [vmem:[%s1131_s1 + $0x78] sm:$0xff]   ;;  %v913_v4 = vld [vmem:[%s1131_s1 + $0x70] sm:$0xff]   ;;  %v917_v8 = vld [vmem:[%s1131_s1 + $0x68] sm:$0xff]   ;;  %s1139_s25 = smov (!%p236_p4, %s787_s25), 3 }
   0xd   : > { %v910_v1 = vld [vmem:[%s1131_s1 + $0xf8] sm:$0xff]   ;;  %841 = vmatprep.subr.bf16.mxu0 %v909_v0  ;;  %v914_v5 = vld [vmem:[%s1131_s1 + $0xf0] sm:$0xff]   ;;  %v918_v9 = vld [vmem:[%s1131_s1 + $0xe8] sm:$0xff]   ;;  %s833_s24 = sshll.u32 %s1139_s25, 4  ;;  %s791_s17 = sshll.u32 %s1139_s25, 2 }
   0xe   : > { %v911_v2 = vld [vmem:[%s1131_s1 + $0x38] sm:$0xff]   ;;  %863 = vmatprep.subr.bf16.mxu1 %v910_v1  ;;  %v915_v6 = vld [vmem:[%s1131_s1 + $0x30] sm:$0xff]   ;;  %v919_v10 = vld [vmem:[%s1131_s1 + $0x28] sm:$0xff]   ;;  %s243_s12 = scalar_lea.vmem %s1130_s0, %s833_s24  ;;  %s265_s20 = scalar_lea.vmem %s1133_s3, %s791_s17 }
   0xf   : > { %v912_v3 = vld [vmem:[%s1131_s1 + $0xb8] sm:$0xff]   ;;  %842 = vmatpush3.bf16.msra.mxu0 %v911_v2  ;;  %v916_v7 = vld [vmem:[%s1131_s1 + $0xb0] sm:$0xff]   ;;  %v920_v11 = vld [vmem:[%s1131_s1 + $0xa8] sm:$0xff]  }
  0x10   : > { %864 = vmatpush3.bf16.msra.mxu1 %v912_v3  ;;  %843 = vmatprep.subr.bf16.mxu0 %v913_v4  ;;  %v921_v12 = vld [vmem:[%s1131_s1 + $0x60] sm:$0xff]   ;;  %v925_v16 = vld [vmem:[%s1131_s1 + $0x58] sm:$0xff]   ;;  %v929_v20 = vld [vmem:[%s1131_s1 + $0x50] sm:$0xff]  }
  0x11   : > { %865 = vmatprep.subr.bf16.mxu1 %v914_v5  ;;  %v922_v13 = vld [vmem:[%s1131_s1 + $0xe0] sm:$0xff]   ;;  %v926_v17 = vld [vmem:[%s1131_s1 + $0xd8] sm:$0xff]   ;;  %v930_v21 = vld [vmem:[%s1131_s1 + $0xd0] sm:$0xff]  }
  0x12   : > { %v923_v14 = vld [vmem:[%s1131_s1 + $0x20] sm:$0xff]   ;;  %v927_v18 = vld [vmem:[%s1131_s1 + $0x18] sm:$0xff]   ;;  %v931_v22 = vld [vmem:[%s1131_s1 + $0x10] sm:$0xff]  }
  0x13   : > { %844 = vmatpush3.bf16.msra.mxu0 %v915_v6  ;;  %v924_v15 = vld [vmem:[%s1131_s1 + $0xa0] sm:$0xff]   ;;  %v928_v19 = vld [vmem:[%s1131_s1 + $0x98] sm:$0xff]   ;;  %v932_v23 = vld [vmem:[%s1131_s1 + $0x90] sm:$0xff]  }
  0x14   : > { %866 = vmatpush3.bf16.msra.mxu1 %v916_v7  ;;  %845 = vmatprep.subr.bf16.mxu0 %v917_v8  ;;  %v933_v24 = vld [vmem:[%s1131_s1 + $0x48] sm:$0xff]   ;;  %v937_v28 = vld [vmem:[%s1131_s1 + $0x40] sm:$0xff]  }
  0x15   : > { %867 = vmatprep.subr.bf16.mxu1 %v918_v9  ;;  %v934_v25 = vld [vmem:[%s1131_s1 + $0xc8] sm:$0xff]   ;;  %v938_v29 = vld [vmem:[%s1131_s1 + $0xc0] sm:$0xff]  }
  0x16   : > { %v935_v26 = vld [vmem:[%s1131_s1 + $0x8] sm:$0xff]   ;;  %v939_v30 = vld [vmem:[%s1131_s1] sm:$0xff]  }
  0x17   : > { %846 = vmatpush3.bf16.msra.mxu0 %v919_v10  ;;  %v936_v27 = vld [vmem:[%s1131_s1 + $0x88] sm:$0xff]   ;;  %v940_v31 = vld [vmem:[%s1131_s1 + $0x80] sm:$0xff]  }
  0x18   : > { %868 = vmatpush3.bf16.msra.mxu1 %v920_v11  ;;  %847 = vmatprep.subr.bf16.mxu0 %v921_v12  ;;  %v941_v32 = vld [vmem:[%s243_s12] ss:$16 sps:$4 sm:$0xff]   ;;  %v943_v33 = vld [vmem:[%s243_s12 + $0x4] ss:$16 sps:$4 sm:$0xff]   ;;  %v944_v34 = vld [vmem:[%s243_s12 + $0x8] ss:$16 sps:$4 sm:$0xff]  }
  0x19   : > { %869 = vmatprep.subr.bf16.mxu1 %v922_v13  ;;  %v946_v35 = vld [vmem:[%s243_s12 + $0xc] ss:$16 sps:$4 sm:$0xff]   ;;  %595 = vmatprep.mubr.bf16.mxu0 %v943_v33  ;;  %v792_v46 = vld [vmem:[%s1132_s2] ss:$0 sm:$0xff] }
  0x1a   : > { %636 = vmatprep.mubr.bf16.mxu1 %v946_v35 }
  0x1b   : > { %848 = vmatpush3.bf16.msra.mxu0 %v923_v14 }
  0x1c   : > { %870 = vmatpush3.bf16.msra.mxu1 %v924_v15  ;;  %849 = vmatprep.subr.bf16.mxu0 %v925_v16 }
  0x1d   : > { %871 = vmatprep.subr.bf16.mxu1 %v926_v17 }
  0x1f   : > { %850 = vmatpush3.bf16.msra.mxu0 %v927_v18 }
  0x20   : > { %872 = vmatpush3.bf16.msra.mxu1 %v928_v19  ;;  %851 = vmatprep.subr.bf16.mxu0 %v929_v20 }
  0x21   : > { %873 = vmatprep.subr.bf16.mxu1 %v930_v21 }
  0x23   : > { %852 = vmatpush3.bf16.msra.mxu0 %v931_v22 }
  0x24   : > { %874 = vmatpush3.bf16.msra.mxu1 %v932_v23  ;;  %853 = vmatprep.subr.bf16.mxu0 %v933_v24 }
  0x25   : > { %875 = vmatprep.subr.bf16.mxu1 %v934_v25 }
  0x27   : > { %854 = vmatpush3.bf16.msra.mxu0 %v935_v26 }
  0x28   : > { %876 = vmatpush3.bf16.msra.mxu1 %v936_v27  ;;  %855 = vmatprep.subr.bf16.mxu0 %v937_v28 }
  0x29   : > { %877 = vmatprep.subr.bf16.mxu1 %v938_v29 }
  0x2b   : > { %856 = vmatpush3.bf16.msra.mxu0 %v939_v30 }
  0x2c   : > { %878 = vmatpush3.bf16.msra.mxu1 %v940_v31 }
  0x2e   : > { %596 = vmatmul.mubr.bf16.vlgmr.msra.gmra.mxu0 %v941_v32 }
  0x2f   : > { %637 = vmatmul.mubr.bf16.vlgmr.msra.gmra.mxu1 %v944_v34 }
  0xee   : > { %v857_v36 = vpop.f32.mrf.mxu0 }
  0xef   : > { %v879_v37 = vpop.f32.mrf.mxu1 }
  0xf0   : > { %v858_v38 = vpop.f32.mrf.mxu0 }
  0xf1   : > { %v859_v39 = vadd.f32 %v858_v38, %v857_v36  ;;  %v880_v40 = vpop.f32.mrf.mxu1 }
  0xf2   : > { %v881_v41 = vadd.f32 %v880_v40, %v879_v37  ;;  %v860_v42 = vpop.f32.mrf.mxu0 }
  0xf3   : > { %v882_v43 = vpop.f32.mrf.mxu1 }
  0xf4   : > { %v639_v44 = vadd.f32 %v881_v41, %v859_v39  ;;  %v861_v45 = vpop.f32.mrf.mxu0 }
  0xf5   : > { %v862_v47 = vadd.f32 %v861_v45, %v860_v42  ;;  %v883_v48 = vpop.f32.mrf.mxu1 }
  0xf6   : > { %v884_v49 = vadd.f32 %v883_v48, %v882_v43  ;;  %v645_v50 = vadd.f32 %v792_v46, %v639_v44 }
  0xf8   : > { %v642_v51 = vadd.f32 %v884_v49, %v862_v47  ;;  %v654_v53 = vmax.f32 %v645_v50, 0.0 }
  0xfa   : > { %v646_v52 = vadd.f32 %v792_v46, %v642_v51 }
  0xfc   : > { %v655_v54 = vmax.f32 %v646_v52, 0.0 }
  0xfe   : > { %v839_v55 = vpack.c.bf16 %v655_v54, %v654_v53 }
 0x100   : > { %840 = vst [vmem:[%s265_s20] sm:$0xff] %v839_v55  }
 0x101 PF: > { %s13_s14 = sadd.s32 1, %s969_s14   ;;  %s1134_s12 = smov %s965_s13 }
 0x102   : > { %p10_p5 = scmp.ge.s32.totalorder %s13_s14, 4   ;;  %s1135_s13 = smov %s1137_s15 }
 0x104   :  { %12 = sbr.rel (!%p10_p5) target bundleno = 2 (0x2), region = 76 }

// kernel: generator_forward.14
= control target key start
LH: loop header
LB: loop body
LE: loop exit
PB: predicated region body
PF: predicated region fallthrough
CT: control target
= control target key end

     0   :  { %s679_s1 = inlined_call_operand.vmem [shape: bf16[512,128], index: 1, kind: input, shape index: {}]   ;;  %s680_s0 = inlined_call_operand.vmem [shape: bf16[16,512], index: 0, kind: input, shape index: {}]   ;;  %s681_s2 = inlined_call_operand.vmem [shape: f32[1,128], index: 2, kind: input, shape index: {}]   ;;  %s682_s3 = inlined_call_operand.vmem [shape: bf16[16,128], index: 3, kind: output, shape index: {}]  }
   0x1   :  { %v507_v0 = vld [vmem:[%s679_s1 + $0x78] sm:$0xff]   ;;  %v511_v4 = vld [vmem:[%s679_s1 + $0x70] sm:$0xff]   ;;  %v515_v8 = vld [vmem:[%s679_s1 + $0x68] sm:$0xff]  }
   0x2   :  { %v508_v1 = vld [vmem:[%s679_s1 + $0xf8] sm:$0xff]   ;;  %463 = vmatprep.subr.bf16.mxu0 %v507_v0  ;;  %v512_v5 = vld [vmem:[%s679_s1 + $0xf0] sm:$0xff]   ;;  %v516_v9 = vld [vmem:[%s679_s1 + $0xe8] sm:$0xff]  }
   0x3   :  { %v509_v2 = vld [vmem:[%s679_s1 + $0x38] sm:$0xff]   ;;  %485 = vmatprep.subr.bf16.mxu1 %v508_v1  ;;  %v513_v6 = vld [vmem:[%s679_s1 + $0x30] sm:$0xff]   ;;  %v517_v10 = vld [vmem:[%s679_s1 + $0x28] sm:$0xff]  }
   0x4   :  { %v510_v3 = vld [vmem:[%s679_s1 + $0xb8] sm:$0xff]   ;;  %464 = vmatpush3.bf16.msra.mxu0 %v509_v2  ;;  %v514_v7 = vld [vmem:[%s679_s1 + $0xb0] sm:$0xff]   ;;  %v518_v11 = vld [vmem:[%s679_s1 + $0xa8] sm:$0xff]  }
   0x5   :  { %486 = vmatpush3.bf16.msra.mxu1 %v510_v3  ;;  %465 = vmatprep.subr.bf16.mxu0 %v511_v4  ;;  %v519_v12 = vld [vmem:[%s679_s1 + $0x60] sm:$0xff]   ;;  %v523_v16 = vld [vmem:[%s679_s1 + $0x58] sm:$0xff]   ;;  %v527_v20 = vld [vmem:[%s679_s1 + $0x50] sm:$0xff]  }
   0x6   :  { %487 = vmatprep.subr.bf16.mxu1 %v512_v5  ;;  %v520_v13 = vld [vmem:[%s679_s1 + $0xe0] sm:$0xff]   ;;  %v524_v17 = vld [vmem:[%s679_s1 + $0xd8] sm:$0xff]   ;;  %v528_v21 = vld [vmem:[%s679_s1 + $0xd0] sm:$0xff]  }
   0x7   :  { %v521_v14 = vld [vmem:[%s679_s1 + $0x20] sm:$0xff]   ;;  %v525_v18 = vld [vmem:[%s679_s1 + $0x18] sm:$0xff]   ;;  %v529_v22 = vld [vmem:[%s679_s1 + $0x10] sm:$0xff]  }
   0x8   :  { %466 = vmatpush3.bf16.msra.mxu0 %v513_v6  ;;  %v522_v15 = vld [vmem:[%s679_s1 + $0xa0] sm:$0xff]   ;;  %v526_v19 = vld [vmem:[%s679_s1 + $0x98] sm:$0xff]   ;;  %v530_v23 = vld [vmem:[%s679_s1 + $0x90] sm:$0xff]  }
   0x9   :  { %488 = vmatpush3.bf16.msra.mxu1 %v514_v7  ;;  %467 = vmatprep.subr.bf16.mxu0 %v515_v8  ;;  %v531_v24 = vld [vmem:[%s679_s1 + $0x48] sm:$0xff]   ;;  %v535_v28 = vld [vmem:[%s679_s1 + $0x40] sm:$0xff]  }
   0xa   :  { %489 = vmatprep.subr.bf16.mxu1 %v516_v9  ;;  %v532_v25 = vld [vmem:[%s679_s1 + $0xc8] sm:$0xff]   ;;  %v536_v29 = vld [vmem:[%s679_s1 + $0xc0] sm:$0xff]  }
   0xb   :  { %v533_v26 = vld [vmem:[%s679_s1 + $0x8] sm:$0xff]   ;;  %v537_v30 = vld [vmem:[%s679_s1] sm:$0xff]  }
   0xc   :  { %468 = vmatpush3.bf16.msra.mxu0 %v517_v10  ;;  %v534_v27 = vld [vmem:[%s679_s1 + $0x88] sm:$0xff]   ;;  %v538_v31 = vld [vmem:[%s679_s1 + $0x80] sm:$0xff]  }
   0xd   :  { %490 = vmatpush3.bf16.msra.mxu1 %v518_v11  ;;  %469 = vmatprep.subr.bf16.mxu0 %v519_v12  ;;  %v539_v32 = vld [vmem:[%s680_s0] ss:$16 sps:$4 sm:$0xff]   ;;  %v541_v33 = vld [vmem:[%s680_s0 + $0x4] ss:$16 sps:$4 sm:$0xff]   ;;  %v542_v34 = vld [vmem:[%s680_s0 + $0x8] ss:$16 sps:$4 sm:$0xff]  }
   0xe   :  { %491 = vmatprep.subr.bf16.mxu1 %v520_v13  ;;  %v544_v35 = vld [vmem:[%s680_s0 + $0xc] ss:$16 sps:$4 sm:$0xff]   ;;  %342 = vmatprep.mubr.bf16.mxu0 %v541_v33  ;;  %v417_v46 = vld [vmem:[%s681_s2] ss:$0 sm:$0xff] }
   0xf   :  { %383 = vmatprep.mubr.bf16.mxu1 %v544_v35 }
  0x10   :  { %470 = vmatpush3.bf16.msra.mxu0 %v521_v14 }
  0x11   :  { %492 = vmatpush3.bf16.msra.mxu1 %v522_v15  ;;  %471 = vmatprep.subr.bf16.mxu0 %v523_v16 }
  0x12   :  { %493 = vmatprep.subr.bf16.mxu1 %v524_v17 }
  0x14   :  { %472 = vmatpush3.bf16.msra.mxu0 %v525_v18 }
  0x15   :  { %494 = vmatpush3.bf16.msra.mxu1 %v526_v19  ;;  %473 = vmatprep.subr.bf16.mxu0 %v527_v20 }
  0x16   :  { %495 = vmatprep.subr.bf16.mxu1 %v528_v21 }
  0x18   :  { %474 = vmatpush3.bf16.msra.mxu0 %v529_v22 }
  0x19   :  { %496 = vmatpush3.bf16.msra.mxu1 %v530_v23  ;;  %475 = vmatprep.subr.bf16.mxu0 %v531_v24 }
  0x1a   :  { %497 = vmatprep.subr.bf16.mxu1 %v532_v25 }
  0x1c   :  { %476 = vmatpush3.bf16.msra.mxu0 %v533_v26 }
  0x1d   :  { %498 = vmatpush3.bf16.msra.mxu1 %v534_v27  ;;  %477 = vmatprep.subr.bf16.mxu0 %v535_v28 }
  0x1e   :  { %499 = vmatprep.subr.bf16.mxu1 %v536_v29 }
  0x20   :  { %478 = vmatpush3.bf16.msra.mxu0 %v537_v30 }
  0x21   :  { %500 = vmatpush3.bf16.msra.mxu1 %v538_v31 }
  0x23   :  { %343 = vmatmul.mubr.bf16.vlgmr.msra.gmra.mxu0 %v539_v32 }
  0x24   :  { %384 = vmatmul.mubr.bf16.vlgmr.msra.gmra.mxu1 %v542_v34 }
  0xe3   :  { %v479_v36 = vpop.f32.mrf.mxu0 }
  0xe4   :  { %v501_v37 = vpop.f32.mrf.mxu1 }
  0xe5   :  { %v480_v38 = vpop.f32.mrf.mxu0 }
  0xe6   :  { %v481_v39 = vadd.f32 %v480_v38, %v479_v36  ;;  %v502_v40 = vpop.f32.mrf.mxu1 }
  0xe7   :  { %v503_v41 = vadd.f32 %v502_v40, %v501_v37  ;;  %v482_v42 = vpop.f32.mrf.mxu0 }
  0xe8   :  { %v504_v43 = vpop.f32.mrf.mxu1 }
  0xe9   :  { %v386_v44 = vadd.f32 %v503_v41, %v481_v39  ;;  %v483_v45 = vpop.f32.mrf.mxu0 }
  0xea   :  { %v484_v47 = vadd.f32 %v483_v45, %v482_v42  ;;  %v505_v48 = vpop.f32.mrf.mxu1 }
  0xeb   :  { %v506_v49 = vadd.f32 %v505_v48, %v504_v43  ;;  %v392_v50 = vadd.f32 %v417_v46, %v386_v44 }
  0xed   :  { %v389_v51 = vadd.f32 %v506_v49, %v484_v47  ;;  %v401_v53 = vmax.f32 %v392_v50, 0.0 }
  0xef   :  { %v393_v52 = vadd.f32 %v417_v46, %v389_v51 }
  0xf1   :  { %v402_v54 = vmax.f32 %v393_v52, 0.0 }
  0xf3   :  { %v461_v55 = vpack.c.bf16 %v402_v54, %v401_v53 }
  0xf5   :  { %462 = vst [vmem:[%s682_s3] sm:$0xff] %v461_v55  }

// kernel: generator_forward.12
= control target key start
LH: loop header
LB: loop body
LE: loop exit
PB: predicated region body
PF: predicated region fallthrough
CT: control target
= control target key end

     0   :  { %s1077_s12 = smov 0   ;;  %s1079_s13 = smov 0   ;;  %s1217_s0 = inlined_call_operand.vmem [shape: bf16[32,4608], index: 0, kind: input, shape index: {}]   ;;  %s1218_s1 = inlined_call_operand.vmem [shape: bf16[4608,128], index: 1, kind: input, shape index: {}]   ;;  %s1219_s2 = inlined_call_operand.vmem [shape: f32[1,128], index: 2, kind: input, shape index: {}]   ;;  %s1220_s3 = inlined_call_operand.vmem [shape: bf16[32,128], index: 3, kind: output, shape index: {}]  }
   0x1   :  { %s1081_s14 = smov 0   ;;  %s1083_s15 = smov 0  }
   0x2   :  { %s1085_s16 = smov 0   ;;  %s1087_s17 = smov 0  }
   0x3   :  { %s1089_s18 = smov 0  }
   0x4 LB: > { %s25_s19 = sadd.s32 1, %s1047_s16  ;;  %s32_s20 = sadd.s32 1, %s1051_s17  ;;  %s1055_s18 = sphi %s1089_s18, %s13_s18   ;;  %s1051_s17 = sphi %s1087_s17, %s1226_s17   ;;  %s1047_s16 = sphi %s1085_s16, %s1225_s16   ;;  %s1043_s15 = sphi %s1083_s15, %s1224_s15   ;;  %s1039_s14 = sphi %s1081_s14, %s1223_s14   ;;  %s1035_s13 = sphi %s1079_s13, %s1222_s13   ;;  %s1031_s12 = sphi %s1077_s12, %s1221_s12  }
   0x5   : > { %p26_p0 = scmp.ge.s32.totalorder %s25_s19, 9  ;;  %p48_p1 = scmp.ne.s32.totalorder %s1035_s13, %s1031_s12 }
   0x6   : > { %p49_p2 = scmp.eq.s32.totalorder %s1055_s18, 0  ;;  %s41_s24 = sadd.s32 1, %s1035_s13 }
   0x7   : > { %s1228_s19 = smov (%p26_p0, %s25_s19), 0  ;;  %s1230_s20 = smov (!%p26_p0, %s32_s20), %s1051_s17 }
   0x8   : > { %p50_p3 = por %p49_p2, %p48_p1  ;;  %p34_p4 = scmp.ge.s32.totalorder %s1230_s20, 2 }
   0x9   : > { %s37_s21 = ssub.s32 %s1047_s16, %s1228_s19  ;;  %p800_p6 = scmp.ge.s32.totalorder %s1055_s18, 18 }
   0xa   : > { %s1232_s20 = smov (%p34_p4, %s1230_s20), 0 }
   0xb   : > { %s36_s22 = ssub.s32 %s1051_s17, %s1232_s20  ;;  %162 = sbr.rel (%p800_p6) target bundleno = 26 (0x1a), region = 20 }
   0xc   : > { %s38_s23 = sor.u32 %s37_s21, %s36_s22 }
   0xd   : > { %p39_p5 = scmp.eq.s32.totalorder %s38_s23, 0 }
   0xf   : > { %s1128_s25 = scalar_select %p39_p5, %s1035_s13, %s41_s24  }
  0x10   : > { %165 = sbr.rel (!%p50_p3) target bundleno = 26 (0x1a), region = 24  ;;  %s167_s26 = sand.u32 (%p50_p3), 1, %s1035_s13  }
  0x11   : > { %s803_s27 = sshll.u32 (%p50_p3), %s1047_s16, 2  ;;  %s801_s28 = sshll.u32 (%p50_p3), %s167_s26, 5 }
  0x12   : > { %s906_s29 = smul.u32 (%p50_p3), 72, %s1051_s17  ;;  %s169_s8 = scalar_lea.vmem (%p50_p3), [#allocation3], %s801_s28 }
  0x14   : > { %s173_s30 = sadd.s32 (%p50_p3), %s906_s29, %s803_s27 }
  0x15   : > { %s805_s4 = sshll.u32 %s173_s30, 2 }
  0x16   : > { %s175_s7 = scalar_lea.vmem %s1217_s0, %s805_s4 }
  0x17   : > { %v188_v0 = vld [vmem:[%s175_s7] sm:$0xff]  ;;  %v190_v1 = vld [vmem:[%s175_s7 + $0x8] sm:$0xff]  ;;  %v192_v2 = vld [vmem:[%s175_s7 + $0x90] sm:$0xff] }
  0x18   : > { %189 = vst [vmem:[%s169_s8] sm:$0xff] %v188_v0  ;;  %191 = vst [vmem:[%s169_s8 + $0x8] sm:$0xff] %v190_v1  ;;  %v194_v3 = vld [vmem:[%s175_s7 + $0x98] sm:$0xff] }
  0x19   : > { %193 = vst [vmem:[%s169_s8 + $0x10] sm:$0xff] %v192_v2  ;;  %195 = vst [vmem:[%s169_s8 + $0x18] sm:$0xff] %v194_v3 }
  0x1a PF: > { %p806_p7 = scmp.ge.s32.totalorder %s1055_s18, 1  ;;  %p212_p8 = scmp.lt.s32.totalorder %s1055_s18, 19 }
  0x1c   : > { %p213_p9 = pnand %p806_p7, %p212_p8 }
  0x1d   : > { %s219_s9 = sand.u32 (!%p213_p9), 1, %s1031_s12   ;;  %s808_s10 = sshll.u32 (!%p213_p9), %s1039_s14, 6 }
  0x1e   : > { %216 = sbr.rel (%p213_p9) target bundleno = 298 (0x12a), region = 51  ;;  %s807_s11 = sshll.u32 (!%p213_p9), %s219_s9, 5 }
  0x1f   : > { %p259_p10 = scmp.lt.s32.totalorder (!%p213_p9), %s808_s10, 575  ;;  %s810_s21 = sshll.u32 (!%p213_p9), %s1043_s15, 1 }
  0x20   : > { %p271_p11 = scmp.lt.s32.totalorder (!%p213_p9), %s810_s21, 3  ;;  %s1152_s12 = scalar_lea.vmem (!%p213_p9), [#allocation3], %s807_s11 }
  0x21   : > { %p812_p12 = scmp.ne.s32.totalorder (!%p213_p9), %s1039_s14, 0 }
  0x23   : > { %s1234_s10 = smov (!%p259_p10, %s808_s10), 575  ;;  %s1236_s21 = smov (!%p271_p11, %s810_s21), 3 }
  0x24   : > { %s809_s22 = sshll.u32 %s1234_s10, 2  ;;  %s811_s27 = sshll.u32 %s1236_s21, 2 }
  0x25   : > { %s1145_s26 = scalar_lea.vmem %s1218_s1, %s809_s22  ;;  %s1150_s30 = scalar_lea.vmem %s1220_s3, %s811_s27 }
  0x26   : > { %283 = sbr.rel (%p812_p12) target bundleno = 45 (0x2d), region = 59 }
  0x2b   : > { %v813_v4 = vld [vmem:[%s1219_s2] ss:$0 sm:$0xff] }
  0x2c   : > { %291 = vst [vmem:[#allocation2] sm:$0xff] %v813_v4  ;;  %292 = vst [vmem:[#allocation2 + $0x8] sm:$0xff] %v813_v4 }
  0x2d PF: > { %v963_v5 = vld [vmem:[%s1145_s26 + $0x78] sm:$0xff]   ;;  %v967_v9 = vld [vmem:[%s1145_s26 + $0x70] sm:$0xff]   ;;  %v971_v13 = vld [vmem:[%s1145_s26 + $0x68] sm:$0xff]   ;;  %p850_p13 = scmp.ne.s32.totalorder %s1039_s14, 8 }
  0x2e   : > { %v964_v6 = vld [vmem:[%s1145_s26 + $0xf8] sm:$0xff]   ;;  %862 = vmatprep.subr.bf16.mxu0 %v963_v5  ;;  %v968_v10 = vld [vmem:[%s1145_s26 + $0xf0] sm:$0xff]   ;;  %v972_v14 = vld [vmem:[%s1145_s26 + $0xe8] sm:$0xff]  }
  0x2f   : > { %v965_v7 = vld [vmem:[%s1145_s26 + $0x38] sm:$0xff]   ;;  %884 = vmatprep.subr.bf16.mxu1 %v964_v6  ;;  %v969_v11 = vld [vmem:[%s1145_s26 + $0x30] sm:$0xff]   ;;  %v973_v15 = vld [vmem:[%s1145_s26 + $0x28] sm:$0xff]  }
  0x30   : > { %v966_v8 = vld [vmem:[%s1145_s26 + $0xb8] sm:$0xff]   ;;  %863 = vmatpush3.bf16.msra.mxu0 %v965_v7  ;;  %v970_v12 = vld [vmem:[%s1145_s26 + $0xb0] sm:$0xff]   ;;  %v974_v16 = vld [vmem:[%s1145_s26 + $0xa8] sm:$0xff]  }
  0x31   : > { %885 = vmatpush3.bf16.msra.mxu1 %v966_v8  ;;  %864 = vmatprep.subr.bf16.mxu0 %v967_v9  ;;  %v975_v17 = vld [vmem:[%s1145_s26 + $0x60] sm:$0xff]   ;;  %v979_v21 = vld [vmem:[%s1145_s26 + $0x58] sm:$0xff]   ;;  %v983_v25 = vld [vmem:[%s1145_s26 + $0x50] sm:$0xff]  }
  0x32   : > { %886 = vmatprep.subr.bf16.mxu1 %v968_v10  ;;  %v976_v18 = vld [vmem:[%s1145_s26 + $0xe0] sm:$0xff]   ;;  %v980_v22 = vld [vmem:[%s1145_s26 + $0xd8] sm:$0xff]   ;;  %v984_v26 = vld [vmem:[%s1145_s26 + $0xd0] sm:$0xff]  }
  0x33   : > { %v977_v19 = vld [vmem:[%s1145_s26 + $0x20] sm:$0xff]   ;;  %v981_v23 = vld [vmem:[%s1145_s26 + $0x18] sm:$0xff]   ;;  %v985_v27 = vld [vmem:[%s1145_s26 + $0x10] sm:$0xff]  }
  0x34   : > { %865 = vmatpush3.bf16.msra.mxu0 %v969_v11  ;;  %v978_v20 = vld [vmem:[%s1145_s26 + $0xa0] sm:$0xff]   ;;  %v982_v24 = vld [vmem:[%s1145_s26 + $0x98] sm:$0xff]   ;;  %v986_v28 = vld [vmem:[%s1145_s26 + $0x90] sm:$0xff]  }
  0x35   : > { %887 = vmatpush3.bf16.msra.mxu1 %v970_v12  ;;  %866 = vmatprep.subr.bf16.mxu0 %v971_v13  ;;  %v987_v29 = vld [vmem:[%s1145_s26 + $0x48] sm:$0xff]   ;;  %v991_v33 = vld [vmem:[%s1145_s26 + $0x40] sm:$0xff]  }
  0x36   : > { %888 = vmatprep.subr.bf16.mxu1 %v972_v14  ;;  %v988_v30 = vld [vmem:[%s1145_s26 + $0xc8] sm:$0xff]   ;;  %v992_v34 = vld [vmem:[%s1145_s26 + $0xc0] sm:$0xff]  }
  0x37   : > { %v989_v31 = vld [vmem:[%s1145_s26 + $0x8] sm:$0xff]   ;;  %v993_v35 = vld [vmem:[%s1145_s26] sm:$0xff]  }
  0x38   : > { %867 = vmatpush3.bf16.msra.mxu0 %v973_v15  ;;  %v990_v32 = vld [vmem:[%s1145_s26 + $0x88] sm:$0xff]   ;;  %v994_v36 = vld [vmem:[%s1145_s26 + $0x80] sm:$0xff]  }
  0x39   : > { %889 = vmatpush3.bf16.msra.mxu1 %v974_v16  ;;  %868 = vmatprep.subr.bf16.mxu0 %v975_v17  ;;  %v995_v37 = vld [vmem:[%s1152_s12] ss:$16 sps:$4 sm:$0xff]   ;;  %v997_v38 = vld [vmem:[%s1152_s12 + $0x4] ss:$16 sps:$4 sm:$0xff]   ;;  %v998_v39 = vld [vmem:[%s1152_s12 + $0x8] ss:$16 sps:$4 sm:$0xff]  }
  0x3a   : > { %890 = vmatprep.subr.bf16.mxu1 %v976_v18  ;;  %v1000_v40 = vld [vmem:[%s1152_s12 + $0xc] ss:$16 sps:$4 sm:$0xff]   ;;  %607 = vmatprep.mubr.bf16.mxu0 %v997_v38  ;;  %v293_v48 = vld [vmem:[#allocation2] sm:$0xff] }
  0x3b   : > { %648 = vmatprep.mubr.bf16.mxu1 %v1000_v40  ;;  %v294_v56 = vld [vmem:[#allocation2 + $0x8] sm:$0xff] }
  0x3c   : > { %869 = vmatpush3.bf16.msra.mxu0 %v977_v19 }
  0x3d   : > { %891 = vmatpush3.bf16.msra.mxu1 %v978_v20  ;;  %870 = vmatprep.subr.bf16.mxu0 %v979_v21 }
  0x3e   : > { %892 = vmatprep.subr.bf16.mxu1 %v980_v22 }
  0x40   : > { %871 = vmatpush3.bf16.msra.mxu0 %v981_v23 }
  0x41   : > { %893 = vmatpush3.bf16.msra.mxu1 %v982_v24  ;;  %872 = vmatprep.subr.bf16.mxu0 %v983_v25 }
  0x42   : > { %894 = vmatprep.subr.bf16.mxu1 %v984_v26 }
  0x44   : > { %873 = vmatpush3.bf16.msra.mxu0 %v985_v27 }
  0x45   : > { %895 = vmatpush3.bf16.msra.mxu1 %v986_v28  ;;  %874 = vmatprep.subr.bf16.mxu0 %v987_v29 }
  0x46   : > { %896 = vmatprep.subr.bf16.mxu1 %v988_v30 }
  0x48   : > { %875 = vmatpush3.bf16.msra.mxu0 %v989_v31 }
  0x49   : > { %897 = vmatpush3.bf16.msra.mxu1 %v990_v32  ;;  %876 = vmatprep.subr.bf16.mxu0 %v991_v33 }
  0x4a   : > { %898 = vmatprep.subr.bf16.mxu1 %v992_v34 }
  0x4c   : > { %877 = vmatpush3.bf16.msra.mxu0 %v993_v35 }
  0x4d   : > { %899 = vmatpush3.bf16.msra.mxu1 %v994_v36 }
  0x4f   : > { %608 = vmatmul.mubr.bf16.vlgmr.msra.gmra.mxu0 %v995_v37 }
  0x50   : > { %649 = vmatmul.mubr.bf16.vlgmr.msra.gmra.mxu1 %v998_v39 }
 0x10f   : > { %v878_v41 = vpop.f32.mrf.mxu0 }
 0x110   : > { %v900_v42 = vpop.f32.mrf.mxu1 }
 0x111   : > { %v879_v43 = vpop.f32.mrf.mxu0 }
 0x112   : > { %v880_v44 = vadd.f32 %v879_v43, %v878_v41  ;;  %v901_v45 = vpop.f32.mrf.mxu1 }
 0x113   : > { %v902_v46 = vadd.f32 %v901_v45, %v900_v42  ;;  %v881_v47 = vpop.f32.mrf.mxu0 }
 0x114   : > { %v903_v49 = vpop.f32.mrf.mxu1 }
 0x115   : > { %v651_v50 = vadd.f32 %v902_v46, %v880_v44  ;;  %v882_v51 = vpop.f32.mrf.mxu0 }
 0x116   : > { %v883_v52 = vadd.f32 %v882_v51, %v881_v47  ;;  %v904_v53 = vpop.f32.mrf.mxu1 }
 0x117   : > { %v657_v54 = vadd.f32 %v651_v50, %v293_v48  ;;  %v905_v55 = vadd.f32 %v904_v53, %v903_v49 }
 0x119   : > { %659 = vst [vmem:[#allocation2] sm:$0xff] %v657_v54  ;;  %v654_v57 = vadd.f32 %v905_v55, %v883_v52  ;;  %664 = sbr.rel (%p850_p13) target bundleno = 298 (0x12a), region = 63 }
 0x11b   : > { %v658_v58 = vadd.f32 %v654_v57, %v294_v56 }
 0x11d   : > { %660 = vst [vmem:[#allocation2 + $0x8] sm:$0xff] %v658_v58 }
 0x120   : > { %v665_v59 = vld [vmem:[#allocation2] sm:$0xff] }
 0x121   : > { %v667_v61 = vmax.f32 %v665_v59, 0.0 }
 0x124   : > { %v666_v60 = vld [vmem:[#allocation2 + $0x8] sm:$0xff] }
 0x125   : > { %v668_v62 = vmax.f32 %v666_v60, 0.0 }
 0x127   : > { %v860_v63 = vpack.c.bf16 %v668_v62, %v667_v61 }
 0x129   : > { %861 = vst [vmem:[%s1150_s30] sm:$0xff] %v860_v63  }
 0x12a PF: > { %s13_s18 = sadd.s32 1, %s1055_s18   ;;  %s1221_s12 = smov %s1035_s13 }
 0x12b   : > { %p10_p0 = scmp.ge.s32.totalorder %s13_s18, 20   ;;  %s1222_s13 = smov %s1128_s25 }
 0x12c   : > { %s1223_s14 = smov %s1047_s16  ;;  %s1224_s15 = smov %s1051_s17 }
 0x12d   : > { %s1225_s16 = smov %s1228_s19  ;;  %s1226_s17 = smov %s1232_s20 }
 0x12e   :  { %12 = sbr.rel (!%p10_p0) target bundleno = 4 (0x4), region = 104 }

// kernel: generator_forward.15
= control target key start
LH: loop header
LB: loop body
LE: loop exit
PB: predicated region body
PF: predicated region fallthrough
CT: control target
= control target key end

     0   :  { %s1645_s12 = smov 0   ;;  %s1647_s13 = smov 0   ;;  %s1957_s0 = inlined_call_operand.vmem [shape: bf16[32,512], index: 0, kind: input, shape index: {}]   ;;  %s1958_s1 = inlined_call_operand.vmem [shape: bf16[512,512], index: 1, kind: input, shape index: {}]   ;;  %s1959_s2 = inlined_call_operand.vmem [shape: f32[1,512], index: 2, kind: input, shape index: {}]   ;;  %s1960_s3 = inlined_call_operand.vmem [shape: bf16[32,512], index: 3, kind: output, shape index: {}]  }
   0x1   :  { %s1649_s14 = smov 0   ;;  %s1651_s15 = smov 0  }
   0x2   :  { %s1653_s16 = smov 0  }
   0x3 LB: > { %s28_s17 = sadd.s32 1, %s1619_s15  ;;  %s1338_s18 = sadd.s32 4294967295, %s1623_s16   ;;  %s1623_s16 = sphi %s1653_s16, %s13_s16   ;;  %s1619_s15 = sphi %s1651_s15, %s1965_s15   ;;  %s1615_s14 = sphi %s1649_s14, %s1964_s14   ;;  %s1611_s13 = sphi %s1647_s13, %s1963_s13   ;;  %s1607_s12 = sphi %s1645_s12, %s1962_s12  }
   0x4   : > { %p30_p0 = scmp.ge.s32.totalorder %s28_s17, 2  ;;  %p76_p1 = scmp.ne.s32.totalorder %s1611_s13, %s1607_s12 }
   0x5   : > { %p77_p2 = scmp.eq.s32.totalorder %s1623_s16, 0  ;;  %p134_p4 = scmp.eq.s32.totalorder %s1338_s18, 1 }
   0x6   : > { %s1967_s17 = smov (%p30_p0, %s28_s17), 0  ;;  %s69_s20 = sadd.s32 1, %s1611_s13 }
   0x7   : > { %p78_p3 = por %p77_p2, %p76_p1  ;;  %s65_s19 = ssub.s32 %s1619_s15, %s1967_s17 }
   0x8   : > { %p67_p5 = scmp.eq.s32.totalorder %s65_s19, 0  ;;  %p1680_p6 = por %p134_p4, %p76_p1 }
   0x9   : > { %p1342_p7 = scmp.ge.s32.totalorder %s1623_s16, 2 }
   0xa   : > { %s1685_s22 = scalar_select %p67_p5, %s1611_s13, %s69_s20  }
   0xb   : > { %171 = sbr.rel (%p1342_p7) target bundleno = 52 (0x34), region = 20 }
  0x10   : > { %174 = sbr.rel (!%p78_p3) target bundleno = 52 (0x34), region = 24  ;;  %s176_s23 = sand.u32 (%p78_p3), 1, %s1611_s13  }
  0x11   : > { %s1431_s24 = sshll.u32 (%p78_p3), %s1619_s15, 3  ;;  %s1343_s25 = sshll.u32 (%p78_p3), %s176_s23, 9 }
  0x12   : > { %s1693_s28 = scalar_lea.vmem (%p78_p3), %s1958_s1, %s1431_s24  ;;  %s1698_s29 = scalar_lea.vmem (%p78_p3), [#allocation3], %s1343_s25 }
  0x13   : > { %v339_v0 = vld [vmem:[%s1693_s28] sm:$0xff] (%p78_p3)  ;;  %v341_v1 = vld [vmem:[%s1693_s28 + $0x10] sm:$0xff] (%p78_p3) }
  0x14   : > { %v343_v2 = vld [vmem:[%s1693_s28 + $0x20] sm:$0xff] (%p78_p3)  ;;  %340 = vst [vmem:[%s1698_s29] sm:$0xff] (%p78_p3), %v339_v0  ;;  %342 = vst [vmem:[%s1698_s29 + $0x8] sm:$0xff] (%p78_p3), %v341_v1  ;;  %v345_v3 = vld [vmem:[%s1693_s28 + $0x30] sm:$0xff] (%p78_p3) }
  0x15   : > { %344 = vst [vmem:[%s1698_s29 + $0x10] sm:$0xff] %v343_v2  ;;  %v347_v4 = vld [vmem:[%s1693_s28 + $0x40] sm:$0xff]  ;;  %v349_v5 = vld [vmem:[%s1693_s28 + $0x50] sm:$0xff]  ;;  %346 = vst [vmem:[%s1698_s29 + $0x18] sm:$0xff] %v345_v3 }
  0x16   : > { %348 = vst [vmem:[%s1698_s29 + $0x20] sm:$0xff] %v347_v4  ;;  %350 = vst [vmem:[%s1698_s29 + $0x28] sm:$0xff] %v349_v5  ;;  %v351_v6 = vld [vmem:[%s1693_s28 + $0x60] sm:$0xff]  ;;  %v353_v7 = vld [vmem:[%s1693_s28 + $0x70] sm:$0xff] }
  0x17   : > { %v355_v8 = vld [vmem:[%s1693_s28 + $0x80] sm:$0xff]  ;;  %352 = vst [vmem:[%s1698_s29 + $0x30] sm:$0xff] %v351_v6  ;;  %354 = vst [vmem:[%s1698_s29 + $0x38] sm:$0xff] %v353_v7  ;;  %v357_v9 = vld [vmem:[%s1693_s28 + $0x90] sm:$0xff] }
  0x18   : > { %356 = vst [vmem:[%s1698_s29 + $0x40] sm:$0xff] %v355_v8  ;;  %v359_v10 = vld [vmem:[%s1693_s28 + $0xa0] sm:$0xff]  ;;  %v361_v11 = vld [vmem:[%s1693_s28 + $0xb0] sm:$0xff]  ;;  %358 = vst [vmem:[%s1698_s29 + $0x48] sm:$0xff] %v357_v9 }
  0x19   : > { %360 = vst [vmem:[%s1698_s29 + $0x50] sm:$0xff] %v359_v10  ;;  %362 = vst [vmem:[%s1698_s29 + $0x58] sm:$0xff] %v361_v11  ;;  %v363_v12 = vld [vmem:[%s1693_s28 + $0xc0] sm:$0xff]  ;;  %v365_v13 = vld [vmem:[%s1693_s28 + $0xd0] sm:$0xff] }
  0x1a   : > { %v367_v14 = vld [vmem:[%s1693_s28 + $0xe0] sm:$0xff]  ;;  %364 = vst [vmem:[%s1698_s29 + $0x60] sm:$0xff] %v363_v12  ;;  %366 = vst [vmem:[%s1698_s29 + $0x68] sm:$0xff] %v365_v13  ;;  %v369_v15 = vld [vmem:[%s1693_s28 + $0xf0] sm:$0xff] }
  0x1b   : > { %368 = vst [vmem:[%s1698_s29 + $0x70] sm:$0xff] %v367_v14  ;;  %v371_v16 = vld [vmem:[%s1693_s28 + $0x100] sm:$0xff]  ;;  %v373_v17 = vld [vmem:[%s1693_s28 + $0x110] sm:$0xff]  ;;  %370 = vst [vmem:[%s1698_s29 + $0x78] sm:$0xff] %v369_v15 }
  0x1c   : > { %372 = vst [vmem:[%s1698_s29 + $0x80] sm:$0xff] %v371_v16  ;;  %374 = vst [vmem:[%s1698_s29 + $0x88] sm:$0xff] %v373_v17  ;;  %v375_v18 = vld [vmem:[%s1693_s28 + $0x120] sm:$0xff]  ;;  %v377_v19 = vld [vmem:[%s1693_s28 + $0x130] sm:$0xff] }
  0x1d   : > { %v379_v20 = vld [vmem:[%s1693_s28 + $0x140] sm:$0xff]  ;;  %376 = vst [vmem:[%s1698_s29 + $0x90] sm:$0xff] %v375_v18  ;;  %378 = vst [vmem:[%s1698_s29 + $0x98] sm:$0xff] %v377_v19  ;;  %v381_v21 = vld [vmem:[%s1693_s28 + $0x150] sm:$0xff] }
  0x1e   : > { %380 = vst [vmem:[%s1698_s29 + $0xa0] sm:$0xff] %v379_v20  ;;  %v383_v22 = vld [vmem:[%s1693_s28 + $0x160] sm:$0xff]  ;;  %v385_v23 = vld [vmem:[%s1693_s28 + $0x170] sm:$0xff]  ;;  %382 = vst [vmem:[%s1698_s29 + $0xa8] sm:$0xff] %v381_v21 }
  0x1f   : > { %384 = vst [vmem:[%s1698_s29 + $0xb0] sm:$0xff] %v383_v22  ;;  %386 = vst [vmem:[%s1698_s29 + $0xb8] sm:$0xff] %v385_v23  ;;  %v387_v24 = vld [vmem:[%s1693_s28 + $0x180] sm:$0xff]  ;;  %v389_v25 = vld [vmem:[%s1693_s28 + $0x190] sm:$0xff] }
  0x20   : > { %v391_v26 = vld [vmem:[%s1693_s28 + $0x1a0] sm:$0xff]  ;;  %388 = vst [vmem:[%s1698_s29 + $0xc0] sm:$0xff] %v387_v24  ;;  %390 = vst [vmem:[%s1698_s29 + $0xc8] sm:$0xff] %v389_v25  ;;  %v393_v27 = vld [vmem:[%s1693_s28 + $0x1b0] sm:$0xff] }
  0x21   : > { %392 = vst [vmem:[%s1698_s29 + $0xd0] sm:$0xff] %v391_v26  ;;  %v395_v28 = vld [vmem:[%s1693_s28 + $0x1c0] sm:$0xff]  ;;  %v397_v29 = vld [vmem:[%s1693_s28 + $0x1d0] sm:$0xff]  ;;  %394 = vst [vmem:[%s1698_s29 + $0xd8] sm:$0xff] %v393_v27 }
  0x22   : > { %396 = vst [vmem:[%s1698_s29 + $0xe0] sm:$0xff] %v395_v28  ;;  %398 = vst [vmem:[%s1698_s29 + $0xe8] sm:$0xff] %v397_v29  ;;  %v399_v30 = vld [vmem:[%s1693_s28 + $0x1e0] sm:$0xff]  ;;  %v401_v31 = vld [vmem:[%s1693_s28 + $0x1f0] sm:$0xff] }
  0x23   : > { %v403_v32 = vld [vmem:[%s1693_s28 + $0x200] sm:$0xff]  ;;  %400 = vst [vmem:[%s1698_s29 + $0xf0] sm:$0xff] %v399_v30  ;;  %402 = vst [vmem:[%s1698_s29 + $0xf8] sm:$0xff] %v401_v31  ;;  %v405_v33 = vld [vmem:[%s1693_s28 + $0x210] sm:$0xff] }
  0x24   : > { %404 = vst [vmem:[%s1698_s29 + $0x100] sm:$0xff] %v403_v32  ;;  %v407_v34 = vld [vmem:[%s1693_s28 + $0x220] sm:$0xff]  ;;  %v409_v35 = vld [vmem:[%s1693_s28 + $0x230] sm:$0xff]  ;;  %406 = vst [vmem:[%s1698_s29 + $0x108] sm:$0xff] %v405_v33 }
  0x25   : > { %408 = vst [vmem:[%s1698_s29 + $0x110] sm:$0xff] %v407_v34  ;;  %410 = vst [vmem:[%s1698_s29 + $0x118] sm:$0xff] %v409_v35  ;;  %v411_v36 = vld [vmem:[%s1693_s28 + $0x240] sm:$0xff]  ;;  %v413_v37 = vld [vmem:[%s1693_s28 + $0x250] sm:$0xff] }
  0x26   : > { %v415_v38 = vld [vmem:[%s1693_s28 + $0x260] sm:$0xff]  ;;  %412 = vst [vmem:[%s1698_s29 + $0x120] sm:$0xff] %v411_v36  ;;  %414 = vst [vmem:[%s1698_s29 + $0x128] sm:$0xff] %v413_v37  ;;  %v417_v39 = vld [vmem:[%s1693_s28 + $0x270] sm:$0xff] }
  0x27   : > { %416 = vst [vmem:[%s1698_s29 + $0x130] sm:$0xff] %v415_v38  ;;  %v419_v40 = vld [vmem:[%s1693_s28 + $0x280] sm:$0xff]  ;;  %v421_v41 = vld [vmem:[%s1693_s28 + $0x290] sm:$0xff]  ;;  %418 = vst [vmem:[%s1698_s29 + $0x138] sm:$0xff] %v417_v39 }
  0x28   : > { %420 = vst [vmem:[%s1698_s29 + $0x140] sm:$0xff] %v419_v40  ;;  %422 = vst [vmem:[%s1698_s29 + $0x148] sm:$0xff] %v421_v41  ;;  %v423_v42 = vld [vmem:[%s1693_s28 + $0x2a0] sm:$0xff]  ;;  %v425_v43 = vld [vmem:[%s1693_s28 + $0x2b0] sm:$0xff] }
  0x29   : > { %v427_v44 = vld [vmem:[%s1693_s28 + $0x2c0] sm:$0xff]  ;;  %424 = vst [vmem:[%s1698_s29 + $0x150] sm:$0xff] %v423_v42  ;;  %426 = vst [vmem:[%s1698_s29 + $0x158] sm:$0xff] %v425_v43  ;;  %v429_v45 = vld [vmem:[%s1693_s28 + $0x2d0] sm:$0xff] }
  0x2a   : > { %428 = vst [vmem:[%s1698_s29 + $0x160] sm:$0xff] %v427_v44  ;;  %v431_v46 = vld [vmem:[%s1693_s28 + $0x2e0] sm:$0xff]  ;;  %v433_v47 = vld [vmem:[%s1693_s28 + $0x2f0] sm:$0xff]  ;;  %430 = vst [vmem:[%s1698_s29 + $0x168] sm:$0xff] %v429_v45 }
  0x2b   : > { %432 = vst [vmem:[%s1698_s29 + $0x170] sm:$0xff] %v431_v46  ;;  %434 = vst [vmem:[%s1698_s29 + $0x178] sm:$0xff] %v433_v47  ;;  %v435_v48 = vld [vmem:[%s1693_s28 + $0x300] sm:$0xff]  ;;  %v437_v49 = vld [vmem:[%s1693_s28 + $0x310] sm:$0xff] }
  0x2c   : > { %v439_v50 = vld [vmem:[%s1693_s28 + $0x320] sm:$0xff]  ;;  %436 = vst [vmem:[%s1698_s29 + $0x180] sm:$0xff] %v435_v48  ;;  %438 = vst [vmem:[%s1698_s29 + $0x188] sm:$0xff] %v437_v49  ;;  %v441_v51 = vld [vmem:[%s1693_s28 + $0x330] sm:$0xff] }
  0x2d   : > { %440 = vst [vmem:[%s1698_s29 + $0x190] sm:$0xff] %v439_v50  ;;  %v443_v52 = vld [vmem:[%s1693_s28 + $0x340] sm:$0xff]  ;;  %v445_v53 = vld [vmem:[%s1693_s28 + $0x350] sm:$0xff]  ;;  %442 = vst [vmem:[%s1698_s29 + $0x198] sm:$0xff] %v441_v51 }
  0x2e   : > { %444 = vst [vmem:[%s1698_s29 + $0x1a0] sm:$0xff] %v443_v52  ;;  %446 = vst [vmem:[%s1698_s29 + $0x1a8] sm:$0xff] %v445_v53  ;;  %v447_v54 = vld [vmem:[%s1693_s28 + $0x360] sm:$0xff]  ;;  %v449_v55 = vld [vmem:[%s1693_s28 + $0x370] sm:$0xff] }
  0x2f   : > { %v451_v56 = vld [vmem:[%s1693_s28 + $0x380] sm:$0xff]  ;;  %448 = vst [vmem:[%s1698_s29 + $0x1b0] sm:$0xff] %v447_v54  ;;  %450 = vst [vmem:[%s1698_s29 + $0x1b8] sm:$0xff] %v449_v55  ;;  %v453_v57 = vld [vmem:[%s1693_s28 + $0x390] sm:$0xff] }
  0x30   : > { %452 = vst [vmem:[%s1698_s29 + $0x1c0] sm:$0xff] %v451_v56  ;;  %v455_v58 = vld [vmem:[%s1693_s28 + $0x3a0] sm:$0xff]  ;;  %v457_v59 = vld [vmem:[%s1693_s28 + $0x3b0] sm:$0xff]  ;;  %454 = vst [vmem:[%s1698_s29 + $0x1c8] sm:$0xff] %v453_v57 }
  0x31   : > { %456 = vst [vmem:[%s1698_s29 + $0x1d0] sm:$0xff] %v455_v58  ;;  %458 = vst [vmem:[%s1698_s29 + $0x1d8] sm:$0xff] %v457_v59  ;;  %v459_v60 = vld [vmem:[%s1693_s28 + $0x3c0] sm:$0xff]  ;;  %v461_v61 = vld [vmem:[%s1693_s28 + $0x3d0] sm:$0xff] }
  0x32   : > { %v463_v62 = vld [vmem:[%s1693_s28 + $0x3e0] sm:$0xff]  ;;  %460 = vst [vmem:[%s1698_s29 + $0x1e0] sm:$0xff] %v459_v60  ;;  %462 = vst [vmem:[%s1698_s29 + $0x1e8] sm:$0xff] %v461_v61  ;;  %v465_v63 = vld [vmem:[%s1693_s28 + $0x3f0] sm:$0xff] }
  0x33   : > { %464 = vst [vmem:[%s1698_s29 + $0x1f0] sm:$0xff] %v463_v62  ;;  %466 = vst [vmem:[%s1698_s29 + $0x1f8] sm:$0xff] %v465_v63 }
  0x34 PF: > { %p1346_p8 = scmp.ge.s32.totalorder %s1623_s16, 1  ;;  %p479_p9 = scmp.lt.s32.totalorder %s1623_s16, 3 }
  0x36   : > { %p480_p10 = pnand %p1346_p8, %p479_p9 }
  0x37   : > { %s486_s30 = sand.u32 (!%p480_p10), 1, %s1607_s12  }
  0x38   : > { %483 = sbr.rel (%p480_p10) target bundleno = 352 (0x160), region = 66  ;;  %s1347_s4 = sshll.u32 (!%p480_p10), %s486_s30, 9 }
  0x39   : > { %s1836_s9 = scalar_lea.vmem (!%p480_p10), [#allocation3], %s1347_s4  ;;  %s1349_s4 = sshll.u32 (!%p480_p10), %s1615_s14, 1 }
  0x3a   : > { %p537_p11 = scmp.lt.s32.totalorder (!%p480_p10), %s1349_s4, 3  ;;  %s1348_s8 = sshll.u32 (!%p480_p10), %s486_s30, 5 }
  0x3d   : > { %v1575_v0 = vld [vmem:[%s1957_s0 + $0x4] ss:$16 sps:$4 sm:$0xff]   ;;  %v1578_v1 = vld [vmem:[%s1957_s0 + $0xc] ss:$16 sps:$4 sm:$0xff]   ;;  %v1481_v4 = vld [vmem:[%s1836_s9 + $0x70] ss:$8 sps:$4 sm:$0xff]  }
  0x3e   : > { %v1477_v2 = vld [vmem:[%s1836_s9 + $0x74] ss:$8 sps:$4 sm:$0xff]   ;;  %1039 = vmatprep.mubr.bf16.mxu0 %v1575_v0  ;;  %1092 = vmatprep.mubr.bf16.mxu1 %v1578_v1  ;;  %v1482_v5 = vld [vmem:[%s1836_s9 + $0x170] ss:$8 sps:$4 sm:$0xff]   ;;  %v1483_v6 = vld [vmem:[%s1836_s9 + $0x64] ss:$8 sps:$4 sm:$0xff]  }
  0x3f   : > { %v1479_v3 = vld [vmem:[%s1836_s9 + $0x174] ss:$8 sps:$4 sm:$0xff]   ;;  %1007 = vmatprep.subr.bf16.mxu0 %v1477_v2  ;;  %v1485_v7 = vld [vmem:[%s1836_s9 + $0x164] ss:$8 sps:$4 sm:$0xff]   ;;  %v1487_v8 = vld [vmem:[%s1836_s9 + $0x60] ss:$8 sps:$4 sm:$0xff]  }
  0x40   : > { %1060 = vmatprep.subr.bf16.mxu1 %v1479_v3  ;;  %1008 = vmatpush1.bf16.msra.mxu0 %v1481_v4  ;;  %v1488_v9 = vld [vmem:[%s1836_s9 + $0x160] ss:$8 sps:$4 sm:$0xff]   ;;  %v1489_v10 = vld [vmem:[%s1836_s9 + $0x54] ss:$8 sps:$4 sm:$0xff]   ;;  %v1493_v12 = vld [vmem:[%s1836_s9 + $0x50] ss:$8 sps:$4 sm:$0xff]  }
  0x41   : > { %1061 = vmatpush1.bf16.msra.mxu1 %v1482_v5  ;;  %1009 = vmatprep.subr.bf16.mxu0 %v1483_v6  ;;  %v1491_v11 = vld [vmem:[%s1836_s9 + $0x154] ss:$8 sps:$4 sm:$0xff]   ;;  %v1494_v13 = vld [vmem:[%s1836_s9 + $0x150] ss:$8 sps:$4 sm:$0xff]   ;;  %v1495_v14 = vld [vmem:[%s1836_s9 + $0x44] ss:$8 sps:$4 sm:$0xff]  }
  0x42   : > { %1062 = vmatprep.subr.bf16.mxu1 %v1485_v7  ;;  %v1497_v15 = vld [vmem:[%s1836_s9 + $0x144] ss:$8 sps:$4 sm:$0xff]   ;;  %v1499_v16 = vld [vmem:[%s1836_s9 + $0x40] ss:$8 sps:$4 sm:$0xff]   ;;  %v1501_v18 = vld [vmem:[%s1836_s9 + $0x34] ss:$8 sps:$4 sm:$0xff]  }
  0x43   : > { %v1500_v17 = vld [vmem:[%s1836_s9 + $0x140] ss:$8 sps:$4 sm:$0xff]   ;;  %v1503_v19 = vld [vmem:[%s1836_s9 + $0x134] ss:$8 sps:$4 sm:$0xff]   ;;  %v1505_v20 = vld [vmem:[%s1836_s9 + $0x30] ss:$8 sps:$4 sm:$0xff]  }
  0x44   : > { %1010 = vmatpush1.bf16.msra.mxu0 %v1487_v8  ;;  %v1506_v21 = vld [vmem:[%s1836_s9 + $0x130] ss:$8 sps:$4 sm:$0xff]   ;;  %v1507_v22 = vld [vmem:[%s1836_s9 + $0x24] ss:$8 sps:$4 sm:$0xff]   ;;  %v1511_v24 = vld [vmem:[%s1836_s9 + $0x20] ss:$8 sps:$4 sm:$0xff]   ;;  %v549_v8 = vlaneseq }
  0x45   : > { %1063 = vmatpush1.bf16.msra.mxu1 %v1488_v9  ;;  %1011 = vmatprep.subr.bf16.mxu0 %v1489_v10  ;;  %v1509_v23 = vld [vmem:[%s1836_s9 + $0x124] ss:$8 sps:$4 sm:$0xff]   ;;  %v1512_v25 = vld [vmem:[%s1836_s9 + $0x120] ss:$8 sps:$4 sm:$0xff]   ;;  %v1513_v26 = vld [vmem:[%s1836_s9 + $0x14] ss:$8 sps:$4 sm:$0xff]  }
  0x46   : > { %1064 = vmatprep.subr.bf16.mxu1 %v1491_v11  ;;  %v1515_v27 = vld [vmem:[%s1836_s9 + $0x114] ss:$8 sps:$4 sm:$0xff]   ;;  %v1517_v28 = vld [vmem:[%s1836_s9 + $0x10] ss:$8 sps:$4 sm:$0xff]   ;;  %v1519_v30 = vld [vmem:[%s1836_s9 + $0x4] ss:$8 sps:$4 sm:$0xff]  }
  0x47   : > { %v1518_v29 = vld [vmem:[%s1836_s9 + $0x110] ss:$8 sps:$4 sm:$0xff]   ;;  %v1521_v31 = vld [vmem:[%s1836_s9 + $0x104] ss:$8 sps:$4 sm:$0xff]   ;;  %v1523_v32 = vld [vmem:[%s1836_s9] ss:$8 sps:$4 sm:$0xff]  }
  0x48   : > { %1012 = vmatpush1.bf16.msra.mxu0 %v1493_v12  ;;  %v1524_v33 = vld [vmem:[%s1836_s9 + $0x100] ss:$8 sps:$4 sm:$0xff]   ;;  %v1525_v34 = vld [vmem:[%s1836_s9 + $0xf4] ss:$8 sps:$4 sm:$0xff]   ;;  %v1529_v36 = vld [vmem:[%s1836_s9 + $0xf0] ss:$8 sps:$4 sm:$0xff]  }
  0x49   : > { %1065 = vmatpush1.bf16.msra.mxu1 %v1494_v13  ;;  %1013 = vmatprep.subr.bf16.mxu0 %v1495_v14  ;;  %v1527_v35 = vld [vmem:[%s1836_s9 + $0x1f4] ss:$8 sps:$4 sm:$0xff]   ;;  %v1530_v37 = vld [vmem:[%s1836_s9 + $0x1f0] ss:$8 sps:$4 sm:$0xff]   ;;  %v1531_v38 = vld [vmem:[%s1836_s9 + $0xe4] ss:$8 sps:$4 sm:$0xff]  }
  0x4a   : > { %1066 = vmatprep.subr.bf16.mxu1 %v1497_v15  ;;  %v1533_v39 = vld [vmem:[%s1836_s9 + $0x1e4] ss:$8 sps:$4 sm:$0xff]   ;;  %v1535_v40 = vld [vmem:[%s1836_s9 + $0xe0] ss:$8 sps:$4 sm:$0xff]   ;;  %v1537_v42 = vld [vmem:[%s1836_s9 + $0xd4] ss:$8 sps:$4 sm:$0xff]  }
  0x4b   : > { %v1536_v41 = vld [vmem:[%s1836_s9 + $0x1e0] ss:$8 sps:$4 sm:$0xff]   ;;  %v1539_v43 = vld [vmem:[%s1836_s9 + $0x1d4] ss:$8 sps:$4 sm:$0xff]   ;;  %v1541_v44 = vld [vmem:[%s1836_s9 + $0xd0] ss:$8 sps:$4 sm:$0xff]  }
  0x4c   : > { %1014 = vmatpush1.bf16.msra.mxu0 %v1499_v16  ;;  %v1542_v45 = vld [vmem:[%s1836_s9 + $0x1d0] ss:$8 sps:$4 sm:$0xff]   ;;  %v1543_v46 = vld [vmem:[%s1836_s9 + $0xc4] ss:$8 sps:$4 sm:$0xff]   ;;  %v1547_v48 = vld [vmem:[%s1836_s9 + $0xc0] ss:$8 sps:$4 sm:$0xff]  }
  0x4d   : > { %1067 = vmatpush1.bf16.msra.mxu1 %v1500_v17  ;;  %1015 = vmatprep.subr.bf16.mxu0 %v1501_v18  ;;  %v1545_v47 = vld [vmem:[%s1836_s9 + $0x1c4] ss:$8 sps:$4 sm:$0xff]   ;;  %v1548_v49 = vld [vmem:[%s1836_s9 + $0x1c0] ss:$8 sps:$4 sm:$0xff]   ;;  %v1549_v50 = vld [vmem:[%s1836_s9 + $0xb4] ss:$8 sps:$4 sm:$0xff]  }
  0x4e   : > { %1068 = vmatprep.subr.bf16.mxu1 %v1503_v19  ;;  %v1551_v51 = vld [vmem:[%s1836_s9 + $0x1b4] ss:$8 sps:$4 sm:$0xff]   ;;  %v1553_v52 = vld [vmem:[%s1836_s9 + $0xb0] ss:$8 sps:$4 sm:$0xff]   ;;  %v1555_v54 = vld [vmem:[%s1836_s9 + $0xa4] ss:$8 sps:$4 sm:$0xff]  }
  0x4f   : > { %v1554_v53 = vld [vmem:[%s1836_s9 + $0x1b0] ss:$8 sps:$4 sm:$0xff]   ;;  %v1557_v55 = vld [vmem:[%s1836_s9 + $0x1a4] ss:$8 sps:$4 sm:$0xff]   ;;  %v1559_v56 = vld [vmem:[%s1836_s9 + $0xa0] ss:$8 sps:$4 sm:$0xff]  }
  0x50   : > { %1016 = vmatpush1.bf16.msra.mxu0 %v1505_v20  ;;  %v1560_v57 = vld [vmem:[%s1836_s9 + $0x1a0] ss:$8 sps:$4 sm:$0xff]   ;;  %v1561_v58 = vld [vmem:[%s1836_s9 + $0x94] ss:$8 sps:$4 sm:$0xff]   ;;  %v1565_v60 = vld [vmem:[%s1836_s9 + $0x90] ss:$8 sps:$4 sm:$0xff]  }
  0x51   : > { %1069 = vmatpush1.bf16.msra.mxu1 %v1506_v21  ;;  %1017 = vmatprep.subr.bf16.mxu0 %v1507_v22  ;;  %v1563_v59 = vld [vmem:[%s1836_s9 + $0x194] ss:$8 sps:$4 sm:$0xff]   ;;  %v1566_v61 = vld [vmem:[%s1836_s9 + $0x190] ss:$8 sps:$4 sm:$0xff]   ;;  %v1567_v62 = vld [vmem:[%s1836_s9 + $0x84] ss:$8 sps:$4 sm:$0xff]  }
  0x52   : > { %1070 = vmatprep.subr.bf16.mxu1 %v1509_v23  ;;  %v1569_v63 = vld [vmem:[%s1836_s9 + $0x184] ss:$8 sps:$4 sm:$0xff]   ;;  %v1571_v0 = vld [vmem:[%s1836_s9 + $0x80] ss:$8 sps:$4 sm:$0xff]   ;;  %s1969_s4 = smov (!%p537_p11, %s1349_s4), 3  ;;  %v550_v9 = vshrl.u32 %v549_v8, 7 }
  0x53   : > { %v1572_v1 = vld [vmem:[%s1836_s9 + $0x180] ss:$8 sps:$4 sm:$0xff]   ;;  %v1579_v4 = vld [vmem:[%s1957_s0 + $0x24] ss:$16 sps:$4 sm:$0xff]   ;;  %v1581_v5 = vld [vmem:[%s1957_s0 + $0x2c] ss:$16 sps:$4 sm:$0xff]   ;;  %s539_s7 = scalar_lea.vmem %s1959_s2, %s1969_s4 }
  0x54   : > { %1018 = vmatpush1.bf16.msra.mxu0 %v1511_v24  ;;  %v1573_v2 = vld [vmem:[%s1957_s0] ss:$16 sps:$4 sm:$0xff]   ;;  %v1576_v3 = vld [vmem:[%s1957_s0 + $0x8] ss:$16 sps:$4 sm:$0xff]   ;;  %v551_v10 = vsub.s32 0, %v550_v9  ;;  %v555_v12 = vsub.s32 1, %v550_v9 }
  0x55   : > { %1071 = vmatpush1.bf16.msra.mxu1 %v1512_v25  ;;  %1019 = vmatprep.subr.bf16.mxu0 %v1513_v26  ;;  %v1583_v6 = vld [vmem:[%s1957_s0 + $0x20] ss:$16 sps:$4 sm:$0xff]   ;;  %v1584_v7 = vld [vmem:[%s1957_s0 + $0x28] ss:$16 sps:$4 sm:$0xff]   ;;  %s1926_s9 = scalar_lea.vmem [#allocation4], %s1348_s8  ;;  %s1436_s12 = sshll.u32 (%p1680_p6), %s1615_s14, 3 }
  0x56   : > { %1072 = vmatprep.subr.bf16.mxu1 %v1515_v27  ;;  %v547_v11 = vld [vmem:[%s539_s7] sm:$0x3]  ;;  %s1188_s11 = scalar_lea.vmem (%p1680_p6), %s1960_s3, %s1436_s12 }
  0x57   : > { %v552_v13 = vrot.slane %v547_v11, %v551_v10  ;;  %v556_v17 = vrot.slane %v547_v11, %v555_v12 }
  0x58   : > { %1020 = vmatpush1.bf16.msra.mxu0 %v1517_v28 }
  0x59   : > { %1073 = vmatpush1.bf16.msra.mxu1 %v1518_v29  ;;  %1021 = vmatprep.subr.bf16.mxu0 %v1519_v30 }
  0x5a   : > { %1074 = vmatprep.subr.bf16.mxu1 %v1521_v31 }
  0x5c   : > { %1022 = vmatpush1.bf16.msra.mxu0 %v1523_v32 }
  0x5d   : > { %1075 = vmatpush1.bf16.msra.mxu1 %v1524_v33  ;;  %1023 = vmatprep.subr.bf16.mxu0 %v1525_v34 }
  0x5e   : > { %1076 = vmatprep.subr.bf16.mxu1 %v1527_v35 }
  0x60   : > { %1024 = vmatpush2.bf16.msra.mxu0 %v1529_v36 }
  0x61   : > { %1077 = vmatpush2.bf16.msra.mxu1 %v1530_v37  ;;  %1025 = vmatprep.subr.bf16.mxu0 %v1531_v38 }
  0x62   : > { %1078 = vmatprep.subr.bf16.mxu1 %v1533_v39 }
  0x64   : > { %1026 = vmatpush2.bf16.msra.mxu0 %v1535_v40 }
  0x65   : > { %1079 = vmatpush2.bf16.msra.mxu1 %v1536_v41  ;;  %1027 = vmatprep.subr.bf16.mxu0 %v1537_v42 }
  0x66   : > { %1080 = vmatprep.subr.bf16.mxu1 %v1539_v43 }
  0x68   : > { %1028 = vmatpush2.bf16.msra.mxu0 %v1541_v44 }
  0x69   : > { %1081 = vmatpush2.bf16.msra.mxu1 %v1542_v45  ;;  %1029 = vmatprep.subr.bf16.mxu0 %v1543_v46 }
  0x6a   : > { %1082 = vmatprep.subr.bf16.mxu1 %v1545_v47 }
  0x6c   : > { %1030 = vmatpush2.bf16.msra.mxu0 %v1547_v48 }
  0x6d   : > { %1083 = vmatpush2.bf16.msra.mxu1 %v1548_v49  ;;  %1031 = vmatprep.subr.bf16.mxu0 %v1549_v50 }
  0x6e   : > { %1084 = vmatprep.subr.bf16.mxu1 %v1551_v51 }
  0x70   : > { %1032 = vmatpush2.bf16.msra.mxu0 %v1553_v52 }
  0x71   : > { %1085 = vmatpush2.bf16.msra.mxu1 %v1554_v53  ;;  %1033 = vmatprep.subr.bf16.mxu0 %v1555_v54 }
  0x72   : > { %1086 = vmatprep.subr.bf16.mxu1 %v1557_v55 }
  0x74   : > { %1034 = vmatpush2.bf16.msra.mxu0 %v1559_v56 }
  0x75   : > { %1087 = vmatpush2.bf16.msra.mxu1 %v1560_v57  ;;  %1035 = vmatprep.subr.bf16.mxu0 %v1561_v58 }
  0x76   : > { %1088 = vmatprep.subr.bf16.mxu1 %v1563_v59 }
  0x78   : > { %1036 = vmatpush2.bf16.msra.mxu0 %v1565_v60 }
  0x79   : > { %1089 = vmatpush2.bf16.msra.mxu1 %v1566_v61  ;;  %1037 = vmatprep.subr.bf16.mxu0 %v1567_v62 }
  0x7a   : > { %1090 = vmatprep.subr.bf16.mxu1 %v1569_v63 }
  0x7c   : > { %1038 = vmatpush2.bf16.msra.mxu0 %v1571_v0 }
  0x7d   : > { %1091 = vmatpush2.bf16.msra.mxu1 %v1572_v1 }
  0x7f   : > { %1040 = vmatmul.mubr.bf16.vlgmr.msra.gmra.mxu0 %v1573_v2 }
  0x80   : > { %1093 = vmatmul.mubr.bf16.vlgmr.msra.gmra.mxu1 %v1576_v3  ;;  %1049 = vmatprep.mubr.bf16.mxu0 %v1579_v4 }
  0x81   : > { %1102 = vmatprep.mubr.bf16.mxu1 %v1581_v5 }
  0x87   : > { %1050 = vmatmul.mubr.bf16.gmra.mxu0 %v1583_v6 }
  0x88   : > { %1103 = vmatmul.mubr.bf16.gmra.mxu1 %v1584_v7 }
 0x13f   : > { %v1041_v14 = vpop.f32.mrf.mxu0 }
 0x140   : > { %v1094_v15 = vpop.f32.mrf.mxu1 }
 0x141   : > { %v1095_v16 = vadd.f32 %v1094_v15, %v1041_v14  ;;  %v1043_v18 = vpop.f32.mrf.mxu0 }
 0x142   : > { %v1096_v19 = vpop.f32.mrf.mxu1 }
 0x143   : > { %v1113_v20 = vadd.f32 %v1095_v16, %v552_v13  ;;  %v1097_v21 = vadd.f32 %v1096_v19, %v1043_v18  ;;  %v1045_v22 = vpop.f32.mrf.mxu0 }
 0x144   : > { %v1098_v23 = vpop.f32.mrf.mxu1 }
 0x145   : > { %v1114_v24 = vadd.f32 %v1097_v21, %v556_v17  ;;  %v1099_v25 = vadd.f32 %v1098_v23, %v1045_v22  ;;  %v1047_v26 = vpop.f32.mrf.mxu0  ;;  %v1140_v28 = vmax.f32 %v1113_v20, 0.0 }
 0x146   : > { %v1100_v27 = vpop.f32.mrf.mxu1 }
 0x147   : > { %v1141_v29 = vmax.f32 %v1114_v24, 0.0  ;;  %v1115_v30 = vadd.f32 %v1099_v25, %v552_v13  ;;  %v1101_v31 = vadd.f32 %v1100_v27, %v1047_v26  ;;  %v1051_v32 = vpop.f32.mrf.mxu0 }
 0x148   : > { %v1104_v33 = vpop.f32.mrf.mxu1 }
 0x149   : > { %v1432_v34 = vpack.c.bf16 %v1141_v29, %v1140_v28  ;;  %v1116_v35 = vadd.f32 %v1101_v31, %v556_v17  ;;  %v1105_v36 = vadd.f32 %v1104_v33, %v1051_v32  ;;  %v1053_v37 = vpop.f32.mrf.mxu0  ;;  %v1142_v39 = vmax.f32 %v1115_v30, 0.0 }
 0x14a   : > { %v1106_v38 = vpop.f32.mrf.mxu1 }
 0x14b   : > { %1172 = vst [vmem:[%s1926_s9] sm:$0xff] %v1432_v34  ;;  %v1143_v40 = vmax.f32 %v1116_v35, 0.0  ;;  %v1117_v41 = vadd.f32 %v1105_v36, %v552_v13  ;;  %v1107_v42 = vadd.f32 %v1106_v38, %v1053_v37  ;;  %v1055_v43 = vpop.f32.mrf.mxu0 }
 0x14c   : > { %v1108_v44 = vpop.f32.mrf.mxu1 }
 0x14d   : > { %v1433_v45 = vpack.c.bf16 %v1143_v40, %v1142_v39  ;;  %v1118_v46 = vadd.f32 %v1107_v42, %v556_v17  ;;  %v1109_v47 = vadd.f32 %v1108_v44, %v1055_v43  ;;  %v1057_v48 = vpop.f32.mrf.mxu0  ;;  %v1144_v50 = vmax.f32 %v1117_v41, 0.0 }
 0x14e   : > { %v1110_v49 = vpop.f32.mrf.mxu1 }
 0x14f   : > { %1173 = vst [vmem:[%s1926_s9 + $0x8] sm:$0xff] %v1433_v45  ;;  %v1145_v51 = vmax.f32 %v1118_v46, 0.0  ;;  %v1119_v52 = vadd.f32 %v1109_v47, %v552_v13  ;;  %v1111_v53 = vadd.f32 %v1110_v49, %v1057_v48 }
 0x151   : > { %v1434_v54 = vpack.c.bf16 %v1145_v51, %v1144_v50  ;;  %v1120_v55 = vadd.f32 %v1111_v53, %v556_v17  ;;  %v1146_v56 = vmax.f32 %v1119_v52, 0.0 }
 0x152   : > { %v1223_v59 = vld [vmem:[%s1926_s9] sm:$0xff] (%p1680_p6) }
 0x153   : > { %1174 = vst [vmem:[%s1926_s9 + $0x10] sm:$0xff] %v1434_v54  ;;  %v1147_v57 = vmax.f32 %v1120_v55, 0.0  ;;  %1182 = sbr.rel (!%p1680_p6) target bundleno = 352 (0x160), region = 82  ;;  %1224 = vst [vmem:[%s1188_s11] sm:$0xff] (%p1680_p6), %v1223_v59 }
 0x155   : > { %v1435_v58 = vpack.c.bf16 %v1147_v57, %v1146_v56 }
 0x156   : > { %v1225_v60 = vld [vmem:[%s1926_s9 + $0x8] sm:$0xff] (%p1680_p6) }
 0x157   : > { %1175 = vst [vmem:[%s1926_s9 + $0x18] sm:$0xff] %v1435_v58  ;;  %1226 = vst [vmem:[%s1188_s11 + $0x10] sm:$0xff] (%p1680_p6), %v1225_v60 }
 0x15a   : > { %v1227_v61 = vld [vmem:[%s1926_s9 + $0x10] sm:$0xff] }
 0x15b   : > { %1228 = vst [vmem:[%s1188_s11 + $0x20] sm:$0xff] %v1227_v61 }
 0x15e   : > { %v1229_v62 = vld [vmem:[%s1926_s9 + $0x18] sm:$0xff] }
 0x15f   : > { %1230 = vst [vmem:[%s1188_s11 + $0x30] sm:$0xff] %v1229_v62 }
 0x160 PF: > { %s13_s16 = sadd.s32 1, %s1623_s16   ;;  %s1962_s12 = smov %s1611_s13 }
 0x161   : > { %p10_p12 = scmp.ge.s32.totalorder %s13_s16, 4   ;;  %s1963_s13 = smov %s1685_s22 }
 0x162   : > { %s1964_s14 = smov %s1619_s15  ;;  %s1965_s15 = smov %s1967_s17 }
 0x163   :  { %12 = sbr.rel (!%p10_p12) target bundleno = 3 (0x3), region = 157 }

// kernel: generator_forward.16
= control target key start
LH: loop header
LB: loop body
LE: loop exit
PB: predicated region body
PF: predicated region fallthrough
CT: control target
= control target key end

     0   :  { %s1508_s15 = smov 0   ;;  %s1510_s16 = smov 0   ;;  %s1690_s0 = inlined_call_operand.vmem [shape: bf16[128,4608], index: 0, kind: input, shape index: {}]   ;;  %s1691_s1 = inlined_call_operand.vmem [shape: bf16[4608,128], index: 1, kind: input, shape index: {}]   ;;  %s1692_s2 = inlined_call_operand.vmem [shape: f32[1,128], index: 2, kind: input, shape index: {}]   ;;  %s1693_s3 = inlined_call_operand.vmem [shape: bf16[128,128], index: 3, kind: input, shape index: {}]   ;;  %s1694_s4 = inlined_call_operand.vmem [shape: bf16[128,128], index: 4, kind: output, shape index: {}]  }
   0x1   :  { %s1512_s17 = smov 0   ;;  %s1514_s18 = smov 0  }
   0x2   :  { %s1516_s19 = smov 0   ;;  %s1518_s20 = smov 0  }
   0x3   :  { %s1520_s21 = smov 0  }
   0x4 LB: > { %s26_s22 = sadd.s32 1, %s1473_s19  ;;  %s33_s23 = sadd.s32 1, %s1477_s20  ;;  %s1481_s21 = sphi %s1520_s21, %s14_s21   ;;  %s1477_s20 = sphi %s1518_s20, %s1700_s20   ;;  %s1473_s19 = sphi %s1516_s19, %s1699_s19   ;;  %s1469_s18 = sphi %s1514_s18, %s1698_s18   ;;  %s1465_s17 = sphi %s1512_s17, %s1697_s17   ;;  %s1461_s16 = sphi %s1510_s16, %s1696_s16   ;;  %s1457_s15 = sphi %s1508_s15, %s1695_s15  }
   0x5   : > { %p27_p0 = scmp.ge.s32.totalorder %s26_s22, 9  ;;  %p49_p1 = scmp.ne.s32.totalorder %s1461_s16, %s1457_s15 }
   0x6   : > { %p50_p2 = scmp.eq.s32.totalorder %s1481_s21, 0  ;;  %s42_s27 = sadd.s32 1, %s1461_s16 }
   0x7   : > { %s1702_s22 = smov (%p27_p0, %s26_s22), 0  ;;  %s1704_s23 = smov (!%p27_p0, %s33_s23), %s1477_s20 }
   0x8   : > { %p51_p3 = por %p50_p2, %p49_p1  ;;  %p35_p4 = scmp.ge.s32.totalorder %s1704_s23, 2 }
   0x9   : > { %s38_s24 = ssub.s32 %s1473_s19, %s1702_s22  ;;  %p1109_p6 = scmp.ge.s32.totalorder %s1481_s21, 18 }
   0xa   : > { %s1706_s23 = smov (%p35_p4, %s1704_s23), 0 }
   0xb   : > { %s37_s25 = ssub.s32 %s1477_s20, %s1706_s23  ;;  %191 = sbr.rel (%p1109_p6) target bundleno = 32 (0x20), region = 20 }
   0xc   : > { %s39_s26 = sor.u32 %s38_s24, %s37_s25 }
   0xd   : > { %p40_p5 = scmp.eq.s32.totalorder %s39_s26, 0 }
   0xf   : > { %s1559_s28 = scalar_select %p40_p5, %s1461_s16, %s42_s27  }
  0x10   : > { %194 = sbr.rel (!%p51_p3) target bundleno = 32 (0x20), region = 24  ;;  %s196_s29 = sand.u32 (%p51_p3), 1, %s1461_s16  }
  0x11   : > { %s1112_s30 = sshll.u32 (%p51_p3), %s1473_s19, 2  ;;  %s1110_s5 = sshll.u32 (%p51_p3), %s196_s29, 7 }
  0x12   : > { %s1314_s6 = smul.u32 (%p51_p3), 288, %s1477_s20  ;;  %s198_s12 = scalar_lea.vmem (%p51_p3), [#allocation3], %s1110_s5 }
  0x14   : > { %s202_s7 = sadd.s32 (%p51_p3), %s1314_s6, %s1112_s30 }
  0x15   : > { %s1114_s8 = sshll.u32 %s202_s7, 2 }
  0x16   : > { %s1568_s11 = scalar_lea.vmem %s1690_s0, %s1114_s8 }
  0x17   : > { %v217_v0 = vld [vmem:[%s1568_s11] sm:$0xff]  ;;  %v219_v1 = vld [vmem:[%s1568_s11 + $0x8] sm:$0xff]  ;;  %v221_v2 = vld [vmem:[%s1568_s11 + $0x90] sm:$0xff] }
  0x18   : > { %218 = vst [vmem:[%s198_s12] sm:$0xff] %v217_v0  ;;  %220 = vst [vmem:[%s198_s12 + $0x8] sm:$0xff] %v219_v1  ;;  %v223_v3 = vld [vmem:[%s1568_s11 + $0x98] sm:$0xff]  ;;  %v225_v4 = vld [vmem:[%s1568_s11 + $0x120] sm:$0xff] }
  0x19   : > { %222 = vst [vmem:[%s198_s12 + $0x10] sm:$0xff] %v221_v2  ;;  %v227_v5 = vld [vmem:[%s1568_s11 + $0x128] sm:$0xff]  ;;  %224 = vst [vmem:[%s198_s12 + $0x18] sm:$0xff] %v223_v3  ;;  %v229_v6 = vld [vmem:[%s1568_s11 + $0x1b0] sm:$0xff] }
  0x1a   : > { %226 = vst [vmem:[%s198_s12 + $0x20] sm:$0xff] %v225_v4  ;;  %228 = vst [vmem:[%s198_s12 + $0x28] sm:$0xff] %v227_v5  ;;  %v231_v7 = vld [vmem:[%s1568_s11 + $0x1b8] sm:$0xff]  ;;  %v233_v8 = vld [vmem:[%s1568_s11 + $0x240] sm:$0xff] }
  0x1b   : > { %230 = vst [vmem:[%s198_s12 + $0x30] sm:$0xff] %v229_v6  ;;  %232 = vst [vmem:[%s198_s12 + $0x38] sm:$0xff] %v231_v7  ;;  %v235_v9 = vld [vmem:[%s1568_s11 + $0x248] sm:$0xff]  ;;  %v237_v10 = vld [vmem:[%s1568_s11 + $0x2d0] sm:$0xff] }
  0x1c   : > { %234 = vst [vmem:[%s198_s12 + $0x40] sm:$0xff] %v233_v8  ;;  %v239_v11 = vld [vmem:[%s1568_s11 + $0x2d8] sm:$0xff]  ;;  %236 = vst [vmem:[%s198_s12 + $0x48] sm:$0xff] %v235_v9  ;;  %v241_v12 = vld [vmem:[%s1568_s11 + $0x360] sm:$0xff] }
  0x1d   : > { %238 = vst [vmem:[%s198_s12 + $0x50] sm:$0xff] %v237_v10  ;;  %240 = vst [vmem:[%s198_s12 + $0x58] sm:$0xff] %v239_v11  ;;  %v243_v13 = vld [vmem:[%s1568_s11 + $0x368] sm:$0xff]  ;;  %v245_v14 = vld [vmem:[%s1568_s11 + $0x3f0] sm:$0xff] }
  0x1e   : > { %242 = vst [vmem:[%s198_s12 + $0x60] sm:$0xff] %v241_v12  ;;  %244 = vst [vmem:[%s198_s12 + $0x68] sm:$0xff] %v243_v13  ;;  %v247_v15 = vld [vmem:[%s1568_s11 + $0x3f8] sm:$0xff] }
  0x1f   : > { %246 = vst [vmem:[%s198_s12 + $0x70] sm:$0xff] %v245_v14  ;;  %248 = vst [vmem:[%s198_s12 + $0x78] sm:$0xff] %v247_v15 }
  0x20 PF: > { %p1115_p7 = scmp.ge.s32.totalorder %s1481_s21, 1  ;;  %p277_p8 = scmp.lt.s32.totalorder %s1481_s21, 19 }
  0x22   : > { %p278_p9 = pnand %p1115_p7, %p277_p8 }
  0x23   : > { %s284_s13 = sand.u32 (!%p278_p9), 1, %s1457_s15   ;;  %s1117_s14 = sshll.u32 (!%p278_p9), %s1465_s17, 6 }
  0x24   : > { %281 = sbr.rel (%p278_p9) target bundleno = 333 (0x14d), region = 55  ;;  %s1116_s24 = sshll.u32 (!%p278_p9), %s284_s13, 7 }
  0x25   : > { %p334_p10 = scmp.lt.s32.totalorder (!%p278_p9), %s1117_s14, 575  ;;  %s1119_s25 = sshll.u32 (!%p278_p9), %s1469_s18, 3 }
  0x26   : > { %p346_p11 = scmp.lt.s32.totalorder (!%p278_p9), %s1119_s25, 15  ;;  %s1606_s18 = scalar_lea.vmem (!%p278_p9), [#allocation3], %s1116_s24 }
  0x27   : > { %p1123_p12 = scmp.ne.s32.totalorder (!%p278_p9), %s1465_s17, 0 }
  0x29   : > { %s1708_s14 = smov (!%p334_p10, %s1117_s14), 575  ;;  %s1710_s25 = smov (!%p346_p11, %s1119_s25), 15 }
  0x2a   : > { %s1118_s26 = sshll.u32 %s1708_s14, 2  ;;  %s1120_s5 = sshll.u32 %s1710_s25, 2 }
  0x2b   : > { %s1594_s30 = scalar_lea.vmem %s1691_s1, %s1118_s26  ;;  %s1599_s8 = scalar_lea.vmem %s1693_s3, %s1120_s5 }
  0x2c   : > { %s1604_s10 = scalar_lea.vmem %s1694_s4, %s1120_s5  ;;  %367 = sbr.rel (%p1123_p12) target bundleno = 54 (0x36), region = 63 }
  0x31   : > { %v1124_v16 = vld [vmem:[%s1692_s2] ss:$0 sm:$0xff] }
  0x32   : > { %375 = vst [vmem:[#allocation2 + $0x30] sm:$0xff] %v1124_v16  ;;  %376 = vst [vmem:[#allocation2] sm:$0xff] %v1124_v16 }
  0x33   : > { %377 = vst [vmem:[#allocation2 + $0x18] sm:$0xff] %v1124_v16  ;;  %378 = vst [vmem:[#allocation2 + $0x10] sm:$0xff] %v1124_v16 }
  0x34   : > { %379 = vst [vmem:[#allocation2 + $0x8] sm:$0xff] %v1124_v16  ;;  %380 = vst [vmem:[#allocation2 + $0x20] sm:$0xff] %v1124_v16 }
  0x35   : > { %381 = vst [vmem:[#allocation2 + $0x28] sm:$0xff] %v1124_v16  ;;  %382 = vst [vmem:[#allocation2 + $0x38] sm:$0xff] %v1124_v16 }
  0x36 PF: > { %v1371_v17 = vld [vmem:[%s1594_s30 + $0x78] sm:$0xff]   ;;  %v1375_v21 = vld [vmem:[%s1594_s30 + $0x70] sm:$0xff]   ;;  %v1379_v25 = vld [vmem:[%s1594_s30 + $0x68] sm:$0xff]   ;;  %p1173_p13 = scmp.ne.s32.totalorder %s1465_s17, 8 }
  0x37   : > { %v1372_v18 = vld [vmem:[%s1594_s30 + $0xf8] sm:$0xff]   ;;  %1234 = vmatprep.subr.bf16.mxu0 %v1371_v17  ;;  %v1376_v22 = vld [vmem:[%s1594_s30 + $0xf0] sm:$0xff]   ;;  %v1380_v26 = vld [vmem:[%s1594_s30 + $0xe8] sm:$0xff]  }
  0x38   : > { %v1373_v19 = vld [vmem:[%s1594_s30 + $0x38] sm:$0xff]   ;;  %1274 = vmatprep.subr.bf16.mxu1 %v1372_v18  ;;  %v1377_v23 = vld [vmem:[%s1594_s30 + $0x30] sm:$0xff]   ;;  %v1381_v27 = vld [vmem:[%s1594_s30 + $0x28] sm:$0xff]  }
  0x39   : > { %v1374_v20 = vld [vmem:[%s1594_s30 + $0xb8] sm:$0xff]   ;;  %1235 = vmatpush3.bf16.msra.mxu0 %v1373_v19  ;;  %v1378_v24 = vld [vmem:[%s1594_s30 + $0xb0] sm:$0xff]   ;;  %v1382_v28 = vld [vmem:[%s1594_s30 + $0xa8] sm:$0xff]  }
  0x3a   : > { %1275 = vmatpush3.bf16.msra.mxu1 %v1374_v20  ;;  %1236 = vmatprep.subr.bf16.mxu0 %v1375_v21  ;;  %v1383_v29 = vld [vmem:[%s1594_s30 + $0x60] sm:$0xff]   ;;  %v1387_v33 = vld [vmem:[%s1594_s30 + $0x58] sm:$0xff]   ;;  %v1391_v37 = vld [vmem:[%s1594_s30 + $0x50] sm:$0xff]  }
  0x3b   : > { %1276 = vmatprep.subr.bf16.mxu1 %v1376_v22  ;;  %v1384_v30 = vld [vmem:[%s1594_s30 + $0xe0] sm:$0xff]   ;;  %v1388_v34 = vld [vmem:[%s1594_s30 + $0xd8] sm:$0xff]   ;;  %v1392_v38 = vld [vmem:[%s1594_s30 + $0xd0] sm:$0xff]  }
  0x3c   : > { %v1385_v31 = vld [vmem:[%s1594_s30 + $0x20] sm:$0xff]   ;;  %v1389_v35 = vld [vmem:[%s1594_s30 + $0x18] sm:$0xff]   ;;  %v1393_v39 = vld [vmem:[%s1594_s30 + $0x10] sm:$0xff]  }
  0x3d   : > { %1237 = vmatpush3.bf16.msra.mxu0 %v1377_v23  ;;  %v1386_v32 = vld [vmem:[%s1594_s30 + $0xa0] sm:$0xff]   ;;  %v1390_v36 = vld [vmem:[%s1594_s30 + $0x98] sm:$0xff]   ;;  %v1394_v40 = vld [vmem:[%s1594_s30 + $0x90] sm:$0xff]  }
  0x3e   : > { %1277 = vmatpush3.bf16.msra.mxu1 %v1378_v24  ;;  %1238 = vmatprep.subr.bf16.mxu0 %v1379_v25  ;;  %v1395_v41 = vld [vmem:[%s1594_s30 + $0x48] sm:$0xff]   ;;  %v1399_v45 = vld [vmem:[%s1594_s30 + $0x40] sm:$0xff]   ;;  %v383_v8 = vld [vmem:[#allocation2 + $0x30] sm:$0xff] }
  0x3f   : > { %1278 = vmatprep.subr.bf16.mxu1 %v1380_v26  ;;  %v1396_v42 = vld [vmem:[%s1594_s30 + $0xc8] sm:$0xff]   ;;  %v1400_v46 = vld [vmem:[%s1594_s30 + $0xc0] sm:$0xff]   ;;  %v385_v26 = vld [vmem:[#allocation2 + $0x18] sm:$0xff] }
  0x40   : > { %v1397_v43 = vld [vmem:[%s1594_s30 + $0x8] sm:$0xff]   ;;  %v1401_v47 = vld [vmem:[%s1594_s30] sm:$0xff]  }
  0x41   : > { %1239 = vmatpush3.bf16.msra.mxu0 %v1381_v27  ;;  %v1398_v44 = vld [vmem:[%s1594_s30 + $0x88] sm:$0xff]   ;;  %v1402_v48 = vld [vmem:[%s1594_s30 + $0x80] sm:$0xff]  }
  0x42   : > { %1279 = vmatpush3.bf16.msra.mxu1 %v1382_v28  ;;  %1240 = vmatprep.subr.bf16.mxu0 %v1383_v29  ;;  %v1403_v49 = vld [vmem:[%s1606_s18] ss:$16 sps:$4 sm:$0xff]   ;;  %v1405_v50 = vld [vmem:[%s1606_s18 + $0x4] ss:$16 sps:$4 sm:$0xff]   ;;  %v1406_v51 = vld [vmem:[%s1606_s18 + $0x8] ss:$16 sps:$4 sm:$0xff]  }
  0x43   : > { %1280 = vmatprep.subr.bf16.mxu1 %v1384_v30  ;;  %v1408_v52 = vld [vmem:[%s1606_s18 + $0xc] ss:$16 sps:$4 sm:$0xff]   ;;  %775 = vmatprep.mubr.bf16.mxu0 %v1405_v50  ;;  %v1409_v53 = vld [vmem:[%s1606_s18 + $0x24] ss:$16 sps:$4 sm:$0xff]   ;;  %v1413_v55 = vld [vmem:[%s1606_s18 + $0x20] ss:$16 sps:$4 sm:$0xff]  }
  0x44   : > { %840 = vmatprep.mubr.bf16.mxu1 %v1408_v52  ;;  %v1411_v54 = vld [vmem:[%s1606_s18 + $0x2c] ss:$16 sps:$4 sm:$0xff]   ;;  %v1414_v56 = vld [vmem:[%s1606_s18 + $0x28] ss:$16 sps:$4 sm:$0xff]   ;;  %v1415_v57 = vld [vmem:[%s1606_s18 + $0x44] ss:$16 sps:$4 sm:$0xff]  }
  0x45   : > { %1241 = vmatpush3.bf16.msra.mxu0 %v1385_v31  ;;  %v1417_v58 = vld [vmem:[%s1606_s18 + $0x4c] ss:$16 sps:$4 sm:$0xff]   ;;  %v1419_v59 = vld [vmem:[%s1606_s18 + $0x40] ss:$16 sps:$4 sm:$0xff]   ;;  %v1420_v60 = vld [vmem:[%s1606_s18 + $0x48] ss:$16 sps:$4 sm:$0xff]  }
  0x46   : > { %1281 = vmatpush3.bf16.msra.mxu1 %v1386_v32  ;;  %1242 = vmatprep.subr.bf16.mxu0 %v1387_v33  ;;  %v1421_v61 = vld [vmem:[%s1606_s18 + $0x64] ss:$16 sps:$4 sm:$0xff]   ;;  %v1423_v62 = vld [vmem:[%s1606_s18 + $0x6c] ss:$16 sps:$4 sm:$0xff]   ;;  %v1425_v63 = vld [vmem:[%s1606_s18 + $0x60] ss:$16 sps:$4 sm:$0xff]  }
  0x47   : > { %1282 = vmatprep.subr.bf16.mxu1 %v1388_v34  ;;  %v1426_v0 = vld [vmem:[%s1606_s18 + $0x68] ss:$16 sps:$4 sm:$0xff]   ;;  %v384_v17 = vld [vmem:[#allocation2] sm:$0xff] }
  0x49   : > { %1243 = vmatpush3.bf16.msra.mxu0 %v1389_v35  ;;  %v386_v35 = vld [vmem:[#allocation2 + $0x10] sm:$0xff] }
  0x4a   : > { %1283 = vmatpush3.bf16.msra.mxu1 %v1390_v36  ;;  %1244 = vmatprep.subr.bf16.mxu0 %v1391_v37 }
  0x4b   : > { %1284 = vmatprep.subr.bf16.mxu1 %v1392_v38 }
  0x4d   : > { %1245 = vmatpush3.bf16.msra.mxu0 %v1393_v39 }
  0x4e   : > { %1285 = vmatpush3.bf16.msra.mxu1 %v1394_v40  ;;  %1246 = vmatprep.subr.bf16.mxu0 %v1395_v41 }
  0x4f   : > { %1286 = vmatprep.subr.bf16.mxu1 %v1396_v42 }
  0x51   : > { %1247 = vmatpush3.bf16.msra.mxu0 %v1397_v43 }
  0x52   : > { %1287 = vmatpush3.bf16.msra.mxu1 %v1398_v44  ;;  %1248 = vmatprep.subr.bf16.mxu0 %v1399_v45  ;;  %v387_v44 = vld [vmem:[#allocation2 + $0x8] sm:$0xff] }
  0x53   : > { %1288 = vmatprep.subr.bf16.mxu1 %v1400_v46 }
  0x55   : > { %1249 = vmatpush3.bf16.msra.mxu0 %v1401_v47 }
  0x56   : > { %1289 = vmatpush3.bf16.msra.mxu1 %v1402_v48 }
  0x58   : > { %776 = vmatmul.mubr.bf16.vlgmr.msra.gmra.mxu0 %v1403_v49 }
  0x59   : > { %841 = vmatmul.mubr.bf16.vlgmr.msra.gmra.mxu1 %v1406_v51  ;;  %783 = vmatprep.mubr.bf16.mxu0 %v1409_v53  ;;  %v388_v53 = vld [vmem:[#allocation2 + $0x20] sm:$0xff] }
  0x5a   : > { %848 = vmatprep.mubr.bf16.mxu1 %v1411_v54 }
  0x60   : > { %784 = vmatmul.mubr.bf16.gmra.mxu0 %v1413_v55 }
  0x61   : > { %849 = vmatmul.mubr.bf16.gmra.mxu1 %v1414_v56  ;;  %791 = vmatprep.mubr.bf16.mxu0 %v1415_v57 }
  0x62   : > { %856 = vmatprep.mubr.bf16.mxu1 %v1417_v58 }
  0x68   : > { %792 = vmatmul.mubr.bf16.gmra.mxu0 %v1419_v59 }
  0x69   : > { %857 = vmatmul.mubr.bf16.gmra.mxu1 %v1420_v60  ;;  %799 = vmatprep.mubr.bf16.mxu0 %v1421_v61 }
  0x6a   : > { %864 = vmatprep.mubr.bf16.mxu1 %v1423_v62  ;;  %v389_v62 = vld [vmem:[#allocation2 + $0x28] sm:$0xff] }
  0x70   : > { %800 = vmatmul.mubr.bf16.gmra.mxu0 %v1425_v63 }
  0x71   : > { %865 = vmatmul.mubr.bf16.gmra.mxu1 %v1426_v0 }
 0x118   : > { %v1250_v1 = vpop.f32.mrf.mxu0 }
 0x119   : > { %v1290_v2 = vpop.f32.mrf.mxu1 }
 0x11a   : > { %v1251_v3 = vpop.f32.mrf.mxu0 }
 0x11b   : > { %v1252_v4 = vadd.f32 %v1251_v3, %v1250_v1  ;;  %v1291_v5 = vpop.f32.mrf.mxu1 }
 0x11c   : > { %v1292_v6 = vadd.f32 %v1291_v5, %v1290_v2  ;;  %v1253_v7 = vpop.f32.mrf.mxu0 }
 0x11d   : > { %v1293_v9 = vpop.f32.mrf.mxu1 }
 0x11e   : > { %v843_v10 = vadd.f32 %v1292_v6, %v1252_v4  ;;  %v1254_v11 = vpop.f32.mrf.mxu0  ;;  %v390_v6 = vld [vmem:[#allocation2 + $0x38] sm:$0xff] }
 0x11f   : > { %v1255_v12 = vadd.f32 %v1254_v11, %v1253_v7  ;;  %v1294_v13 = vpop.f32.mrf.mxu1 }
 0x120   : > { %v873_v14 = vadd.f32 %v843_v10, %v383_v8  ;;  %v1295_v15 = vadd.f32 %v1294_v13, %v1293_v9  ;;  %v1256_v16 = vpop.f32.mrf.mxu0 }
 0x121   : > { %v1296_v18 = vpop.f32.mrf.mxu1 }
 0x122   : > { %881 = vst [vmem:[#allocation2 + $0x30] sm:$0xff] %v873_v14  ;;  %v846_v19 = vadd.f32 %v1295_v15, %v1255_v12  ;;  %v1257_v20 = vpop.f32.mrf.mxu0 }
 0x123   : > { %v1258_v21 = vadd.f32 %v1257_v20, %v1256_v16  ;;  %v1297_v22 = vpop.f32.mrf.mxu1 }
 0x124   : > { %v874_v23 = vadd.f32 %v846_v19, %v384_v17  ;;  %v1298_v24 = vadd.f32 %v1297_v22, %v1296_v18  ;;  %v1259_v25 = vpop.f32.mrf.mxu0 }
 0x125   : > { %v1299_v27 = vpop.f32.mrf.mxu1 }
 0x126   : > { %882 = vst [vmem:[#allocation2] sm:$0xff] %v874_v23  ;;  %v851_v28 = vadd.f32 %v1298_v24, %v1258_v21  ;;  %v1260_v29 = vpop.f32.mrf.mxu0 }
 0x127   : > { %v1261_v30 = vadd.f32 %v1260_v29, %v1259_v25  ;;  %v1300_v31 = vpop.f32.mrf.mxu1 }
 0x128   : > { %v875_v32 = vadd.f32 %v851_v28, %v385_v26  ;;  %v1301_v33 = vadd.f32 %v1300_v31, %v1299_v27  ;;  %v1262_v34 = vpop.f32.mrf.mxu0 }
 0x129   : > { %v1302_v36 = vpop.f32.mrf.mxu1 }
 0x12a   : > { %883 = vst [vmem:[#allocation2 + $0x18] sm:$0xff] %v875_v32  ;;  %v854_v37 = vadd.f32 %v1301_v33, %v1261_v30  ;;  %v1263_v38 = vpop.f32.mrf.mxu0 }
 0x12b   : > { %v1264_v39 = vadd.f32 %v1263_v38, %v1262_v34  ;;  %v1303_v40 = vpop.f32.mrf.mxu1 }
 0x12c   : > { %v876_v41 = vadd.f32 %v854_v37, %v386_v35  ;;  %v1304_v42 = vadd.f32 %v1303_v40, %v1302_v36  ;;  %v1265_v43 = vpop.f32.mrf.mxu0 }
 0x12d   : > { %v1305_v45 = vpop.f32.mrf.mxu1 }
 0x12e   : > { %884 = vst [vmem:[#allocation2 + $0x10] sm:$0xff] %v876_v41  ;;  %v859_v46 = vadd.f32 %v1304_v42, %v1264_v39  ;;  %v1266_v47 = vpop.f32.mrf.mxu0 }
 0x12f   : > { %v1267_v48 = vadd.f32 %v1266_v47, %v1265_v43  ;;  %v1306_v49 = vpop.f32.mrf.mxu1 }
 0x130   : > { %v877_v50 = vadd.f32 %v859_v46, %v387_v44  ;;  %v1307_v51 = vadd.f32 %v1306_v49, %v1305_v45  ;;  %v1268_v52 = vpop.f32.mrf.mxu0 }
 0x131   : > { %v1308_v54 = vpop.f32.mrf.mxu1 }
 0x132   : > { %885 = vst [vmem:[#allocation2 + $0x8] sm:$0xff] %v877_v50  ;;  %v862_v55 = vadd.f32 %v1307_v51, %v1267_v48  ;;  %v1269_v56 = vpop.f32.mrf.mxu0 }
 0x133   : > { %v1270_v57 = vadd.f32 %v1269_v56, %v1268_v52  ;;  %v1309_v58 = vpop.f32.mrf.mxu1 }
 0x134   : > { %v878_v59 = vadd.f32 %v862_v55, %v388_v53  ;;  %v1310_v60 = vadd.f32 %v1309_v58, %v1308_v54  ;;  %v1271_v61 = vpop.f32.mrf.mxu0 }
 0x135   : > { %v1311_v63 = vpop.f32.mrf.mxu1 }
 0x136   : > { %886 = vst [vmem:[#allocation2 + $0x20] sm:$0xff] %v878_v59  ;;  %v867_v0 = vadd.f32 %v1310_v60, %v1270_v57  ;;  %v1272_v1 = vpop.f32.mrf.mxu0 }
 0x137   : > { %v1273_v2 = vadd.f32 %v1272_v1, %v1271_v61  ;;  %v1312_v3 = vpop.f32.mrf.mxu1 }
 0x138   : > { %v879_v4 = vadd.f32 %v867_v0, %v389_v62  ;;  %v1313_v5 = vadd.f32 %v1312_v3, %v1311_v63 }
 0x13a   : > { %887 = vst [vmem:[#allocation2 + $0x28] sm:$0xff] %v879_v4  ;;  %v870_v7 = vadd.f32 %v1313_v5, %v1273_v2  ;;  %892 = sbr.rel (%p1173_p13) target bundleno = 333 (0x14d), region = 67 }
 0x13c   : > { %v880_v8 = vadd.f32 %v870_v7, %v390_v6 }
 0x13e   : > { %888 = vst [vmem:[#allocation2 + $0x38] sm:$0xff] %v880_v8 }
 0x13f   : > { %v893_v9 = vld [vmem:[#allocation2 + $0x30] sm:$0xff]  ;;  %v894_v10 = vld [vmem:[#allocation2] sm:$0xff]  ;;  %v895_v16 = vld [vmem:[#allocation2 + $0x18] sm:$0xff] }
 0x140   : > { %v1193_v11 = vld [vmem:[%s1599_s8] sm:$0xff]   ;;  %v901_v12 = vmax.f32 %v893_v9, 0.0  ;;  %v902_v13 = vmax.f32 %v894_v10, 0.0  ;;  %v896_v17 = vld [vmem:[#allocation2 + $0x10] sm:$0xff]  ;;  %v1228_v18 = vld [vmem:[%s1599_s8 + $0x8] sm:$0xff]   ;;  %v903_v19 = vmax.f32 %v895_v16, 0.0 }
 0x141   : > { %v1194_v14 = vunpack.c.l.bf16 %v1193_v11  ;;  %v1195_v15 = vunpack.c.h.bf16 %v1193_v11  ;;  %v904_v20 = vmax.f32 %v896_v17, 0.0  ;;  %v1198_v21 = vunpack.c.l.bf16 %v1228_v18  ;;  %v897_v23 = vld [vmem:[#allocation2 + $0x8] sm:$0xff]  ;;  %v898_v24 = vld [vmem:[#allocation2 + $0x20] sm:$0xff]  ;;  %v1229_v25 = vld [vmem:[%s1599_s8 + $0x10] sm:$0xff]  }
 0x142   : > { %v1199_v22 = vunpack.c.h.bf16 %v1228_v18  ;;  %v905_v28 = vmax.f32 %v897_v23, 0.0  ;;  %v906_v29 = vmax.f32 %v898_v24, 0.0  ;;  %v899_v30 = vld [vmem:[#allocation2 + $0x28] sm:$0xff]  ;;  %v1230_v32 = vld [vmem:[%s1599_s8 + $0x18] sm:$0xff]   ;;  %v1202_v35 = vunpack.c.l.bf16 %v1229_v25 }
 0x143   : > { %v925_v26 = vadd.f32 %v1194_v14, %v901_v12  ;;  %v926_v27 = vadd.f32 %v1195_v15, %v902_v13  ;;  %v927_v33 = vadd.f32 %v1198_v21, %v903_v19  ;;  %v1203_v36 = vunpack.c.h.bf16 %v1229_v25 }
 0x144   : > { %v928_v34 = vadd.f32 %v1199_v22, %v904_v20  ;;  %v907_v38 = vmax.f32 %v899_v30, 0.0  ;;  %v1206_v40 = vunpack.c.l.bf16 %v1230_v32  ;;  %v929_v42 = vadd.f32 %v1202_v35, %v905_v28 }
 0x145   : > { %v900_v31 = vld [vmem:[#allocation2 + $0x38] sm:$0xff]  ;;  %v1211_v37 = vpack.c.bf16 %v926_v27, %v925_v26  ;;  %v930_v43 = vadd.f32 %v1203_v36, %v906_v29  ;;  %v1207_v44 = vunpack.c.h.bf16 %v1230_v32 }
 0x146   : > { %v908_v39 = vmax.f32 %v900_v31, 0.0  ;;  %v1216_v41 = vpack.c.bf16 %v928_v34, %v927_v33  ;;  %v931_v45 = vadd.f32 %v1206_v40, %v907_v38 }
 0x147   : > { %1212 = vst [vmem:[%s1604_s10] sm:$0xff] %v1211_v37   ;;  %v1221_v46 = vpack.c.bf16 %v930_v43, %v929_v42 }
 0x148   : > { %1231 = vst [vmem:[%s1604_s10 + $0x8] sm:$0xff] %v1216_v41   ;;  %v932_v47 = vadd.f32 %v1207_v44, %v908_v39 }
 0x149   : > { %1232 = vst [vmem:[%s1604_s10 + $0x10] sm:$0xff] %v1221_v46  }
 0x14a   : > { %v1226_v48 = vpack.c.bf16 %v932_v47, %v931_v45 }
 0x14c   : > { %1233 = vst [vmem:[%s1604_s10 + $0x18] sm:$0xff] %v1226_v48  }
 0x14d PF: > { %s14_s21 = sadd.s32 1, %s1481_s21   ;;  %s1695_s15 = smov %s1461_s16 }
 0x14e   : > { %p11_p0 = scmp.ge.s32.totalorder %s14_s21, 20   ;;  %s1696_s16 = smov %s1559_s28 }
 0x14f   : > { %s1697_s17 = smov %s1473_s19  ;;  %s1698_s18 = smov %s1477_s20 }
 0x150   : > { %s1699_s19 = smov %s1702_s22  ;;  %s1700_s20 = smov %s1706_s23 }
 0x151   :  { %13 = sbr.rel (!%p11_p0) target bundleno = 4 (0x4), region = 111 }

// kernel: generator_forward.17
= control target key start
LH: loop header
LB: loop body
LE: loop exit
PB: predicated region body
PF: predicated region fallthrough
CT: control target
= control target key end

     0   :  { %s1865_s12 = smov 0   ;;  %s1867_s13 = smov 0   ;;  %s2128_s0 = inlined_call_operand.vmem [shape: bf16[512,384], index: 0, kind: input, shape index: {}]   ;;  %s2129_s1 = inlined_call_operand.vmem [shape: bf16[384,128], index: 1, kind: input, shape index: {}]   ;;  %s2130_s2 = inlined_call_operand.vmem [shape: f32[1,128], index: 2, kind: input, shape index: {}]   ;;  %s2131_s3 = inlined_call_operand.vmem [shape: f32[512,128], index: 3, kind: output, shape index: {}]  }
   0x1   :  { %s1869_s14 = smov 0  }
   0x2 LB: > { %s32_s15 = sadd.s32 1, %s1839_s13  ;;  %p1428_p0 = scmp.ge.s32.totalorder %s1843_s14, 1  ;;  %s1843_s14 = sphi %s1869_s14, %s13_s14   ;;  %s1839_s13 = sphi %s1867_s13, %s2133_s13   ;;  %s1835_s12 = sphi %s1865_s12, %s2132_s12  }
   0x3   : > { %p34_p1 = scmp.ge.s32.totalorder %s32_s15, 2  ;;  %p191_p2 = scmp.lt.s32.totalorder %s1843_s14, 3 }
   0x5   : > { %s2135_s15 = smov (%p34_p1, %s32_s15), 0  ;;  %p192_p3 = pnand %p1428_p0, %p191_p2 }
   0x6   : > { %s1429_s18 = sshll.u32 (!%p192_p3), %s1835_s12, 5 }
   0x7   : > { %195 = sbr.rel (%p192_p3) target bundleno = 339 (0x153), region = 32  ;;  %p236_p4 = scmp.lt.s32.totalorder (!%p192_p3), %s1429_s18, 63 }
   0xc   : > { %v1733_v0 = vld [vmem:[%s2129_s1 + $0x78] sm:$0xff]   ;;  %v1735_v2 = vld [vmem:[%s2129_s1 + $0x70] sm:$0xff]   ;;  %v1737_v4 = vld [vmem:[%s2129_s1 + $0x68] sm:$0xff]   ;;  %s2137_s18 = smov (!%p236_p4, %s1429_s18), 63 }
   0xd   : > { %v1734_v1 = vld [vmem:[%s2129_s1 + $0x38] sm:$0xff]   ;;  %1508 = vmatprep.subr.bf16.mxu0 %v1733_v0  ;;  %1692 = vmatprep.subr.bf16.mxu1 %v1733_v0  ;;  %v1736_v3 = vld [vmem:[%s2129_s1 + $0x30] sm:$0xff]   ;;  %v1738_v5 = vld [vmem:[%s2129_s1 + $0x28] sm:$0xff]   ;;  %s1708_s4 = smul.u32 12, %s2137_s18 }
   0xe   : > { %1509 = vmatpush3.bf16.msra.mxu0 %v1734_v1  ;;  %1700 = vmatpush3.bf16.msra.mxu1 %v1734_v1  ;;  %v1739_v6 = vld [vmem:[%s2129_s1 + $0x60] sm:$0xff]   ;;  %v1741_v8 = vld [vmem:[%s2129_s1 + $0x58] sm:$0xff]   ;;  %v1743_v10 = vld [vmem:[%s2129_s1 + $0x50] sm:$0xff]  }
   0xf   : > { %1510 = vmatprep.subr.bf16.mxu0 %v1735_v2  ;;  %1693 = vmatprep.subr.bf16.mxu1 %v1735_v2  ;;  %v1740_v7 = vld [vmem:[%s2129_s1 + $0x20] sm:$0xff]   ;;  %s1916_s11 = scalar_lea.vmem %s2128_s0, %s1708_s4  ;;  %v1742_v9 = vld [vmem:[%s2129_s1 + $0x18] sm:$0xff]   ;;  %v1744_v13 = vld [vmem:[%s2129_s1 + $0x10] sm:$0xff]  }
  0x10   : > { %v1751_v11 = vld [vmem:[%s1916_s11 + $0x4] ss:$12 sps:$4 sm:$0xff]   ;;  %v1745_v14 = vld [vmem:[%s2129_s1 + $0x48] sm:$0xff]   ;;  %v1755_v18 = vld [vmem:[%s2129_s1 + $0xb8] sm:$0xff]  }
  0x11   : > { %v1754_v12 = vld [vmem:[%s1916_s11 + $0x124] ss:$12 sps:$4 sm:$0xff]   ;;  %887 = vmatprep.mubr.bf16.mxu0 %v1751_v11  ;;  %v1746_v15 = vld [vmem:[%s2129_s1 + $0x8] sm:$0xff]   ;;  %v1765_v28 = vld [vmem:[%s1916_s11 + $0x34] ss:$12 sps:$4 sm:$0xff]  }
  0x12   : > { %1511 = vmatpush3.bf16.msra.mxu0 %v1736_v3  ;;  %1701 = vmatpush3.bf16.msra.mxu1 %v1736_v3  ;;  %v1747_v16 = vld [vmem:[%s2129_s1 + $0x40] sm:$0xff]   ;;  %v1757_v21 = vld [vmem:[%s1916_s11 + $0x1c] ss:$12 sps:$4 sm:$0xff]   ;;  %v1756_v22 = vld [vmem:[%s2129_s1 + $0xb0] sm:$0xff]  }
  0x13   : > { %1512 = vmatprep.subr.bf16.mxu0 %v1737_v4  ;;  %1694 = vmatprep.subr.bf16.mxu1 %v1737_v4  ;;  %v1748_v17 = vld [vmem:[%s2129_s1] sm:$0xff]   ;;  %v1759_v23 = vld [vmem:[%s1916_s11 + $0x13c] ss:$12 sps:$4 sm:$0xff]   ;;  %v1772_v33 = vld [vmem:[%s2129_s1 + $0x90] sm:$0xff]  }
  0x14   : > { %983 = vmatprep.mubr.bf16.mxu1 %v1754_v12  ;;  %v1749_v19 = vld [vmem:[%s1916_s11] ss:$12 sps:$4 sm:$0xff]   ;;  %v1761_v24 = vld [vmem:[%s1916_s11 + $0x18] ss:$12 sps:$4 sm:$0xff]   ;;  %v1769_v31 = vld [vmem:[%s1916_s11 + $0x30] ss:$12 sps:$4 sm:$0xff]  }
  0x15   : > { %v1752_v20 = vld [vmem:[%s1916_s11 + $0x120] ss:$12 sps:$4 sm:$0xff]   ;;  %v1762_v26 = vld [vmem:[%s1916_s11 + $0x138] ss:$12 sps:$4 sm:$0xff]   ;;  %v1770_v32 = vld [vmem:[%s1916_s11 + $0x150] ss:$12 sps:$4 sm:$0xff]  }
  0x16   : > { %1513 = vmatpush3.bf16.msra.mxu0 %v1738_v5  ;;  %1702 = vmatpush3.bf16.msra.mxu1 %v1738_v5  ;;  %v1763_v25 = vld [vmem:[%s2129_s1 + $0xa8] sm:$0xff]   ;;  %v1764_v27 = vld [vmem:[%s2129_s1 + $0xa0] sm:$0xff]   ;;  %v1771_v30 = vld [vmem:[%s2129_s1 + $0x98] sm:$0xff]  }
  0x17   : > { %1514 = vmatprep.subr.bf16.mxu0 %v1739_v6  ;;  %1695 = vmatprep.subr.bf16.mxu1 %v1739_v6  ;;  %v1767_v29 = vld [vmem:[%s1916_s11 + $0x154] ss:$12 sps:$4 sm:$0xff]   ;;  %v1773_v34 = vld [vmem:[%s1916_s11 + $0x4c] ss:$12 sps:$4 sm:$0xff]   ;;  %v1781_v39 = vld [vmem:[%s1916_s11 + $0x64] ss:$12 sps:$4 sm:$0xff]  }
  0x18   : > { %v1775_v35 = vld [vmem:[%s1916_s11 + $0x16c] ss:$12 sps:$4 sm:$0xff]   ;;  %v1777_v37 = vld [vmem:[%s1916_s11 + $0x48] ss:$12 sps:$4 sm:$0xff]   ;;  %v1780_v40 = vld [vmem:[%s2129_s1 + $0x80] sm:$0xff]  }
  0x19   : > { %v1779_v36 = vld [vmem:[%s2129_s1 + $0x88] sm:$0xff]   ;;  %v1788_v45 = vld [vmem:[%s1916_s11 + $0x38] ss:$12 sps:$4 sm:$0xff]   ;;  %v1790_v47 = vld [vmem:[%s1916_s11 + $0x50] ss:$12 sps:$4 sm:$0xff]  }
  0x1a   : > { %1515 = vmatpush3.bf16.msra.mxu0 %v1740_v7  ;;  %1703 = vmatpush3.bf16.msra.mxu1 %v1740_v7  ;;  %v1778_v38 = vld [vmem:[%s1916_s11 + $0x168] ss:$12 sps:$4 sm:$0xff]   ;;  %v1784_v42 = vld [vmem:[%s1916_s11 + $0x60] ss:$12 sps:$4 sm:$0xff]   ;;  %v1789_v46 = vld [vmem:[%s1916_s11 + $0x78] ss:$12 sps:$4 sm:$0xff]  }
  0x1b   : > { %1516 = vmatprep.subr.bf16.mxu0 %v1741_v8  ;;  %1696 = vmatprep.subr.bf16.mxu1 %v1741_v8  ;;  %v1783_v41 = vld [vmem:[%s1916_s11 + $0x8] ss:$12 sps:$4 sm:$0xff]   ;;  %v1785_v43 = vld [vmem:[%s1916_s11 + $0x20] ss:$12 sps:$4 sm:$0xff]   ;;  %v1794_v50 = vld [vmem:[%s1916_s11 + $0x90] ss:$12 sps:$4 sm:$0xff]  }
  0x1c   : > { %v1786_v44 = vld [vmem:[%s1916_s11 + $0x7c] ss:$12 sps:$4 sm:$0xff]   ;;  %v1791_v48 = vld [vmem:[%s1916_s11 + $0x94] ss:$12 sps:$4 sm:$0xff]   ;;  %v1796_v52 = vld [vmem:[%s1916_s11 + $0xac] ss:$12 sps:$4 sm:$0xff]  }
  0x1d   : > { %v1793_v49 = vld [vmem:[%s1916_s11 + $0x68] ss:$12 sps:$4 sm:$0xff]   ;;  %v1795_v51 = vld [vmem:[%s1916_s11 + $0x80] ss:$12 sps:$4 sm:$0xff]   ;;  %v1798_v53 = vld [vmem:[%s1916_s11 + $0x98] ss:$12 sps:$4 sm:$0xff]  }
  0x1e   : > { %1517 = vmatpush3.bf16.msra.mxu0 %v1742_v9  ;;  %1704 = vmatpush3.bf16.msra.mxu1 %v1742_v9  ;;  %v1799_v54 = vld [vmem:[%s1916_s11 + $0xa8] ss:$12 sps:$4 sm:$0xff]   ;;  %v1800_v55 = vld [vmem:[%s1916_s11 + $0xb0] ss:$12 sps:$4 sm:$0xff]   ;;  %v1804_v58 = vld [vmem:[%s1916_s11 + $0xc0] ss:$12 sps:$4 sm:$0xff]  }
  0x1f   : > { %1518 = vmatprep.subr.bf16.mxu0 %v1743_v10  ;;  %1697 = vmatprep.subr.bf16.mxu1 %v1743_v10  ;;  %v1801_v56 = vld [vmem:[%s1916_s11 + $0xc4] ss:$12 sps:$4 sm:$0xff]   ;;  %v1803_v57 = vld [vmem:[%s1916_s11 + $0xc8] ss:$12 sps:$4 sm:$0xff]   ;;  %v1805_v59 = vld [vmem:[%s1916_s11 + $0xe0] ss:$12 sps:$4 sm:$0xff]  }
  0x20   : > { %v1806_v60 = vld [vmem:[%s1916_s11 + $0xdc] ss:$12 sps:$4 sm:$0xff]   ;;  %v1808_v61 = vld [vmem:[%s1916_s11 + $0xf8] ss:$12 sps:$4 sm:$0xff]   ;;  %v1811_v0 = vld [vmem:[%s1916_s11 + $0xf4] ss:$12 sps:$4 sm:$0xff]  }
  0x21   : > { %v1809_v62 = vld [vmem:[%s1916_s11 + $0xd8] ss:$12 sps:$4 sm:$0xff]   ;;  %v1810_v63 = vld [vmem:[%s1916_s11 + $0x110] ss:$12 sps:$4 sm:$0xff]   ;;  %v1813_v1 = vld [vmem:[%s1916_s11 + $0x128] ss:$12 sps:$4 sm:$0xff]  }
  0x22   : > { %1519 = vmatpush3.bf16.msra.mxu0 %v1744_v13  ;;  %1705 = vmatpush3.bf16.msra.mxu1 %v1744_v13  ;;  %v1814_v2 = vld [vmem:[%s1916_s11 + $0xf0] ss:$12 sps:$4 sm:$0xff]   ;;  %v1815_v3 = vld [vmem:[%s1916_s11 + $0x140] ss:$12 sps:$4 sm:$0xff]   ;;  %v1818_v5 = vld [vmem:[%s1916_s11 + $0x158] ss:$12 sps:$4 sm:$0xff]  }
  0x23   : > { %1520 = vmatprep.subr.bf16.mxu0 %v1745_v14  ;;  %1698 = vmatprep.subr.bf16.mxu1 %v1745_v14  ;;  %v1816_v4 = vld [vmem:[%s1916_s11 + $0x10c] ss:$12 sps:$4 sm:$0xff]   ;;  %v1819_v6 = vld [vmem:[%s1916_s11 + $0x108] ss:$12 sps:$4 sm:$0xff]   ;;  %v1820_v7 = vld [vmem:[%s1916_s11 + $0x170] ss:$12 sps:$4 sm:$0xff]  }
  0x24   : > { %s1432_s11 = sshll.u32 %s2137_s18, 3 }
  0x25   : > { %s2040_s28 = scalar_lea.vmem %s2131_s3, %s1432_s11 }
  0x26   : > { %1521 = vmatpush3.bf16.msra.mxu0 %v1746_v15  ;;  %1706 = vmatpush3.bf16.msra.mxu1 %v1746_v15 }
  0x27   : > { %1522 = vmatprep.subr.bf16.mxu0 %v1747_v16  ;;  %1699 = vmatprep.subr.bf16.mxu1 %v1747_v16 }
  0x2a   : > { %1523 = vmatpush3.bf16.msra.mxu0 %v1748_v17  ;;  %1707 = vmatpush3.bf16.msra.mxu1 %v1748_v17 }
  0x2b   : > { %1644 = vmatprep.subr.bf16.mxu1 %v1755_v18 }
  0x2d   : > { %888 = vmatmul.mubr.bf16.vlgmr.msra.gmra.mxu0 %v1749_v19  ;;  %984 = vmatmul.mubr.bf16.vlgmr.msra.gmra.mxu1 %v1752_v20 }
  0x2e   : > { %1645 = vmatpush3.bf16.msra.mxu1 %v1755_v18  ;;  %895 = vmatprep.mubr.bf16.mxu0 %v1757_v21 }
  0x2f   : > { %1646 = vmatprep.subr.bf16.mxu1 %v1756_v22  ;;  %991 = vmatprep.mubr.bf16.mxu1 %v1759_v23 }
  0x32   : > { %1647 = vmatpush3.bf16.msra.mxu1 %v1756_v22 }
  0x33   : > { %1648 = vmatprep.subr.bf16.mxu1 %v1763_v25 }
  0x35   : > { %896 = vmatmul.mubr.bf16.gmra.mxu0 %v1761_v24  ;;  %992 = vmatmul.mubr.bf16.gmra.mxu1 %v1762_v26 }
  0x36   : > { %1649 = vmatpush3.bf16.msra.mxu1 %v1763_v25  ;;  %903 = vmatprep.mubr.bf16.mxu0 %v1765_v28 }
  0x37   : > { %1650 = vmatprep.subr.bf16.mxu1 %v1764_v27  ;;  %999 = vmatprep.mubr.bf16.mxu1 %v1767_v29 }
  0x3a   : > { %1651 = vmatpush3.bf16.msra.mxu1 %v1764_v27 }
  0x3b   : > { %1652 = vmatprep.subr.bf16.mxu1 %v1771_v30 }
  0x3d   : > { %904 = vmatmul.mubr.bf16.gmra.mxu0 %v1769_v31  ;;  %1000 = vmatmul.mubr.bf16.gmra.mxu1 %v1770_v32 }
  0x3e   : > { %1653 = vmatpush3.bf16.msra.mxu1 %v1771_v30  ;;  %911 = vmatprep.mubr.bf16.mxu0 %v1773_v34 }
  0x3f   : > { %1654 = vmatprep.subr.bf16.mxu1 %v1772_v33  ;;  %1007 = vmatprep.mubr.bf16.mxu1 %v1775_v35 }
  0x42   : > { %1655 = vmatpush3.bf16.msra.mxu1 %v1772_v33 }
  0x43   : > { %1656 = vmatprep.subr.bf16.mxu1 %v1779_v36 }
  0x45   : > { %912 = vmatmul.mubr.bf16.gmra.mxu0 %v1777_v37  ;;  %1008 = vmatmul.mubr.bf16.gmra.mxu1 %v1778_v38 }
  0x46   : > { %1657 = vmatpush3.bf16.msra.mxu1 %v1779_v36  ;;  %919 = vmatprep.mubr.bf16.mxu0 %v1781_v39 }
  0x47   : > { %1658 = vmatprep.subr.bf16.mxu1 %v1780_v40  ;;  %1660 = vmatprep.mubr.bf16.mxu1 %v1783_v41 }
  0x4a   : > { %1659 = vmatpush3.bf16.msra.mxu1 %v1780_v40 }
  0x4d   : > { %920 = vmatmul.mubr.bf16.gmra.mxu0 %v1784_v42  ;;  %1661 = vmatmul.mubr.bf16.vlgmr.msra.gmra.mxu1 %v1785_v43 }
  0x4e   : > { %927 = vmatprep.mubr.bf16.mxu0 %v1786_v44  ;;  %1664 = vmatprep.mubr.bf16.mxu1 %v1788_v45 }
  0x55   : > { %928 = vmatmul.mubr.bf16.gmra.mxu0 %v1789_v46  ;;  %1665 = vmatmul.mubr.bf16.gmra.mxu1 %v1790_v47 }
  0x56   : > { %935 = vmatprep.mubr.bf16.mxu0 %v1791_v48  ;;  %1668 = vmatprep.mubr.bf16.mxu1 %v1793_v49  ;;  %v2035_v48 = vld [vmem:[%s2130_s2] ss:$0 sm:$0xff] }
  0x5d   : > { %936 = vmatmul.mubr.bf16.gmra.mxu0 %v1794_v50  ;;  %1669 = vmatmul.mubr.bf16.gmra.mxu1 %v1795_v51 }
  0x5e   : > { %943 = vmatprep.mubr.bf16.mxu0 %v1796_v52  ;;  %1672 = vmatprep.mubr.bf16.mxu1 %v1798_v53 }
  0x65   : > { %944 = vmatmul.mubr.bf16.gmra.mxu0 %v1799_v54  ;;  %1673 = vmatmul.mubr.bf16.gmra.mxu1 %v1800_v55 }
  0x66   : > { %951 = vmatprep.mubr.bf16.mxu0 %v1801_v56  ;;  %1676 = vmatprep.mubr.bf16.mxu1 %v1803_v57 }
  0x6d   : > { %952 = vmatmul.mubr.bf16.gmra.mxu0 %v1804_v58  ;;  %1677 = vmatmul.mubr.bf16.gmra.mxu1 %v1805_v59 }
  0x6e   : > { %959 = vmatprep.mubr.bf16.mxu0 %v1806_v60  ;;  %1680 = vmatprep.mubr.bf16.mxu1 %v1808_v61 }
  0x75   : > { %960 = vmatmul.mubr.bf16.gmra.mxu0 %v1809_v62  ;;  %1681 = vmatmul.mubr.bf16.gmra.mxu1 %v1810_v63 }
  0x76   : > { %967 = vmatprep.mubr.bf16.mxu0 %v1811_v0  ;;  %1684 = vmatprep.mubr.bf16.mxu1 %v1813_v1 }
  0x7d   : > { %968 = vmatmul.mubr.bf16.gmra.mxu0 %v1814_v2  ;;  %1685 = vmatmul.mubr.bf16.gmra.mxu1 %v1815_v3 }
  0x7e   : > { %975 = vmatprep.mubr.bf16.mxu0 %v1816_v4  ;;  %1688 = vmatprep.mubr.bf16.mxu1 %v1818_v5 }
  0x85   : > { %976 = vmatmul.mubr.bf16.gmra.mxu0 %v1819_v6  ;;  %1689 = vmatmul.mubr.bf16.gmra.mxu1 %v1820_v7 }
  0xed   : > { %v1524_v8 = vpop.f32.mrf.mxu0  ;;  %v1596_v9 = vpop.f32.mrf.mxu1 }
  0xef   : > { %v1525_v10 = vpop.f32.mrf.mxu0  ;;  %v1597_v11 = vpop.f32.mrf.mxu1 }
  0xf0   : > { %v2011_v12 = vadd.f32 %v1597_v11, %v1596_v9  ;;  %v1526_v50 = vadd.f32 %v1525_v10, %v1524_v8 }
  0xf1   : > { %v1527_v13 = vpop.f32.mrf.mxu0  ;;  %v1599_v14 = vpop.f32.mrf.mxu1 }
  0xf3   : > { %v1528_v15 = vpop.f32.mrf.mxu0  ;;  %v1600_v16 = vpop.f32.mrf.mxu1 }
  0xf4   : > { %v2013_v17 = vadd.f32 %v1600_v16, %v1599_v14  ;;  %v1529_v59 = vadd.f32 %v1528_v15, %v1527_v13 }
  0xf5   : > { %v1530_v18 = vpop.f32.mrf.mxu0  ;;  %v1602_v19 = vpop.f32.mrf.mxu1 }
  0xf7   : > { %v1531_v20 = vpop.f32.mrf.mxu0  ;;  %v1603_v21 = vpop.f32.mrf.mxu1 }
  0xf8   : > { %v2015_v22 = vadd.f32 %v1603_v21, %v1602_v19  ;;  %v1532_v46 = vadd.f32 %v1531_v20, %v1530_v18 }
  0xf9   : > { %v1533_v23 = vpop.f32.mrf.mxu0  ;;  %v1605_v24 = vpop.f32.mrf.mxu1 }
  0xfb   : > { %v1534_v25 = vpop.f32.mrf.mxu0  ;;  %v1606_v26 = vpop.f32.mrf.mxu1 }
  0xfc   : > { %v2017_v27 = vadd.f32 %v1606_v26, %v1605_v24  ;;  %v1535_v54 = vadd.f32 %v1534_v25, %v1533_v23 }
  0xfd   : > { %v1536_v28 = vpop.f32.mrf.mxu0  ;;  %v1608_v29 = vpop.f32.mrf.mxu1 }
  0xff   : > { %v1537_v30 = vpop.f32.mrf.mxu0  ;;  %v1609_v31 = vpop.f32.mrf.mxu1 }
 0x100   : > { %v2019_v32 = vadd.f32 %v1609_v31, %v1608_v29  ;;  %v1538_v5 = vadd.f32 %v1537_v30, %v1536_v28 }
 0x101   : > { %v1539_v33 = vpop.f32.mrf.mxu0  ;;  %v1611_v34 = vpop.f32.mrf.mxu1 }
 0x103   : > { %v1540_v35 = vpop.f32.mrf.mxu0  ;;  %v1612_v36 = vpop.f32.mrf.mxu1 }
 0x104   : > { %v2021_v37 = vadd.f32 %v1612_v36, %v1611_v34  ;;  %v1541_v16 = vadd.f32 %v1540_v35, %v1539_v33 }
 0x105   : > { %v1542_v38 = vpop.f32.mrf.mxu0  ;;  %v2023_v39 = vpop.f32.mrf.mxu1 }
 0x107   : > { %v1543_v40 = vpop.f32.mrf.mxu0  ;;  %v2025_v41 = vpop.f32.mrf.mxu1 }
 0x108   : > { %v1544_v0 = vadd.f32 %v1543_v40, %v1542_v38 }
 0x109   : > { %v1545_v42 = vpop.f32.mrf.mxu0  ;;  %v2027_v43 = vpop.f32.mrf.mxu1 }
 0x10b   : > { %v1546_v44 = vpop.f32.mrf.mxu0  ;;  %v2029_v45 = vpop.f32.mrf.mxu1 }
 0x10c   : > { %v1547_v10 = vadd.f32 %v1546_v44, %v1545_v42 }
 0x10d   : > { %v1548_v47 = vpop.f32.mrf.mxu0  ;;  %v1662_v49 = vpop.f32.mrf.mxu1 }
 0x10e   : > { %v1059_v51 = vadd.f32 %v1662_v49, %v1532_v46 }
 0x10f   : > { %v1549_v52 = vpop.f32.mrf.mxu0  ;;  %v1050_v53 = vpop.f32.mrf.mxu1 }
 0x110   : > { %v1179_v55 = vadd.f32 %v2035_v48, %v1059_v51  ;;  %v1051_v56 = vadd.f32 %v1526_v50, %v1050_v53  ;;  %v1550_v29 = vadd.f32 %v1549_v52, %v1548_v47 }
 0x111   : > { %v1551_v57 = vpop.f32.mrf.mxu0  ;;  %v1663_v58 = vpop.f32.mrf.mxu1 }
 0x112   : > { %1278 = vst [vmem:[%s2040_s28 + $0x10] sm:$0xff] %v1179_v55  ;;  %v1177_v60 = vadd.f32 %v2035_v48, %v1051_v56  ;;  %v1062_v61 = vadd.f32 %v1663_v58, %v1535_v54 }
 0x113   : > { %v1552_v62 = vpop.f32.mrf.mxu0  ;;  %v1053_v63 = vpop.f32.mrf.mxu1 }
 0x114   : > { %1276 = vst [vmem:[%s2040_s28] sm:$0xff] %v1177_v60  ;;  %v1180_v1 = vadd.f32 %v2035_v48, %v1062_v61  ;;  %v1054_v2 = vadd.f32 %v1529_v59, %v1053_v63  ;;  %v1553_v44 = vadd.f32 %v1552_v62, %v1551_v57 }
 0x115   : > { %v1554_v3 = vpop.f32.mrf.mxu0  ;;  %v1666_v4 = vpop.f32.mrf.mxu1 }
 0x116   : > { %1279 = vst [vmem:[%s2040_s28 + $0x18] sm:$0xff] %v1180_v1  ;;  %v1178_v6 = vadd.f32 %v2035_v48, %v1054_v2  ;;  %v1075_v7 = vadd.f32 %v1666_v4, %v1544_v0 }
 0x117   : > { %v1555_v8 = vpop.f32.mrf.mxu0  ;;  %v1066_v9 = vpop.f32.mrf.mxu1 }
 0x118   : > { %1277 = vst [vmem:[%s2040_s28 + $0x8] sm:$0xff] %v1178_v6  ;;  %v1183_v11 = vadd.f32 %v2035_v48, %v1075_v7  ;;  %v1067_v13 = vadd.f32 %v1538_v5, %v1066_v9  ;;  %v1556_v23 = vadd.f32 %v1555_v8, %v1554_v3 }
 0x119   : > { %v1557_v14 = vpop.f32.mrf.mxu0  ;;  %v1667_v15 = vpop.f32.mrf.mxu1 }
 0x11a   : > { %1282 = vst [vmem:[%s2040_s28 + $0x30] sm:$0xff] %v1183_v11  ;;  %v1181_v18 = vadd.f32 %v2035_v48, %v1067_v13  ;;  %v1078_v19 = vadd.f32 %v1667_v15, %v1547_v10 }
 0x11b   : > { %v1558_v20 = vpop.f32.mrf.mxu0  ;;  %v1069_v21 = vpop.f32.mrf.mxu1 }
 0x11c   : > { %1280 = vst [vmem:[%s2040_s28 + $0x20] sm:$0xff] %v1181_v18  ;;  %v1184_v24 = vadd.f32 %v2035_v48, %v1078_v19  ;;  %v1070_v25 = vadd.f32 %v1541_v16, %v1069_v21  ;;  %v1559_v35 = vadd.f32 %v1558_v20, %v1557_v14 }
 0x11d   : > { %v1560_v26 = vpop.f32.mrf.mxu0  ;;  %v1670_v28 = vpop.f32.mrf.mxu1 }
 0x11e   : > { %1283 = vst [vmem:[%s2040_s28 + $0x38] sm:$0xff] %v1184_v24  ;;  %v1182_v30 = vadd.f32 %v2035_v48, %v1070_v25  ;;  %v1091_v31 = vadd.f32 %v1670_v28, %v1556_v23 }
 0x11f   : > { %v1561_v33 = vpop.f32.mrf.mxu0  ;;  %v1082_v34 = vpop.f32.mrf.mxu1 }
 0x120   : > { %1281 = vst [vmem:[%s2040_s28 + $0x28] sm:$0xff] %v1182_v30  ;;  %v1187_v36 = vadd.f32 %v2035_v48, %v1091_v31  ;;  %v1083_v38 = vadd.f32 %v1550_v29, %v1082_v34  ;;  %v1562_v55 = vadd.f32 %v1561_v33, %v1560_v26 }
 0x121   : > { %v1563_v40 = vpop.f32.mrf.mxu0  ;;  %v1671_v42 = vpop.f32.mrf.mxu1 }
 0x122   : > { %1286 = vst [vmem:[%s2040_s28 + $0x50] sm:$0xff] %v1187_v36  ;;  %v1185_v46 = vadd.f32 %v2035_v48, %v1083_v38  ;;  %v1094_v47 = vadd.f32 %v1671_v42, %v1559_v35 }
 0x123   : > { %v1564_v49 = vpop.f32.mrf.mxu0  ;;  %v1085_v50 = vpop.f32.mrf.mxu1 }
 0x124   : > { %1284 = vst [vmem:[%s2040_s28 + $0x40] sm:$0xff] %v1185_v46  ;;  %v1188_v51 = vadd.f32 %v2035_v48, %v1094_v47  ;;  %v1086_v52 = vadd.f32 %v1553_v44, %v1085_v50  ;;  %v1565_v63 = vadd.f32 %v1564_v49, %v1563_v40 }
 0x125   : > { %v1566_v53 = vpop.f32.mrf.mxu0  ;;  %v1674_v54 = vpop.f32.mrf.mxu1 }
 0x126   : > { %1287 = vst [vmem:[%s2040_s28 + $0x58] sm:$0xff] %v1188_v51  ;;  %v1186_v56 = vadd.f32 %v2035_v48, %v1086_v52 }
 0x127   : > { %v1567_v58 = vpop.f32.mrf.mxu0  ;;  %v1098_v57 = vpop.f32.mrf.mxu1 }
 0x128   : > { %1285 = vst [vmem:[%s2040_s28 + $0x48] sm:$0xff] %v1186_v56  ;;  %v1568_v59 = vadd.f32 %v1567_v58, %v1566_v53  ;;  %v1099_v60 = vadd.f32 %v1562_v55, %v1098_v57 }
 0x129   : > { %v1569_v61 = vpop.f32.mrf.mxu0  ;;  %v1675_v62 = vpop.f32.mrf.mxu1 }
 0x12a   : > { %v1107_v0 = vadd.f32 %v1674_v54, %v1568_v59  ;;  %v1189_v1 = vadd.f32 %v2035_v48, %v1099_v60 }
 0x12b   : > { %v1570_v2 = vpop.f32.mrf.mxu0  ;;  %v1101_v3 = vpop.f32.mrf.mxu1 }
 0x12c   : > { %v1191_v4 = vadd.f32 %v2035_v48, %v1107_v0  ;;  %1288 = vst [vmem:[%s2040_s28 + $0x60] sm:$0xff] %v1189_v1  ;;  %v1571_v5 = vadd.f32 %v1570_v2, %v1569_v61  ;;  %v1102_v6 = vadd.f32 %v1565_v63, %v1101_v3  ;;  %v1616_v61 = vadd.f32 %v2025_v41, %v2023_v39 }
 0x12d   : > { %v1572_v7 = vpop.f32.mrf.mxu0  ;;  %v1678_v8 = vpop.f32.mrf.mxu1 }
 0x12e   : > { %1290 = vst [vmem:[%s2040_s28 + $0x70] sm:$0xff] %v1191_v4  ;;  %v1110_v9 = vadd.f32 %v1675_v62, %v1571_v5  ;;  %v1190_v10 = vadd.f32 %v2035_v48, %v1102_v6  ;;  %v1619_v5 = vadd.f32 %v2029_v45, %v2027_v43 }
 0x12f   : > { %v1573_v11 = vpop.f32.mrf.mxu0  ;;  %v1114_v13 = vpop.f32.mrf.mxu1 }
 0x130   : > { %v1192_v14 = vadd.f32 %v2035_v48, %v1110_v9  ;;  %1289 = vst [vmem:[%s2040_s28 + $0x68] sm:$0xff] %v1190_v10  ;;  %v1574_v15 = vadd.f32 %v1573_v11, %v1572_v7 }
 0x131   : > { %v1575_v16 = vpop.f32.mrf.mxu0  ;;  %v1679_v18 = vpop.f32.mrf.mxu1 }
 0x132   : > { %1291 = vst [vmem:[%s2040_s28 + $0x78] sm:$0xff] %v1192_v14  ;;  %v1115_v19 = vadd.f32 %v1574_v15, %v1114_v13 }
 0x133   : > { %v1576_v20 = vpop.f32.mrf.mxu0  ;;  %v1117_v21 = vpop.f32.mrf.mxu1 }
 0x134   : > { %v1193_v23 = vadd.f32 %v2035_v48, %v1115_v19  ;;  %v1577_v24 = vadd.f32 %v1576_v20, %v1575_v16 }
 0x135   : > { %v1578_v25 = vpop.f32.mrf.mxu0  ;;  %v1682_v26 = vpop.f32.mrf.mxu1 }
 0x136   : > { %1292 = vst [vmem:[%s2040_s28 + $0x80] sm:$0xff] %v1193_v23  ;;  %v1118_v28 = vadd.f32 %v1577_v24, %v1117_v21 }
 0x137   : > { %v1579_v29 = vpop.f32.mrf.mxu0  ;;  %v1130_v30 = vpop.f32.mrf.mxu1 }
 0x138   : > { %v1194_v31 = vadd.f32 %v2035_v48, %v1118_v28  ;;  %v1580_v33 = vadd.f32 %v1579_v29, %v1578_v25 }
 0x139   : > { %v1581_v34 = vpop.f32.mrf.mxu0  ;;  %v2077_v35 = vpop.f32.mrf.mxu1 }
 0x13a   : > { %1293 = vst [vmem:[%s2040_s28 + $0x88] sm:$0xff] %v1194_v31  ;;  %v1123_v36 = vadd.f32 %v1678_v8, %v1580_v33 }
 0x13b   : > { %v1582_v38 = vpop.f32.mrf.mxu0  ;;  %v1133_v40 = vpop.f32.mrf.mxu1 }
 0x13c   : > { %v1195_v42 = vadd.f32 %v2035_v48, %v1123_v36  ;;  %v1583_v44 = vadd.f32 %v1582_v38, %v1581_v34 }
 0x13d   : > { %v1584_v46 = vpop.f32.mrf.mxu0  ;;  %v1686_v47 = vpop.f32.mrf.mxu1 }
 0x13e   : > { %1294 = vst [vmem:[%s2040_s28 + $0x90] sm:$0xff] %v1195_v42  ;;  %v1126_v49 = vadd.f32 %v1679_v18, %v1583_v44  ;;  %v1155_v50 = vadd.f32 %v1686_v47, %v2015_v22 }
 0x13f   : > { %v1585_v51 = vpop.f32.mrf.mxu0  ;;  %v1146_v52 = vpop.f32.mrf.mxu1 }
 0x140   : > { %v1196_v53 = vadd.f32 %v2035_v48, %v1126_v49  ;;  %v1203_v54 = vadd.f32 %v2035_v48, %v1155_v50  ;;  %v1586_v55 = vadd.f32 %v1585_v51, %v1584_v46  ;;  %v1147_v56 = vadd.f32 %v2011_v12, %v1146_v52 }
 0x141   : > { %v1587_v58 = vpop.f32.mrf.mxu0  ;;  %v1687_v57 = vpop.f32.mrf.mxu1 }
 0x142   : > { %1295 = vst [vmem:[%s2040_s28 + $0x98] sm:$0xff] %v1196_v53  ;;  %1302 = vst [vmem:[%s2040_s28 + $0xd0] sm:$0xff] %v1203_v54  ;;  %v1131_v59 = vadd.f32 %v1586_v55, %v1130_v30  ;;  %v1201_v60 = vadd.f32 %v2035_v48, %v1147_v56  ;;  %v1158_v22 = vadd.f32 %v1687_v57, %v2017_v27 }
 0x143   : > { %v1588_v62 = vpop.f32.mrf.mxu0  ;;  %v1149_v63 = vpop.f32.mrf.mxu1 }
 0x144   : > { %v1197_v0 = vadd.f32 %v2035_v48, %v1131_v59  ;;  %1300 = vst [vmem:[%s2040_s28 + $0xc0] sm:$0xff] %v1201_v60  ;;  %v1204_v12 = vadd.f32 %v2035_v48, %v1158_v22  ;;  %v1589_v1 = vadd.f32 %v1588_v62, %v1587_v58  ;;  %v1150_v2 = vadd.f32 %v2013_v17, %v1149_v63 }
 0x145   : > { %v1590_v3 = vpop.f32.mrf.mxu0  ;;  %v1690_v4 = vpop.f32.mrf.mxu1 }
 0x146   : > { %1296 = vst [vmem:[%s2040_s28 + $0xa0] sm:$0xff] %v1197_v0  ;;  %1303 = vst [vmem:[%s2040_s28 + $0xd8] sm:$0xff] %v1204_v12  ;;  %v1134_v27 = vadd.f32 %v1589_v1, %v1133_v40  ;;  %v1202_v39 = vadd.f32 %v2035_v48, %v1150_v2  ;;  %v1171_v41 = vadd.f32 %v1690_v4, %v1616_v61 }
 0x147   : > { %v1591_v6 = vpop.f32.mrf.mxu0  ;;  %v1162_v7 = vpop.f32.mrf.mxu1 }
 0x148   : > { %v1198_v8 = vadd.f32 %v2035_v48, %v1134_v27  ;;  %1301 = vst [vmem:[%s2040_s28 + $0xc8] sm:$0xff] %v1202_v39  ;;  %v1207_v17 = vadd.f32 %v2035_v48, %v1171_v41  ;;  %v1592_v9 = vadd.f32 %v1591_v6, %v1590_v3  ;;  %v1163_v10 = vadd.f32 %v2019_v32, %v1162_v7 }
 0x149   : > { %v1593_v11 = vpop.f32.mrf.mxu0  ;;  %v1691_v13 = vpop.f32.mrf.mxu1 }
 0x14a   : > { %1297 = vst [vmem:[%s2040_s28 + $0xa8] sm:$0xff] %v1198_v8  ;;  %1306 = vst [vmem:[%s2040_s28 + $0xf0] sm:$0xff] %v1207_v17  ;;  %v1139_v14 = vadd.f32 %v1682_v26, %v1592_v9  ;;  %v1205_v43 = vadd.f32 %v2035_v48, %v1163_v10  ;;  %v1174_v45 = vadd.f32 %v1691_v13, %v1619_v5 }
 0x14b   : > { %v1594_v15 = vpop.f32.mrf.mxu0  ;;  %v1165_v16 = vpop.f32.mrf.mxu1 }
 0x14c   : > { %v1199_v18 = vadd.f32 %v2035_v48, %v1139_v14  ;;  %1304 = vst [vmem:[%s2040_s28 + $0xe0] sm:$0xff] %v1205_v43  ;;  %v1208_v19 = vadd.f32 %v2035_v48, %v1174_v45  ;;  %v1595_v20 = vadd.f32 %v1594_v15, %v1593_v11  ;;  %v1166_v32 = vadd.f32 %v2021_v37, %v1165_v16 }
 0x14e   : > { %1298 = vst [vmem:[%s2040_s28 + $0xb0] sm:$0xff] %v1199_v18  ;;  %1307 = vst [vmem:[%s2040_s28 + $0xf8] sm:$0xff] %v1208_v19  ;;  %v1142_v21 = vadd.f32 %v2077_v35, %v1595_v20  ;;  %v1206_v23 = vadd.f32 %v2035_v48, %v1166_v32 }
 0x150   : > { %v1200_v24 = vadd.f32 %v2035_v48, %v1142_v21  ;;  %1305 = vst [vmem:[%s2040_s28 + $0xe8] sm:$0xff] %v1206_v23 }
 0x152   : > { %1299 = vst [vmem:[%s2040_s28 + $0xb8] sm:$0xff] %v1200_v24 }
 0x153 PF: > { %s13_s14 = sadd.s32 1, %s1843_s14   ;;  %s2132_s12 = smov %s1839_s13 }
 0x154   : > { %p10_p5 = scmp.ge.s32.totalorder %s13_s14, 4   ;;  %s2133_s13 = smov %s2135_s15 }
 0x156   :  { %12 = sbr.rel (!%p10_p5) target bundleno = 2 (0x2), region = 76 }

</bundles_post_ra>
